<compile_context>
chip_gen: v6e
topology: v6e:2x2x1
jax: 0.10.0
libtpu: 0.0.40
codegen_flags: <defaults>
</compile_context>

<pallas_src>
import functools

import jax
import jax.numpy as jnp
from jax.experimental import pallas as pl
from jax.experimental.pallas import tpu as pltpu


def _round_up(x, m):
    return (x + m - 1) // m * m


def _compiler_params(dimension_semantics, vmem_bytes_needed):
    # Only raise the scoped-VMEM limit when the analytic requirement actually
    # exceeds the most conservative default (v5e: 16 MiB scoped).
    vmem_limit = None
    if vmem_bytes_needed > (12 << 20):
        vmem_limit = int(vmem_bytes_needed + (8 << 20))
    return pltpu.CompilerParams(
        dimension_semantics=dimension_semantics,
        vmem_limit_bytes=vmem_limit,
    )


def _matmul_tile_maxes():
    """Per-generation matmul tile caps (128 on v5e/older, wider on v6e/v7x)."""
    try:
        kind = jax.devices()[0].device_kind.lower()
    except Exception:  # pragma: no cover - defensive
        kind = ""
    if "v6" in kind or "v7" in kind:
        return 256, 512   # fills the 2x256x256 MXU, wide unmasked stores
    return 128, 128       # v5e and older: maps 1:1 onto 128x128 MXUs


def _choose_tc(T, b_pad, g_cols):
    """Adaptive time-chunk: tc = T for short sequences (no dead timesteps),
    otherwise the tc <= max_tc that minimizes time padding.  max_tc is capped
    so the fused x-projection scratch (tc*B_pad, 4*H_pad) f32 stays small
    relative to scoped VMEM on every generation (v7x: 64 MiB physical)."""
    max_tc = max(1, min(32, (2 << 20) // max(1, b_pad * g_cols * 4)))
    if T <= max_tc:
        return T
    best_tc, best_pad = max_tc, _round_up(T, max_tc)
    for tc in range(max_tc, 0, -1):
        pad = _round_up(T, tc)
        if pad < best_pad:
            best_tc, best_pad = tc, pad
    return best_tc


# --------------------------- batched matmul + bias ---------------------------

def _matmul_bias_kernel(x_ref, w_ref, b_ref, o_ref):
    o_ref[...] = (
        jnp.dot(x_ref[...], w_ref[...], preferred_element_type=jnp.float32)
        + b_ref[...]
    ).astype(o_ref.dtype)


def matmul_bias_pallas(x, w, b):
    """x: (M, K), w: (K, N), b: (N,) f32 -> (M, N) f32.

    M is padded only to the sublane tile (8) when it fits in one row-tile, so
    no wasted MXU rows; N is padded to the lane tile (128).  The grid puts N
    on the slow axis so each weight column tile streams from HBM exactly once.
    """
    M, K = x.shape
    K2, N = w.shape
    assert K == K2
    tm_max, tn_max = _matmul_tile_maxes()

    M8 = _round_up(M, 8)
    if M8 <= tm_max:
        tm, M_pad = M8, M8
    else:
        tm, M_pad = tm_max, _round_up(M, tm_max)
    N128 = _round_up(N, 128)
    if N128 <= tn_max:
        tn, N_pad = N128, N128
    else:
        tn, N_pad = tn_max, _round_up(N, tn_max)

    if M_pad != M:
        x = jnp.pad(x, ((0, M_pad - M), (0, 0)))
    if N_pad != N:
        w = jnp.pad(w, ((0, 0), (0, N_pad - N)))
        b = jnp.pad(b, (0, N_pad - N))
    b2 = b.reshape(1, N_pad).astype(jnp.float32)

    dt = jnp.dtype(x.dtype).itemsize
    vmem_need = 2 * (tm * K * dt + K * tn * dt + tn * 4 + tm * tn * 4)

    out = pl.pallas_call(
        _matmul_bias_kernel,
        out_shape=jax.ShapeDtypeStruct((M_pad, N_pad), jnp.float32),
        grid_spec=pltpu.PrefetchScalarGridSpec(
            num_scalar_prefetch=0,
            # N (weight columns) on the slow axis, M on the fast axis:
            # each W column tile is DMA'd from HBM exactly once.
            grid=(N_pad // tn, M_pad // tm),
            in_specs=[
                pl.BlockSpec((tm, K), lambda j, i: (i, 0)),
                pl.BlockSpec((K, tn), lambda j, i: (0, j)),
                pl.BlockSpec((1, tn), lambda j, i: (0, j)),
            ],
            out_specs=pl.BlockSpec((tm, tn), lambda j, i: (i, j)),
        ),
        compiler_params=_compiler_params(("parallel", "parallel"), vmem_need),
    )(x, w, b2)
    if M_pad != M or N_pad != N:
        out = out[:M, :N]
    return out


# --------------- fused input-projection + LSTM recurrence kernel -------------

def _lstm_recurrence_kernel(x_ref, wih_ref, b_ref, whh_ref, h_out_ref,
                            xp_scr, h_scr, c_scr, *, tc):
    """One grid step == tc LSTM timesteps.

    x_ref     : (tc*B_pad, E)        embedded inputs for this chunk (time-major)
    wih_ref   : (E, 4*H_pad)         input->gates weights   [i|f|o|g] lane blocks
    b_ref     : (1, 4*H_pad)         b_ih + b_hh (f32)
    whh_ref   : (H_pad, 4*H_pad)     hidden->gates weights  (resident)
    h_out_ref : (tc*B_pad, H_pad)    hidden states for this chunk
    xp_scr    : (tc*B_pad, 4*H_pad)  fused x-projection (never hits HBM)
    h_scr/c_scr: (B_pad, H_pad)      recurrent state across chunks
    """
    B, H = h_scr.shape
    ci = pl.program_id(0)

    @pl.when(ci == 0)
    def _():
        h_scr[...] = jnp.zeros_like(h_scr)
        c_scr[...] = jnp.zeros_like(c_scr)

    # Chunk-level input projection on the MXU (big M = tc*B_pad), bias added
    # here in f32; result stays in VMEM scratch.
    xp_scr[...] = (
        jnp.dot(x_ref[...], wih_ref[...], preferred_element_type=jnp.float32)
        + b_ref[...]
    )

    def step(t, carry):
        h, c = carry
        off = pl.multiple_of(t * B, B)
        # W_hh is loaded from its resident VMEM ref inside the dot (not hoisted
        # into vregs); the 8-row accumulate is tiny, the weight push dominates.
        gates = xp_scr[pl.ds(off, B), :] + jnp.dot(
            h.astype(whh_ref.dtype), whh_ref[...],
            preferred_element_type=jnp.float32)
        # Gate layout [i, f, o, g]: one fused sigmoid over three gates,
        # one tanh over the last (all elementwise math stays f32).
        sig = jax.nn.sigmoid(gates[:, :3 * H])
        i_g = sig[:, 0 * H:1 * H]
        f_g = sig[:, 1 * H:2 * H]
        o_g = sig[:, 2 * H:3 * H]
        g_g = jnp.tanh(gates[:, 3 * H:])
        c = f_g * c + i_g * g_g
        h = o_g * jnp.tanh(c)
        h_out_ref[pl.ds(off, B), :] = h
        return (h, c)

    h, c = jax.lax.fori_loop(0, tc, step, (h_scr[...], c_scr[...]),
                             unroll=True)
    h_scr[...] = h
    c_scr[...] = c


def lstm_recurrence_pallas(x_flat, w_ih_t, bias_row, w_hh_t, *, tc, b_pad):
    """x_flat: (T_pad*B_pad, E) time-major -> h: (T_pad*B_pad, H_pad) f32."""
    TB, E = x_flat.shape
    H_pad = w_hh_t.shape[0]
    G = 4 * H_pad
    chunk_rows = tc * b_pad
    assert TB % chunk_rows == 0
    n_chunks = TB // chunk_rows

    dt_x = jnp.dtype(x_flat.dtype).itemsize
    dt_w = jnp.dtype(w_hh_t.dtype).itemsize
    vmem_need = (
        2 * chunk_rows * E * dt_x          # x chunk (double-buffered)
        + 2 * E * G * dt_w                 # W_ih (constant index)
        + 2 * G * 4                        # bias
        + 2 * H_pad * G * dt_w             # W_hh (constant index)
        + 2 * chunk_rows * H_pad * 4       # h output chunk
        + chunk_rows * G * 4               # xp scratch
        + 2 * b_pad * H_pad * 4            # h/c state
    )

    kernel = functools.partial(_lstm_recurrence_kernel, tc=tc)
    return pl.pallas_call(
        kernel,
        out_shape=jax.ShapeDtypeStruct((TB, H_pad), jnp.float32),
        grid_spec=pltpu.PrefetchScalarGridSpec(
            num_scalar_prefetch=0,
            grid=(n_chunks,),
            in_specs=[
                pl.BlockSpec((chunk_rows, E), lambda c: (c, 0)),
                pl.BlockSpec((E, G), lambda c: (0, 0)),
                pl.BlockSpec((1, G), lambda c: (0, 0)),
                pl.BlockSpec((H_pad, G), lambda c: (0, 0)),
            ],
            out_specs=pl.BlockSpec((chunk_rows, H_pad), lambda c: (c, 0)),
            scratch_shapes=[
                pltpu.VMEM((chunk_rows, G), jnp.float32),   # fused x-projection
                pltpu.VMEM((b_pad, H_pad), jnp.float32),    # h state
                pltpu.VMEM((b_pad, H_pad), jnp.float32),    # c state
            ],
        ),
        compiler_params=_compiler_params(("arbitrary",), vmem_need),
    )(x_flat, w_ih_t, bias_row, w_hh_t)


# ----------------------------- parameter setup ------------------------------

def xavier_uniform(key, shape):
    fan_out, fan_in = shape
    bound = jnp.sqrt(6.0 / (fan_in + fan_out))
    return jax.random.uniform(key, shape, jnp.float32, -bound, bound)


def init_params(key, embed_size, hidden_size, vocab_size):
    ks = jax.random.split(key, 7)
    stdv = 1.0 / jnp.sqrt(hidden_size)

    embed_w = xavier_uniform(ks[0], (vocab_size, embed_size))          # (V, E)
    w_ih = jax.random.uniform(ks[1], (4 * hidden_size, embed_size),
                              jnp.float32, -stdv, stdv)                # (4H, E)
    w_hh = jax.random.uniform(ks[2], (4 * hidden_size, hidden_size),
                              jnp.float32, -stdv, stdv)                # (4H, H)
    b_ih = jax.random.uniform(ks[3], (4 * hidden_size,),
                              jnp.float32, -stdv, stdv)
    b_hh = jax.random.uniform(ks[4], (4 * hidden_size,),
                              jnp.float32, -stdv, stdv)
    fc_w = xavier_uniform(ks[5], (vocab_size, hidden_size))            # (V, H)
    fc_b = jax.random.uniform(ks[6], (vocab_size,), jnp.float32, -stdv, stdv)

    return {
        "embed_w": embed_w,
        "w_ih": w_ih, "w_hh": w_hh, "b_ih": b_ih, "b_hh": b_hh,
        "fc_w": fc_w, "fc_b": fc_b,
    }


# ------------------------- one-time weight padding / layout ------------------

# PyTorch gate order is [i, f, g, o]; kernel layout is [i, f, o, g] so the
# three sigmoid gates are contiguous lanes.
_GATE_ORDER = (0, 1, 3, 2)


def _pad_gate_mat(w, H, H_pad, in_dim, in_pad):
    """w: (4H, in_dim) torch layout -> (in_pad, 4*H_pad), gate blocks lane-aligned."""
    blocks = []
    for k in _GATE_ORDER:
        blk = w[k * H:(k + 1) * H, :].T                       # (in_dim, H)
        blk = jnp.pad(blk, ((0, in_pad - in_dim), (0, H_pad - H)))
        blocks.append(blk)
    return jnp.concatenate(blocks, axis=1)                    # (in_pad, 4*H_pad)


def _pad_gate_vec(b, H, H_pad):
    return jnp.concatenate(
        [jnp.pad(b[k * H:(k + 1) * H], (0, H_pad - H)) for k in _GATE_ORDER])


def prepare_decoder_params(params, *, compute_dtype=jnp.float32):
    """Hoisted, call-once weight relayout (pad + transpose + gate reorder)."""
    E = params["w_ih"].shape[1]
    H = params["w_hh"].shape[1]
    H_pad = _round_up(H, 128)     # lane tile -> gate slices are lane-aligned
    w_ih_t = _pad_gate_mat(params["w_ih"], H, H_pad, E, E)        # (E, 4H_pad)
    w_hh_t = _pad_gate_mat(params["w_hh"], H, H_pad, H, H_pad)    # (H_pad, 4H_pad)
    bias = _pad_gate_vec(params["b_ih"] + params["b_hh"], H, H_pad)
    w_fc_t = jnp.pad(params["fc_w"].T, ((0, H_pad - H), (0, 0)))  # (H_pad, V)
    return {
        "embed_w": params["embed_w"].astype(jnp.float32),
        "w_ih_t": w_ih_t.astype(compute_dtype),
        "w_hh_t": w_hh_t.astype(compute_dtype),
        "bias_row": bias.reshape(1, 4 * H_pad).astype(jnp.float32),
        "w_fc_t": w_fc_t.astype(compute_dtype),
        "fc_b": params["fc_b"].astype(jnp.float32),
    }


# ------------------------------- forward pass --------------------------------

def decoder_rnn_forward(prepared, features, captions):
    """features: [B, E] f32, captions: [B, L] int32 -> logits [B, L, V] f32."""
    embed_w = prepared["embed_w"]
    w_ih_t = prepared["w_ih_t"]
    w_hh_t = prepared["w_hh_t"]
    bias_row = prepared["bias_row"]
    w_fc_t = prepared["w_fc_t"]
    fc_b = prepared["fc_b"]

    compute_dtype = w_ih_t.dtype
    H_pad = w_hh_t.shape[0]
    V = w_fc_t.shape[1]

    # embedding lookup + prepend image features as timestep 0 (plain JAX)
    cap = captions[:, :-1]                                       # (B, L-1)
    cap_emb = jnp.take(embed_w, cap, axis=0)                     # (B, L-1, E)
    inputs = jnp.concatenate([features[:, None, :], cap_emb], 1)  # (B, T, E)
    B, T, E = inputs.shape

    B_pad = _round_up(B, 8)                    # sublane tile
    tc = _choose_tc(T, B_pad, 4 * H_pad)       # no dead timesteps for short T
    T_pad = _round_up(T, tc)

    x = jnp.transpose(inputs, (1, 0, 2))                         # (T, B, E)
    x = jnp.pad(x, ((0, T_pad - T), (0, B_pad - B), (0, 0)))
    x_flat = x.reshape(T_pad * B_pad, E).astype(compute_dtype)

    # 1) fused input-projection + LSTM recurrence (x_proj stays in VMEM).
    h_flat = lstm_recurrence_pallas(x_flat, w_ih_t, bias_row, w_hh_t,
                                    tc=tc, b_pad=B_pad)          # (T_pad*B_pad, H_pad)

    # 2) vocab projection over ONLY the valid B*T rows, already in (b, t)
    #    order -> no full-logits transpose afterwards.
    h_bt = jnp.transpose(
        h_flat.reshape(T_pad, B_pad, H_pad)[:T, :B, :], (1, 0, 2))
    h_bt = h_bt.reshape(B * T, H_pad).astype(compute_dtype)
    logits = matmul_bias_pallas(h_bt, w_fc_t, fc_b)              # (B*T, V) f32
    return logits.reshape(B, T, V)


# -------------------------- pure-JAX reference check -------------------------

def decoder_rnn_reference(params, features, captions):
    cap = captions[:, :-1]
    cap_emb = jnp.take(params["embed_w"], cap, axis=0)
    inputs = jnp.concatenate([features[:, None, :], cap_emb], axis=1)  # (B,T,E)
    B, T, E = inputs.shape
    H = params["w_hh"].shape[1]

    w_ih_t = params["w_ih"].T
    w_hh_t = params["w_hh"].T
    bias = params["b_ih"] + params["b_hh"]

    def step(carry, x_t):
        h, c = carry
        gates = x_t @ w_ih_t + h @ w_hh_t + bias
        i = jax.nn.sigmoid(gates[:, 0 * H:1 * H])
        f = jax.nn.sigmoid(gates[:, 1 * H:2 * H])
        g = jnp.tanh(gates[:, 2 * H:3 * H])
        o = jax.nn.sigmoid(gates[:, 3 * H:4 * H])
        c = f * c + i * g
        h = o * jnp.tanh(c)
        return (h, c), h

    h0 = jnp.zeros((B, H), jnp.float32)
    c0 = jnp.zeros((B, H), jnp.float32)
    _, hs = jax.lax.scan(step, (h0, c0), jnp.transpose(inputs, (1, 0, 2)))
    hs = jnp.transpose(hs, (1, 0, 2))                            # (B, T, H)
    return hs @ params["fc_w"].T + params["fc_b"]


if __name__ == "__main__":
    embed_size = 32
    hidden_size = 32
    vocab_size = 128
    B = 2
    L = 9  # caption length -> T = L (features + L-1 caption tokens)

    key = jax.random.PRNGKey(0)
    kp, kf, kc = jax.random.split(key, 3)

    params = init_params(kp, embed_size, hidden_size, vocab_size)
    features = jax.random.normal(kf, (B, embed_size), jnp.float32)
    captions = jax.random.randint(kc, (B, L), 0, vocab_size, jnp.int32)

    ref = decoder_rnn_reference(params, features, captions)
    fwd = jax.jit(decoder_rnn_forward)

    # f32 MXU operands: strict check against the f32 reference.
    prep_f32 = prepare_decoder_params(params, compute_dtype=jnp.float32)
    out = jax.block_until_ready(fwd(prep_f32, features, captions))
    assert out.shape == (B, L, vocab_size), out.shape
    assert jnp.allclose(out, ref, atol=1e-4, rtol=1e-4), (
        float(jnp.max(jnp.abs(out - ref))))

    # bf16 MXU operands (production setting per review); elementwise recurrence
    # math stays f32, so only a looser tolerance vs the f32 reference applies.
    prep_bf16 = prepare_decoder_params(params, compute_dtype=jnp.bfloat16)
    out_bf16 = jax.block_until_ready(fwd(prep_bf16, features, captions))
    assert out_bf16.shape == (B, L, vocab_size), out_bf16.shape
    assert jnp.allclose(out_bf16, ref, atol=1e-1, rtol=1e-1), (
        float(jnp.max(jnp.abs(out_bf16 - ref))))

    print("KERNEL_OK")
</pallas_src>

<mosaic_0001>
module attributes {stable_mosaic.version = 11 : i64} {
  func.func @_matmul_bias_kernel(%arg0: i32, %arg1: i32, %arg2: memref<24x128xf32, #tpu.memory_space<vmem>>, %arg3: memref<128x128xf32, #tpu.memory_space<vmem>>, %arg4: memref<1x128xf32, #tpu.memory_space<vmem>>, %arg5: memref<24x128xf32, #tpu.memory_space<vmem>>) attributes {dimension_semantics = [#tpu.dimension_semantics<parallel>, #tpu.dimension_semantics<parallel>], iteration_bounds = array<i64: 1, 1>, scalar_prefetch = 0 : i64, scratch_operands = 0 : i64, tpu.core_type = #tpu.core_type<tc>, window_params = [{transform_indices = @transform_0, window_bounds = array<i64: 24, 128>}, {transform_indices = @transform_1, window_bounds = array<i64: 128, 128>}, {transform_indices = @transform_2, window_bounds = array<i64: 1, 128>}, {transform_indices = @transform_3, window_bounds = array<i64: 24, 128>}]} {
    %c0 = arith.constant 0 : index
    %c0_0 = arith.constant 0 : index
    %0 = vector.load %arg2[%c0, %c0_0] : memref<24x128xf32, #tpu.memory_space<vmem>>, vector<24x128xf32>
    %c0_1 = arith.constant 0 : index
    %c0_2 = arith.constant 0 : index
    %1 = vector.load %arg3[%c0_1, %c0_2] : memref<128x128xf32, #tpu.memory_space<vmem>>, vector<128x128xf32>
    %cst = arith.constant dense<0.000000e+00> : vector<24x128xf32>
    %2 = tpu.matmul %0, %1, %cst {dimension_numbers = #tpu.dot_dimension_numbers<[1], [0], [0], [1], [0, 0, 1, 1], [], []>} : vector<24x128xf32>, vector<128x128xf32>, vector<24x128xf32> -> vector<24x128xf32>
    %c0_3 = arith.constant 0 : index
    %c0_4 = arith.constant 0 : index
    %3 = vector.load %arg4[%c0_3, %c0_4] : memref<1x128xf32, #tpu.memory_space<vmem>>, vector<1x128xf32>
    %4 = vector.broadcast %3 : vector<1x128xf32> to vector<24x128xf32>
    %5 = arith.addf %2, %4 : vector<24x128xf32>
    %c0_5 = arith.constant 0 : index
    %c0_6 = arith.constant 0 : index
    %6 = vector.load %arg5[%c0_5, %c0_6] : memref<24x128xf32, #tpu.memory_space<vmem>>, vector<24x128xf32>
    tpu.vector_store %arg5[%c0_5, %c0_6], %5 {strides = array<i32>} : memref<24x128xf32, #tpu.memory_space<vmem>>, vector<24x128xf32>,
    return
  }
  func.func @transform_0(%arg0: i32, %arg1: i32) -> (i32, i32) {
    %c0_i32 = arith.constant 0 : i32
    %c0_i32_0 = arith.constant 0 : i32
    return %arg1, %c0_i32 : i32, i32
  }
  func.func @transform_1(%arg0: i32, %arg1: i32) -> (i32, i32) {
    %c0_i32 = arith.constant 0 : i32
    %c0_i32_0 = arith.constant 0 : i32
    return %c0_i32, %arg0 : i32, i32
  }
  func.func @transform_2(%arg0: i32, %arg1: i32) -> (i32, i32) {
    %c0_i32 = arith.constant 0 : i32
    %c0_i32_0 = arith.constant 0 : i32
    return %c0_i32, %arg0 : i32, i32
  }
  func.func @transform_3(%arg0: i32, %arg1: i32) -> (i32, i32) {
    %c0_i32 = arith.constant 0 : i32
    return %arg1, %arg0 : i32, i32
  }
}

module attributes {stable_mosaic.version = 11 : i64} {
  func.func @_lstm_recurrence_kernel(%arg0: i32, %arg1: memref<72x32xf32, #tpu.memory_space<vmem>>, %arg2: memref<32x512xf32, #tpu.memory_space<vmem>>, %arg3: memref<1x512xf32, #tpu.memory_space<vmem>>, %arg4: memref<128x512xf32, #tpu.memory_space<vmem>>, %arg5: memref<72x128xf32, #tpu.memory_space<vmem>>, %arg6: memref<72x512xf32, #tpu.memory_space<vmem>>, %arg7: memref<8x128xf32, #tpu.memory_space<vmem>>, %arg8: memref<8x128xf32, #tpu.memory_space<vmem>>) attributes {dimension_semantics = [#tpu.dimension_semantics<arbitrary>], iteration_bounds = array<i64: 1>, scalar_prefetch = 0 : i64, scratch_operands = 3 : i64, tpu.core_type = #tpu.core_type<tc>, window_params = [{transform_indices = @transform_0, window_bounds = array<i64: 72, 32>}, {pipeline_mode = #tpu.pipeline_mode<synchronous>, transform_indices = @transform_1, window_bounds = array<i64: 32, 512>}, {pipeline_mode = #tpu.pipeline_mode<synchronous>, transform_indices = @transform_2, window_bounds = array<i64: 1, 512>}, {pipeline_mode = #tpu.pipeline_mode<synchronous>, transform_indices = @transform_3, window_bounds = array<i64: 128, 512>}, {transform_indices = @transform_4, window_bounds = array<i64: 72, 128>}]} {
    %c0_i32 = arith.constant 0 : i32
    %0 = arith.cmpi eq, %arg0, %c0_i32 : i32
    %1 = arith.extui %0 : i1 to i32
    %c0_i32_0 = arith.constant 0 : i32
    %2 = arith.cmpi ne, %1, %c0_i32_0 : i32
    scf.if %2 {
      %cst_80 = arith.constant 0.000000e+00 : f32
      %239 = vector.broadcast %cst_80 : f32 to vector<8x128xf32>
      %c0_81 = arith.constant 0 : index
      %c0_82 = arith.constant 0 : index
      %240 = vector.load %arg7[%c0_81, %c0_82] : memref<8x128xf32, #tpu.memory_space<vmem>>, vector<8x128xf32>
      tpu.vector_store %arg7[%c0_81, %c0_82], %239 {strides = array<i32>} : memref<8x128xf32, #tpu.memory_space<vmem>>, vector<8x128xf32>,
      %cst_83 = arith.constant 0.000000e+00 : f32
      %241 = vector.broadcast %cst_83 : f32 to vector<8x128xf32>
      %c0_84 = arith.constant 0 : index
      %c0_85 = arith.constant 0 : index
      %242 = vector.load %arg8[%c0_84, %c0_85] : memref<8x128xf32, #tpu.memory_space<vmem>>, vector<8x128xf32>
      tpu.vector_store %arg8[%c0_84, %c0_85], %241 {strides = array<i32>} : memref<8x128xf32, #tpu.memory_space<vmem>>, vector<8x128xf32>,
    } else {
    }
    %c0 = arith.constant 0 : index
    %c0_1 = arith.constant 0 : index
    %3 = vector.load %arg1[%c0, %c0_1] : memref<72x32xf32, #tpu.memory_space<vmem>>, vector<72x32xf32>
    %c0_2 = arith.constant 0 : index
    %c0_3 = arith.constant 0 : index
    %4 = vector.load %arg2[%c0_2, %c0_3] : memref<32x512xf32, #tpu.memory_space<vmem>>, vector<32x512xf32>
    %cst = arith.constant dense<0.000000e+00> : vector<72x512xf32>
    %5 = tpu.matmul %3, %4, %cst {dimension_numbers = #tpu.dot_dimension_numbers<[1], [0], [0], [1], [0, 0, 1, 1], [], []>} : vector<72x32xf32>, vector<32x512xf32>, vector<72x512xf32> -> vector<72x512xf32>
    %c0_4 = arith.constant 0 : index
    %c0_5 = arith.constant 0 : index
    %6 = vector.load %arg3[%c0_4, %c0_5] : memref<1x512xf32, #tpu.memory_space<vmem>>, vector<1x512xf32>
    %7 = vector.broadcast %6 : vector<1x512xf32> to vector<72x512xf32>
    %8 = arith.addf %5, %7 : vector<72x512xf32>
    %c0_6 = arith.constant 0 : index
    %c0_7 = arith.constant 0 : index
    %9 = vector.load %arg6[%c0_6, %c0_7] : memref<72x512xf32, #tpu.memory_space<vmem>>, vector<72x512xf32>
    tpu.vector_store %arg6[%c0_6, %c0_7], %8 {strides = array<i32>} : memref<72x512xf32, #tpu.memory_space<vmem>>, vector<72x512xf32>,
    %c0_8 = arith.constant 0 : index
    %c0_9 = arith.constant 0 : index
    %10 = vector.load %arg7[%c0_8, %c0_9] : memref<8x128xf32, #tpu.memory_space<vmem>>, vector<8x128xf32>
    %c0_10 = arith.constant 0 : index
    %c0_11 = arith.constant 0 : index
    %11 = vector.load %arg8[%c0_10, %c0_11] : memref<8x128xf32, #tpu.memory_space<vmem>>, vector<8x128xf32>
    %c0_i32_12 = arith.constant 0 : i32
    %c8_i32 = arith.constant 8 : i32
    %12 = arith.muli %c0_i32_12, %c8_i32 : i32
    %13 = tpu.assume_multiple %12, 8 : i32
    %14 = arith.index_cast %13 : i32 to index
    %c0_13 = arith.constant 0 : index
    %15 = vector.load %arg6[%14, %c0_13] : memref<72x512xf32, #tpu.memory_space<vmem>>, vector<8x512xf32>
    %c0_14 = arith.constant 0 : index
    %c0_15 = arith.constant 0 : index
    %16 = vector.load %arg4[%c0_14, %c0_15] : memref<128x512xf32, #tpu.memory_space<vmem>>, vector<128x512xf32>
    %cst_16 = arith.constant dense<0.000000e+00> : vector<8x512xf32>
    %17 = tpu.matmul %10, %16, %cst_16 {dimension_numbers = #tpu.dot_dimension_numbers<[1], [0], [0], [1], [0, 0, 1, 1], [], []>} : vector<8x128xf32>, vector<128x512xf32>, vector<8x512xf32> -> vector<8x512xf32>
    %18 = arith.addf %15, %17 : vector<8x512xf32>
    %19 = vector.extract_strided_slice %18 {offsets = [0, 0], sizes = [8, 384], strides = [1, 1]} : vector<8x512xf32> to vector<8x384xf32>
    %20 = arith.negf %19 : vector<8x384xf32>
    %21 = math.exp %20 : vector<8x384xf32>
    %cst_17 = arith.constant 1.000000e+00 : f32
    %22 = vector.broadcast %cst_17 : f32 to vector<8x384xf32>
    %23 = arith.addf %22, %21 : vector<8x384xf32>
    %24 = arith.divf %22, %23 : vector<8x384xf32>
    %25 = vector.extract_strided_slice %24 {offsets = [0, 0], sizes = [8, 128], strides = [1, 1]} : vector<8x384xf32> to vector<8x128xf32>
    %26 = vector.extract_strided_slice %24 {offsets = [0, 128], sizes = [8, 128], strides = [1, 1]} : vector<8x384xf32> to vector<8x128xf32>
    %27 = vector.extract_strided_slice %24 {offsets = [0, 256], sizes = [8, 128], strides = [1, 1]} : vector<8x384xf32> to vector<8x128xf32>
    %28 = vector.extract_strided_slice %18 {offsets = [0, 384], sizes = [8, 128], strides = [1, 1]} : vector<8x512xf32> to vector<8x128xf32>
    %29 = math.tanh %28 : vector<8x128xf32>
    %30 = arith.mulf %26, %11 : vector<8x128xf32>
    %31 = arith.mulf %25, %29 : vector<8x128xf32>
    %32 = arith.addf %30, %31 : vector<8x128xf32>
    %33 = math.tanh %32 : vector<8x128xf32>
    %34 = arith.mulf %27, %33 : vector<8x128xf32>
    %35 = arith.index_cast %13 : i32 to index
    %c0_18 = arith.constant 0 : index
    %36 = vector.load %arg5[%35, %c0_18] : memref<72x128xf32, #tpu.memory_space<vmem>>, vector<8x128xf32>
    tpu.vector_store %arg5[%35, %c0_18], %34 {strides = array<i32>} : memref<72x128xf32, #tpu.memory_space<vmem>>, vector<8x128xf32>,
    %c1_i32 = arith.constant 1 : i32
    %c8_i32_19 = arith.constant 8 : i32
    %37 = arith.muli %c1_i32, %c8_i32_19 : i32
    %38 = tpu.assume_multiple %37, 8 : i32
    %39 = arith.index_cast %38 : i32 to index
    %c0_20 = arith.constant 0 : index
    %40 = vector.load %arg6[%39, %c0_20] : memref<72x512xf32, #tpu.memory_space<vmem>>, vector<8x512xf32>
    %c0_21 = arith.constant 0 : index
    %c0_22 = arith.constant 0 : index
    %41 = vector.load %arg4[%c0_21, %c0_22] : memref<128x512xf32, #tpu.memory_space<vmem>>, vector<128x512xf32>
    %cst_23 = arith.constant dense<0.000000e+00> : vector<8x512xf32>
    %42 = tpu.matmul %34, %41, %cst_23 {dimension_numbers = #tpu.dot_dimension_numbers<[1], [0], [0], [1], [0, 0, 1, 1], [], []>} : vector<8x128xf32>, vector<128x512xf32>, vector<8x512xf32> -> vector<8x512xf32>
    %43 = arith.addf %40, %42 : vector<8x512xf32>
    %44 = vector.extract_strided_slice %43 {offsets = [0, 0], sizes = [8, 384], strides = [1, 1]} : vector<8x512xf32> to vector<8x384xf32>
    %45 = arith.negf %44 : vector<8x384xf32>
    %46 = math.exp %45 : vector<8x384xf32>
    %cst_24 = arith.constant 1.000000e+00 : f32
    %47 = vector.broadcast %cst_24 : f32 to vector<8x384xf32>
    %48 = arith.addf %47, %46 : vector<8x384xf32>
    %49 = arith.divf %47, %48 : vector<8x384xf32>
    %50 = vector.extract_strided_slice %49 {offsets = [0, 0], sizes = [8, 128], strides = [1, 1]} : vector<8x384xf32> to vector<8x128xf32>
    %51 = vector.extract_strided_slice %49 {offsets = [0, 128], sizes = [8, 128], strides = [1, 1]} : vector<8x384xf32> to vector<8x128xf32>
    %52 = vector.extract_strided_slice %49 {offsets = [0, 256], sizes = [8, 128], strides = [1, 1]} : vector<8x384xf32> to vector<8x128xf32>
    %53 = vector.extract_strided_slice %43 {offsets = [0, 384], sizes = [8, 128], strides = [1, 1]} : vector<8x512xf32> to vector<8x128xf32>
    %54 = math.tanh %53 : vector<8x128xf32>
    %55 = arith.mulf %51, %32 : vector<8x128xf32>
    %56 = arith.mulf %50, %54 : vector<8x128xf32>
    %57 = arith.addf %55, %56 : vector<8x128xf32>
    %58 = math.tanh %57 : vector<8x128xf32>
    %59 = arith.mulf %52, %58 : vector<8x128xf32>
    %60 = arith.index_cast %38 : i32 to index
    %c0_25 = arith.constant 0 : index
    %61 = vector.load %arg5[%60, %c0_25] : memref<72x128xf32, #tpu.memory_space<vmem>>, vector<8x128xf32>
    tpu.vector_store %arg5[%60, %c0_25], %59 {strides = array<i32>} : memref<72x128xf32, #tpu.memory_space<vmem>>, vector<8x128xf32>,
    %c2_i32 = arith.constant 2 : i32
    %c8_i32_26 = arith.constant 8 : i32
    %62 = arith.muli %c2_i32, %c8_i32_26 : i32
    %63 = tpu.assume_multiple %62, 8 : i32
    %64 = arith.index_cast %63 : i32 to index
    %c0_27 = arith.constant 0 : index
    %65 = vector.load %arg6[%64, %c0_27] : memref<72x512xf32, #tpu.memory_space<vmem>>, vector<8x512xf32>
    %c0_28 = arith.constant 0 : index
    %c0_29 = arith.constant 0 : index
    %66 = vector.load %arg4[%c0_28, %c0_29] : memref<128x512xf32, #tpu.memory_space<vmem>>, vector<128x512xf32>
    %cst_30 = arith.constant dense<0.000000e+00> : vector<8x512xf32>
    %67 = tpu.matmul %59, %66, %cst_30 {dimension_numbers = #tpu.dot_dimension_numbers<[1], [0], [0], [1], [0, 0, 1, 1], [], []>} : vector<8x128xf32>, vector<128x512xf32>, vector<8x512xf32> -> vector<8x512xf32>
    %68 = arith.addf %65, %67 : vector<8x512xf32>
    %69 = vector.extract_strided_slice %68 {offsets = [0, 0], sizes = [8, 384], strides = [1, 1]} : vector<8x512xf32> to vector<8x384xf32>
    %70 = arith.negf %69 : vector<8x384xf32>
    %71 = math.exp %70 : vector<8x384xf32>
    %cst_31 = arith.constant 1.000000e+00 : f32
    %72 = vector.broadcast %cst_31 : f32 to vector<8x384xf32>
    %73 = arith.addf %72, %71 : vector<8x384xf32>
    %74 = arith.divf %72, %73 : vector<8x384xf32>
    %75 = vector.extract_strided_slice %74 {offsets = [0, 0], sizes = [8, 128], strides = [1, 1]} : vector<8x384xf32> to vector<8x128xf32>
    %76 = vector.extract_strided_slice %74 {offsets = [0, 128], sizes = [8, 128], strides = [1, 1]} : vector<8x384xf32> to vector<8x128xf32>
    %77 = vector.extract_strided_slice %74 {offsets = [0, 256], sizes = [8, 128], strides = [1, 1]} : vector<8x384xf32> to vector<8x128xf32>
    %78 = vector.extract_strided_slice %68 {offsets = [0, 384], sizes = [8, 128], strides = [1, 1]} : vector<8x512xf32> to vector<8x128xf32>
    %79 = math.tanh %78 : vector<8x128xf32>
    %80 = arith.mulf %76, %57 : vector<8x128xf32>
    %81 = arith.mulf %75, %79 : vector<8x128xf32>
    %82 = arith.addf %80, %81 : vector<8x128xf32>
    %83 = math.tanh %82 : vector<8x128xf32>
    %84 = arith.mulf %77, %83 : vector<8x128xf32>
    %85 = arith.index_cast %63 : i32 to index
    %c0_32 = arith.constant 0 : index
    %86 = vector.load %arg5[%85, %c0_32] : memref<72x128xf32, #tpu.memory_space<vmem>>, vector<8x128xf32>
    tpu.vector_store %arg5[%85, %c0_32], %84 {strides = array<i32>} : memref<72x128xf32, #tpu.memory_space<vmem>>, vector<8x128xf32>,
    %c3_i32 = arith.constant 3 : i32
    %c8_i32_33 = arith.constant 8 : i32
    %87 = arith.muli %c3_i32, %c8_i32_33 : i32
    %88 = tpu.assume_multiple %87, 8 : i32
    %89 = arith.index_cast %88 : i32 to index
    %c0_34 = arith.constant 0 : index
    %90 = vector.load %arg6[%89, %c0_34] : memref<72x512xf32, #tpu.memory_space<vmem>>, vector<8x512xf32>
    %c0_35 = arith.constant 0 : index
    %c0_36 = arith.constant 0 : index
    %91 = vector.load %arg4[%c0_35, %c0_36] : memref<128x512xf32, #tpu.memory_space<vmem>>, vector<128x512xf32>
    %cst_37 = arith.constant dense<0.000000e+00> : vector<8x512xf32>
    %92 = tpu.matmul %84, %91, %cst_37 {dimension_numbers = #tpu.dot_dimension_numbers<[1], [0], [0], [1], [0, 0, 1, 1], [], []>} : vector<8x128xf32>, vector<128x512xf32>, vector<8x512xf32> -> vector<8x512xf32>
    %93 = arith.addf %90, %92 : vector<8x512xf32>
    %94 = vector.extract_strided_slice %93 {offsets = [0, 0], sizes = [8, 384], strides = [1, 1]} : vector<8x512xf32> to vector<8x384xf32>
    %95 = arith.negf %94 : vector<8x384xf32>
    %96 = math.exp %95 : vector<8x384xf32>
    %cst_38 = arith.constant 1.000000e+00 : f32
    %97 = vector.broadcast %cst_38 : f32 to vector<8x384xf32>
    %98 = arith.addf %97, %96 : vector<8x384xf32>
    %99 = arith.divf %97, %98 : vector<8x384xf32>
    %100 = vector.extract_strided_slice %99 {offsets = [0, 0], sizes = [8, 128], strides = [1, 1]} : vector<8x384xf32> to vector<8x128xf32>
    %101 = vector.extract_strided_slice %99 {offsets = [0, 128], sizes = [8, 128], strides = [1, 1]} : vector<8x384xf32> to vector<8x128xf32>
    %102 = vector.extract_strided_slice %99 {offsets = [0, 256], sizes = [8, 128], strides = [1, 1]} : vector<8x384xf32> to vector<8x128xf32>
    %103 = vector.extract_strided_slice %93 {offsets = [0, 384], sizes = [8, 128], strides = [1, 1]} : vector<8x512xf32> to vector<8x128xf32>
    %104 = math.tanh %103 : vector<8x128xf32>
    %105 = arith.mulf %101, %82 : vector<8x128xf32>
    %106 = arith.mulf %100, %104 : vector<8x128xf32>
    %107 = arith.addf %105, %106 : vector<8x128xf32>
    %108 = math.tanh %107 : vector<8x128xf32>
    %109 = arith.mulf %102, %108 : vector<8x128xf32>
    %110 = arith.index_cast %88 : i32 to index
    %c0_39 = arith.constant 0 : index
    %111 = vector.load %arg5[%110, %c0_39] : memref<72x128xf32, #tpu.memory_space<vmem>>, vector<8x128xf32>
    tpu.vector_store %arg5[%110, %c0_39], %109 {strides = array<i32>} : memref<72x128xf32, #tpu.memory_space<vmem>>, vector<8x128xf32>,
    %c4_i32 = arith.constant 4 : i32
    %c8_i32_40 = arith.constant 8 : i32
    %112 = arith.muli %c4_i32, %c8_i32_40 : i32
    %113 = tpu.assume_multiple %112, 8 : i32
    %114 = arith.index_cast %113 : i32 to index
    %c0_41 = arith.constant 0 : index
    %115 = vector.load %arg6[%114, %c0_41] : memref<72x512xf32, #tpu.memory_space<vmem>>, vector<8x512xf32>
    %c0_42 = arith.constant 0 : index
    %c0_43 = arith.constant 0 : index
    %116 = vector.load %arg4[%c0_42, %c0_43] : memref<128x512xf32, #tpu.memory_space<vmem>>, vector<128x512xf32>
    %cst_44 = arith.constant dense<0.000000e+00> : vector<8x512xf32>
    %117 = tpu.matmul %109, %116, %cst_44 {dimension_numbers = #tpu.dot_dimension_numbers<[1], [0], [0], [1], [0, 0, 1, 1], [], []>} : vector<8x128xf32>, vector<128x512xf32>, vector<8x512xf32> -> vector<8x512xf32>
    %118 = arith.addf %115, %117 : vector<8x512xf32>
    %119 = vector.extract_strided_slice %118 {offsets = [0, 0], sizes = [8, 384], strides = [1, 1]} : vector<8x512xf32> to vector<8x384xf32>
    %120 = arith.negf %119 : vector<8x384xf32>
    %121 = math.exp %120 : vector<8x384xf32>
    %cst_45 = arith.constant 1.000000e+00 : f32
    %122 = vector.broadcast %cst_45 : f32 to vector<8x384xf32>
    %123 = arith.addf %122, %121 : vector<8x384xf32>
    %124 = arith.divf %122, %123 : vector<8x384xf32>
    %125 = vector.extract_strided_slice %124 {offsets = [0, 0], sizes = [8, 128], strides = [1, 1]} : vector<8x384xf32> to vector<8x128xf32>
    %126 = vector.extract_strided_slice %124 {offsets = [0, 128], sizes = [8, 128], strides = [1, 1]} : vector<8x384xf32> to vector<8x128xf32>
    %127 = vector.extract_strided_slice %124 {offsets = [0, 256], sizes = [8, 128], strides = [1, 1]} : vector<8x384xf32> to vector<8x128xf32>
    %128 = vector.extract_strided_slice %118 {offsets = [0, 384], sizes = [8, 128], strides = [1, 1]} : vector<8x512xf32> to vector<8x128xf32>
    %129 = math.tanh %128 : vector<8x128xf32>
    %130 = arith.mulf %126, %107 : vector<8x128xf32>
    %131 = arith.mulf %125, %129 : vector<8x128xf32>
    %132 = arith.addf %130, %131 : vector<8x128xf32>
    %133 = math.tanh %132 : vector<8x128xf32>
    %134 = arith.mulf %127, %133 : vector<8x128xf32>
    %135 = arith.index_cast %113 : i32 to index
    %c0_46 = arith.constant 0 : index
    %136 = vector.load %arg5[%135, %c0_46] : memref<72x128xf32, #tpu.memory_space<vmem>>, vector<8x128xf32>
    tpu.vector_store %arg5[%135, %c0_46], %134 {strides = array<i32>} : memref<72x128xf32, #tpu.memory_space<vmem>>, vector<8x128xf32>,
    %c5_i32 = arith.constant 5 : i32
    %c8_i32_47 = arith.constant 8 : i32
    %137 = arith.muli %c5_i32, %c8_i32_47 : i32
    %138 = tpu.assume_multiple %137, 8 : i32
    %139 = arith.index_cast %138 : i32 to index
    %c0_48 = arith.constant 0 : index
    %140 = vector.load %arg6[%139, %c0_48] : memref<72x512xf32, #tpu.memory_space<vmem>>, vector<8x512xf32>
    %c0_49 = arith.constant 0 : index
    %c0_50 = arith.constant 0 : index
    %141 = vector.load %arg4[%c0_49, %c0_50] : memref<128x512xf32, #tpu.memory_space<vmem>>, vector<128x512xf32>
    %cst_51 = arith.constant dense<0.000000e+00> : vector<8x512xf32>
    %142 = tpu.matmul %134, %141, %cst_51 {dimension_numbers = #tpu.dot_dimension_numbers<[1], [0], [0], [1], [0, 0, 1, 1], [], []>} : vector<8x128xf32>, vector<128x512xf32>, vector<8x512xf32> -> vector<8x512xf32>
    %143 = arith.addf %140, %142 : vector<8x512xf32>
    %144 = vector.extract_strided_slice %143 {offsets = [0, 0], sizes = [8, 384], strides = [1, 1]} : vector<8x512xf32> to vector<8x384xf32>
    %145 = arith.negf %144 : vector<8x384xf32>
    %146 = math.exp %145 : vector<8x384xf32>
    %cst_52 = arith.constant 1.000000e+00 : f32
    %147 = vector.broadcast %cst_52 : f32 to vector<8x384xf32>
    %148 = arith.addf %147, %146 : vector<8x384xf32>
    %149 = arith.divf %147, %148 : vector<8x384xf32>
    %150 = vector.extract_strided_slice %149 {offsets = [0, 0], sizes = [8, 128], strides = [1, 1]} : vector<8x384xf32> to vector<8x128xf32>
    %151 = vector.extract_strided_slice %149 {offsets = [0, 128], sizes = [8, 128], strides = [1, 1]} : vector<8x384xf32> to vector<8x128xf32>
    %152 = vector.extract_strided_slice %149 {offsets = [0, 256], sizes = [8, 128], strides = [1, 1]} : vector<8x384xf32> to vector<8x128xf32>
    %153 = vector.extract_strided_slice %143 {offsets = [0, 384], sizes = [8, 128], strides = [1, 1]} : vector<8x512xf32> to vector<8x128xf32>
    %154 = math.tanh %153 : vector<8x128xf32>
    %155 = arith.mulf %151, %132 : vector<8x128xf32>
    %156 = arith.mulf %150, %154 : vector<8x128xf32>
    %157 = arith.addf %155, %156 : vector<8x128xf32>
    %158 = math.tanh %157 : vector<8x128xf32>
    %159 = arith.mulf %152, %158 : vector<8x128xf32>
    %160 = arith.index_cast %138 : i32 to index
    %c0_53 = arith.constant 0 : index
    %161 = vector.load %arg5[%160, %c0_53] : memref<72x128xf32, #tpu.memory_space<vmem>>, vector<8x128xf32>
    tpu.vector_store %arg5[%160, %c0_53], %159 {strides = array<i32>} : memref<72x128xf32, #tpu.memory_space<vmem>>, vector<8x128xf32>,
    %c6_i32 = arith.constant 6 : i32
    %c8_i32_54 = arith.constant 8 : i32
    %162 = arith.muli %c6_i32, %c8_i32_54 : i32
    %163 = tpu.assume_multiple %162, 8 : i32
    %164 = arith.index_cast %163 : i32 to index
    %c0_55 = arith.constant 0 : index
    %165 = vector.load %arg6[%164, %c0_55] : memref<72x512xf32, #tpu.memory_space<vmem>>, vector<8x512xf32>
    %c0_56 = arith.constant 0 : index
    %c0_57 = arith.constant 0 : index
    %166 = vector.load %arg4[%c0_56, %c0_57] : memref<128x512xf32, #tpu.memory_space<vmem>>, vector<128x512xf32>
    %cst_58 = arith.constant dense<0.000000e+00> : vector<8x512xf32>
    %167 = tpu.matmul %159, %166, %cst_58 {dimension_numbers = #tpu.dot_dimension_numbers<[1], [0], [0], [1], [0, 0, 1, 1], [], []>} : vector<8x128xf32>, vector<128x512xf32>, vector<8x512xf32> -> vector<8x512xf32>
    %168 = arith.addf %165, %167 : vector<8x512xf32>
    %169 = vector.extract_strided_slice %168 {offsets = [0, 0], sizes = [8, 384], strides = [1, 1]} : vector<8x512xf32> to vector<8x384xf32>
    %170 = arith.negf %169 : vector<8x384xf32>
    %171 = math.exp %170 : vector<8x384xf32>
    %cst_59 = arith.constant 1.000000e+00 : f32
    %172 = vector.broadcast %cst_59 : f32 to vector<8x384xf32>
    %173 = arith.addf %172, %171 : vector<8x384xf32>
    %174 = arith.divf %172, %173 : vector<8x384xf32>
    %175 = vector.extract_strided_slice %174 {offsets = [0, 0], sizes = [8, 128], strides = [1, 1]} : vector<8x384xf32> to vector<8x128xf32>
    %176 = vector.extract_strided_slice %174 {offsets = [0, 128], sizes = [8, 128], strides = [1, 1]} : vector<8x384xf32> to vector<8x128xf32>
    %177 = vector.extract_strided_slice %174 {offsets = [0, 256], sizes = [8, 128], strides = [1, 1]} : vector<8x384xf32> to vector<8x128xf32>
    %178 = vector.extract_strided_slice %168 {offsets = [0, 384], sizes = [8, 128], strides = [1, 1]} : vector<8x512xf32> to vector<8x128xf32>
    %179 = math.tanh %178 : vector<8x128xf32>
    %180 = arith.mulf %176, %157 : vector<8x128xf32>
    %181 = arith.mulf %175, %179 : vector<8x128xf32>
    %182 = arith.addf %180, %181 : vector<8x128xf32>
    %183 = math.tanh %182 : vector<8x128xf32>
    %184 = arith.mulf %177, %183 : vector<8x128xf32>
    %185 = arith.index_cast %163 : i32 to index
    %c0_60 = arith.constant 0 : index
    %186 = vector.load %arg5[%185, %c0_60] : memref<72x128xf32, #tpu.memory_space<vmem>>, vector<8x128xf32>
    tpu.vector_store %arg5[%185, %c0_60], %184 {strides = array<i32>} : memref<72x128xf32, #tpu.memory_space<vmem>>, vector<8x128xf32>,
    %c7_i32 = arith.constant 7 : i32
    %c8_i32_61 = arith.constant 8 : i32
    %187 = arith.muli %c7_i32, %c8_i32_61 : i32
    %188 = tpu.assume_multiple %187, 8 : i32
    %189 = arith.index_cast %188 : i32 to index
    %c0_62 = arith.constant 0 : index
    %190 = vector.load %arg6[%189, %c0_62] : memref<72x512xf32, #tpu.memory_space<vmem>>, vector<8x512xf32>
    %c0_63 = arith.constant 0 : index
    %c0_64 = arith.constant 0 : index
    %191 = vector.load %arg4[%c0_63, %c0_64] : memref<128x512xf32, #tpu.memory_space<vmem>>, vector<128x512xf32>
    %cst_65 = arith.constant dense<0.000000e+00> : vector<8x512xf32>
    %192 = tpu.matmul %184, %191, %cst_65 {dimension_numbers = #tpu.dot_dimension_numbers<[1], [0], [0], [1], [0, 0, 1, 1], [], []>} : vector<8x128xf32>, vector<128x512xf32>, vector<8x512xf32> -> vector<8x512xf32>
    %193 = arith.addf %190, %192 : vector<8x512xf32>
    %194 = vector.extract_strided_slice %193 {offsets = [0, 0], sizes = [8, 384], strides = [1, 1]} : vector<8x512xf32> to vector<8x384xf32>
    %195 = arith.negf %194 : vector<8x384xf32>
    %196 = math.exp %195 : vector<8x384xf32>
    %cst_66 = arith.constant 1.000000e+00 : f32
    %197 = vector.broadcast %cst_66 : f32 to vector<8x384xf32>
    %198 = arith.addf %197, %196 : vector<8x384xf32>
    %199 = arith.divf %197, %198 : vector<8x384xf32>
    %200 = vector.extract_strided_slice %199 {offsets = [0, 0], sizes = [8, 128], strides = [1, 1]} : vector<8x384xf32> to vector<8x128xf32>
    %201 = vector.extract_strided_slice %199 {offsets = [0, 128], sizes = [8, 128], strides = [1, 1]} : vector<8x384xf32> to vector<8x128xf32>
    %202 = vector.extract_strided_slice %199 {offsets = [0, 256], sizes = [8, 128], strides = [1, 1]} : vector<8x384xf32> to vector<8x128xf32>
    %203 = vector.extract_strided_slice %193 {offsets = [0, 384], sizes = [8, 128], strides = [1, 1]} : vector<8x512xf32> to vector<8x128xf32>
    %204 = math.tanh %203 : vector<8x128xf32>
    %205 = arith.mulf %201, %182 : vector<8x128xf32>
    %206 = arith.mulf %200, %204 : vector<8x128xf32>
    %207 = arith.addf %205, %206 : vector<8x128xf32>
    %208 = math.tanh %207 : vector<8x128xf32>
    %209 = arith.mulf %202, %208 : vector<8x128xf32>
    %210 = arith.index_cast %188 : i32 to index
    %c0_67 = arith.constant 0 : index
    %211 = vector.load %arg5[%210, %c0_67] : memref<72x128xf32, #tpu.memory_space<vmem>>, vector<8x128xf32>
    tpu.vector_store %arg5[%210, %c0_67], %209 {strides = array<i32>} : memref<72x128xf32, #tpu.memory_space<vmem>>, vector<8x128xf32>,
    %c8_i32_68 = arith.constant 8 : i32
    %c8_i32_69 = arith.constant 8 : i32
    %212 = arith.muli %c8_i32_68, %c8_i32_69 : i32
    %213 = tpu.assume_multiple %212, 8 : i32
    %214 = arith.index_cast %213 : i32 to index
    %c0_70 = arith.constant 0 : index
    %215 = vector.load %arg6[%214, %c0_70] : memref<72x512xf32, #tpu.memory_space<vmem>>, vector<8x512xf32>
    %c0_71 = arith.constant 0 : index
    %c0_72 = arith.constant 0 : index
    %216 = vector.load %arg4[%c0_71, %c0_72] : memref<128x512xf32, #tpu.memory_space<vmem>>, vector<128x512xf32>
    %cst_73 = arith.constant dense<0.000000e+00> : vector<8x512xf32>
    %217 = tpu.matmul %209, %216, %cst_73 {dimension_numbers = #tpu.dot_dimension_numbers<[1], [0], [0], [1], [0, 0, 1, 1], [], []>} : vector<8x128xf32>, vector<128x512xf32>, vector<8x512xf32> -> vector<8x512xf32>
    %218 = arith.addf %215, %217 : vector<8x512xf32>
    %219 = vector.extract_strided_slice %218 {offsets = [0, 0], sizes = [8, 384], strides = [1, 1]} : vector<8x512xf32> to vector<8x384xf32>
    %220 = arith.negf %219 : vector<8x384xf32>
    %221 = math.exp %220 : vector<8x384xf32>
    %cst_74 = arith.constant 1.000000e+00 : f32
    %222 = vector.broadcast %cst_74 : f32 to vector<8x384xf32>
    %223 = arith.addf %222, %221 : vector<8x384xf32>
    %224 = arith.divf %222, %223 : vector<8x384xf32>
    %225 = vector.extract_strided_slice %224 {offsets = [0, 0], sizes = [8, 128], strides = [1, 1]} : vector<8x384xf32> to vector<8x128xf32>
    %226 = vector.extract_strided_slice %224 {offsets = [0, 128], sizes = [8, 128], strides = [1, 1]} : vector<8x384xf32> to vector<8x128xf32>
    %227 = vector.extract_strided_slice %224 {offsets = [0, 256], sizes = [8, 128], strides = [1, 1]} : vector<8x384xf32> to vector<8x128xf32>
    %228 = vector.extract_strided_slice %218 {offsets = [0, 384], sizes = [8, 128], strides = [1, 1]} : vector<8x512xf32> to vector<8x128xf32>
    %229 = math.tanh %228 : vector<8x128xf32>
    %230 = arith.mulf %226, %207 : vector<8x128xf32>
    %231 = arith.mulf %225, %229 : vector<8x128xf32>
    %232 = arith.addf %230, %231 : vector<8x128xf32>
    %233 = math.tanh %232 : vector<8x128xf32>
    %234 = arith.mulf %227, %233 : vector<8x128xf32>
    %235 = arith.index_cast %213 : i32 to index
    %c0_75 = arith.constant 0 : index
    %236 = vector.load %arg5[%235, %c0_75] : memref<72x128xf32, #tpu.memory_space<vmem>>, vector<8x128xf32>
    tpu.vector_store %arg5[%235, %c0_75], %234 {strides = array<i32>} : memref<72x128xf32, #tpu.memory_space<vmem>>, vector<8x128xf32>,
    %c9_i32 = arith.constant 9 : i32
    %c0_76 = arith.constant 0 : index
    %c0_77 = arith.constant 0 : index
    %237 = vector.load %arg7[%c0_76, %c0_77] : memref<8x128xf32, #tpu.memory_space<vmem>>, vector<8x128xf32>
    tpu.vector_store %arg7[%c0_76, %c0_77], %234 {strides = array<i32>} : memref<8x128xf32, #tpu.memory_space<vmem>>, vector<8x128xf32>,
    %c0_78 = arith.constant 0 : index
    %c0_79 = arith.constant 0 : index
    %238 = vector.load %arg8[%c0_78, %c0_79] : memref<8x128xf32, #tpu.memory_space<vmem>>, vector<8x128xf32>
    tpu.vector_store %arg8[%c0_78, %c0_79], %232 {strides = array<i32>} : memref<8x128xf32, #tpu.memory_space<vmem>>, vector<8x128xf32>,
    return
  }
  func.func @transform_0(%arg0: i32) -> (i32, i32) {
    %c0_i32 = arith.constant 0 : i32
    %c0_i32_0 = arith.constant 0 : i32
    return %arg0, %c0_i32 : i32, i32
  }
  func.func @transform_1(%arg0: i32) -> (i32, i32) {
    %c0_i32 = arith.constant 0 : i32
    %c0_i32_0 = arith.constant 0 : i32
    %c0_i32_1 = arith.constant 0 : i32
    return %c0_i32, %c0_i32_0 : i32, i32
  }
  func.func @transform_2(%arg0: i32) -> (i32, i32) {
    %c0_i32 = arith.constant 0 : i32
    %c0_i32_0 = arith.constant 0 : i32
    %c0_i32_1 = arith.constant 0 : i32
    return %c0_i32, %c0_i32_0 : i32, i32
  }
  func.func @transform_3(%arg0: i32) -> (i32, i32) {
    %c0_i32 = arith.constant 0 : i32
    %c0_i32_0 = arith.constant 0 : i32
    %c0_i32_1 = arith.constant 0 : i32
    return %c0_i32, %c0_i32_0 : i32, i32
  }
  func.func @transform_4(%arg0: i32) -> (i32, i32) {
    %c0_i32 = arith.constant 0 : i32
    %c0_i32_0 = arith.constant 0 : i32
    return %arg0, %c0_i32 : i32, i32
  }
}

</mosaic_0001>

<bundles_post_ra>
// kernel: decoder_rnn_forward.3
= control target key start
LH: loop header
LB: loop body
LE: loop exit
PB: predicated region body
PF: predicated region fallthrough
CT: control target
= control target key end

     0   :  { %v222_v0 = vmov 0.0   ;;  %vm223_vm0 = vmmov 0   ;;  %s348_s1 = inlined_call_operand.vmem [shape: f32[128,128], index: 1, kind: input, shape index: {}]   ;;  %s349_s0 = inlined_call_operand.vmem [shape: f32[24,128], index: 0, kind: input, shape index: {}]   ;;  %s350_s2 = inlined_call_operand.vmem [shape: f32[1,128], index: 2, kind: input, shape index: {}]   ;;  %s351_s3 = inlined_call_operand.vmem [shape: f32[24,128], index: 3, kind: output, shape index: {}]  }
   0x1   :  { %188 = vmatprep.subr.mxu1 %v222_v0  ;;  %v32_v1 = vld [vmem:[%s348_s1 + $0x78] sm:$0xff]  ;;  %147 = vmatprep.subr.mxu0 %v222_v0  ;;  %v31_v2 = vld [vmem:[%s348_s1 + $0x70] sm:$0xff]  ;;  %v30_v3 = vld [vmem:[%s348_s1 + $0x68] sm:$0xff] }
   0x2   :  { %204 = vmatpush3.msra.mxu1 %v32_v1  ;;  %148 = vmatpush3.msra.mxu0 %v32_v1  ;;  %v29_v4 = vld [vmem:[%s348_s1 + $0x60] sm:$0xff]  ;;  %v28_v5 = vld [vmem:[%s348_s1 + $0x58] sm:$0xff]  ;;  %v27_v6 = vld [vmem:[%s348_s1 + $0x50] sm:$0xff] }
   0x3   :  { %189 = vmatprep.subr.mxu1 %v222_v0  ;;  %149 = vmatprep.subr.mxu0 %v222_v0  ;;  %v26_v7 = vld [vmem:[%s348_s1 + $0x48] sm:$0xff]  ;;  %v25_v8 = vld [vmem:[%s348_s1 + $0x40] sm:$0xff]  ;;  %v24_v9 = vld [vmem:[%s348_s1 + $0x38] sm:$0xff] }
   0x4   :  { %205 = vmatpush3.msra.mxu1 %v31_v2  ;;  %150 = vmatpush3.msra.mxu0 %v31_v2  ;;  %v23_v10 = vld [vmem:[%s348_s1 + $0x30] sm:$0xff]  ;;  %v22_v11 = vld [vmem:[%s348_s1 + $0x28] sm:$0xff]  ;;  %v21_v12 = vld [vmem:[%s348_s1 + $0x20] sm:$0xff] }
   0x5   :  { %190 = vmatprep.subr.mxu1 %v222_v0  ;;  %151 = vmatprep.subr.mxu0 %v222_v0  ;;  %v20_v13 = vld [vmem:[%s348_s1 + $0x18] sm:$0xff]  ;;  %v19_v14 = vld [vmem:[%s348_s1 + $0x10] sm:$0xff]  ;;  %v18_v15 = vld [vmem:[%s348_s1 + $0x8] sm:$0xff] }
   0x6   :  { %206 = vmatpush3.msra.mxu1 %v30_v3  ;;  %152 = vmatpush3.msra.mxu0 %v30_v3  ;;  %v17_v16 = vld [vmem:[%s348_s1] sm:$0xff]  ;;  %v15_v17 = vld [vmem:[%s349_s0 + $0x8] sm:$0xff]  ;;  %v16_v19 = vld [vmem:[%s349_s0 + $0x10] sm:$0xff] }
   0x7   :  { %191 = vmatprep.subr.mxu1 %v222_v0  ;;  %153 = vmatprep.subr.mxu0 %v222_v0  ;;  %v14_v18 = vld [vmem:[%s349_s0] sm:$0xff] }
   0x8   :  { %207 = vmatpush3.msra.mxu1 %v29_v4  ;;  %154 = vmatpush3.msra.mxu0 %v29_v4  ;;  %v127_v20 = vld [vmem:[%s350_s2] ss:$0 sm:$0xff] }
   0x9   :  { %192 = vmatprep.subr.mxu1 %v222_v0  ;;  %155 = vmatprep.subr.mxu0 %v222_v0 }
   0xa   :  { %208 = vmatpush3.msra.mxu1 %v28_v5  ;;  %156 = vmatpush3.msra.mxu0 %v28_v5 }
   0xb   :  { %193 = vmatprep.subr.mxu1 %v222_v0  ;;  %157 = vmatprep.subr.mxu0 %v222_v0 }
   0xc   :  { %209 = vmatpush3.msra.mxu1 %v27_v6  ;;  %158 = vmatpush3.msra.mxu0 %v27_v6 }
   0xd   :  { %194 = vmatprep.subr.mxu1 %v222_v0  ;;  %159 = vmatprep.subr.mxu0 %v222_v0 }
   0xe   :  { %210 = vmatpush3.msra.mxu1 %v26_v7  ;;  %160 = vmatpush3.msra.mxu0 %v26_v7 }
   0xf   :  { %195 = vmatprep.subr.mxu1 %v222_v0  ;;  %161 = vmatprep.subr.mxu0 %v222_v0 }
  0x10   :  { %211 = vmatpush3.msra.mxu1 %v25_v8  ;;  %162 = vmatpush3.msra.mxu0 %v25_v8 }
  0x11   :  { %196 = vmatprep.subr.mxu1 %v222_v0  ;;  %163 = vmatprep.subr.mxu0 %v222_v0 }
  0x12   :  { %212 = vmatpush3.msra.mxu1 %v24_v9  ;;  %164 = vmatpush3.msra.mxu0 %v24_v9 }
  0x13   :  { %197 = vmatprep.subr.mxu1 %v222_v0  ;;  %165 = vmatprep.subr.mxu0 %v222_v0 }
  0x14   :  { %213 = vmatpush3.msra.mxu1 %v23_v10  ;;  %166 = vmatpush3.msra.mxu0 %v23_v10 }
  0x15   :  { %198 = vmatprep.subr.mxu1 %v222_v0  ;;  %167 = vmatprep.subr.mxu0 %v222_v0 }
  0x16   :  { %214 = vmatpush3.msra.mxu1 %v22_v11  ;;  %168 = vmatpush3.msra.mxu0 %v22_v11 }
  0x17   :  { %199 = vmatprep.subr.mxu1 %v222_v0  ;;  %169 = vmatprep.subr.mxu0 %v222_v0 }
  0x18   :  { %215 = vmatpush3.msra.mxu1 %v21_v12  ;;  %170 = vmatpush3.msra.mxu0 %v21_v12 }
  0x19   :  { %200 = vmatprep.subr.mxu1 %v222_v0  ;;  %171 = vmatprep.subr.mxu0 %v222_v0 }
  0x1a   :  { %216 = vmatpush3.msra.mxu1 %v20_v13  ;;  %172 = vmatpush3.msra.mxu0 %v20_v13 }
  0x1b   :  { %201 = vmatprep.subr.mxu1 %v222_v0  ;;  %173 = vmatprep.subr.mxu0 %v222_v0 }
  0x1c   :  { %217 = vmatpush3.msra.mxu1 %v19_v14  ;;  %174 = vmatpush3.msra.mxu0 %v19_v14 }
  0x1d   :  { %202 = vmatprep.subr.mxu1 %v222_v0  ;;  %175 = vmatprep.subr.mxu0 %v222_v0 }
  0x1e   :  { %218 = vmatpush3.msra.mxu1 %v18_v15  ;;  %176 = vmatpush3.msra.mxu0 %v18_v15 }
  0x1f   :  { %203 = vmatprep.subr.mxu1 %v222_v0  ;;  %182 = vmatprep.mubr.msk.f32.mxu1 %vm223_vm0, %v222_v0 }
  0x20   :  { %219 = vmatpush3.msra.mxu1 %v17_v16  ;;  %177 = vmatprep.subr.mxu0 %v222_v0 }
  0x21   :  { %183 = vmatmul.mubr.f32.vlgmr.msra.gmra.mxu1 %v15_v17  ;;  %178 = vmatpush3.msra.mxu0 %v17_v16 }
  0x22   :  { %179 = vmatprep.mubr.msk.f32.mxu0 %vm223_vm0, %v222_v0  ;;  %185 = vmatprep.mubr.msk.f32.mxu1 %vm223_vm0, %v222_v0 }
  0x23   :  { %180 = vmatmul.mubr.f32.vlgmr.msra.gmra.mxu0 %v14_v18 }
  0x25   :  { %186 = vmatmul.mubr.f32.gmra.mxu1 %v16_v19 }
  0xe1   :  { %v111_v21 = vpop.f32.mrf.mxu1 }
  0xe2   :  { %v112_v22 = vadd.f32 %v127_v20, %v111_v21 }
  0xe3   :  { %v106_v23 = vpop.f32.mrf.mxu0  ;;  %v184_v24 = vpop.f32.mrf.mxu1 }
  0xe4   :  { %121 = vst [vmem:[%s351_s3 + $0x8] sm:$0xff] %v112_v22  ;;  %v107_v25 = vadd.f32 %v127_v20, %v106_v23 }
  0xe5   :  { %v181_v26 = vpop.f32.mrf.mxu0  ;;  %v116_v27 = vpop.f32.mrf.mxu1 }
  0xe6   :  { %120 = vst [vmem:[%s351_s3] sm:$0xff] %v107_v25  ;;  %v117_v28 = vadd.f32 %v127_v20, %v116_v27 }
  0xe7   :  { %v187_v29 = vpop.f32.mrf.mxu1 }
  0xe8   :  { %122 = vst [vmem:[%s351_s3 + $0x10] sm:$0xff] %v117_v28 }

// kernel: decoder_rnn_forward.2
= control target key start
LH: loop header
LB: loop body
LE: loop exit
PB: predicated region body
PF: predicated region fallthrough
CT: control target
= control target key end

     0   :  { %9 = vsyncpa [#allocation6], 0  ;;  %s2812_s15 = smov [#allocation5]   ;;  %s4145_s0 = inlined_call_operand.vmem [shape: f32[72,32], index: 0, kind: input, shape index: {}]   ;;  %s4146_s1 = inlined_call_operand.vmem [shape: f32[32,512], index: 1, kind: input, shape index: {}]   ;;  %s4147_s2 = inlined_call_operand.vmem [shape: f32[1,512], index: 2, kind: input, shape index: {}]   ;;  %s4148_s3 = inlined_call_operand.hbm [shape: f32[128,512], index: 3, kind: input, shape index: {}]   ;;  %s4149_s4 = inlined_call_operand.vmem [shape: f32[72,128], index: 4, kind: output, shape index: {}]  }
   0x1   :  { %s21_s16 = sshll.u32 %s2812_s15, 4  ;;  %s22_s16 = int_to_ptr.vmem [resolvable:$true] %s21_s16 }
   0x2   :  { %s2798_s17 = scalar_lea.vmem %s22_s16, 8192  ;;  %p2803_p1 = scmp.lt.s32.totalorder %s22_s16, %s22_s16 }
   0x3   :  { %p2799_p0 = scmp.ne.s32.totalorder %s22_s16, %s2798_s17  ;;  %p2804_p2 = scmp.lt.s32.totalorder %s2798_s17, %s2798_s17 }
   0x5   :  { %p2805_p3 = por %p2804_p2, %p2803_p1 }
   0x7   :  { %p2806_p4 = pnand %p2805_p3, %p2799_p0 }
   0x9   :  { %2809 = shalt.err (!%p2806_p4)
}
   0xa   :  { %s2813_s18 = smov 512   ;;  %s2814_s19 = smov 32  }
   0xb   :  { %27 = dma.hbm_to_vmem [thread:$0]  %s4148_s3, 8192, %s22_s16, [#allocation6], %s2813_s18, %s2813_s18, %s2814_s19  }
   0xc   :  { %2810 = dma.done.wait [#allocation6], 8192  }
   0xd   :  { %2811 = vsyncadd [#allocation6], 4294959104  ;;  %v4150_v0 = vmov 0.0   ;;  %v59_v1 = vld [vmem:[%s4146_s1 + $0x68] sm:$0xff]  ;;  %v61_v2 = vld [vmem:[%s4146_s1 + $0x78] sm:$0xff]  ;;  %vm84_vm0 = vcmask 261120  }
   0xe   :  { %176 = vmatprep.mubr.f32.mxu0 %v4150_v0  ;;  %295 = vmatprep.mubr.f32.mxu1 %v4150_v0  ;;  %v58_v3 = vld [vmem:[%s4146_s1 + $0x60] sm:$0xff]  ;;  %v60_v4 = vld [vmem:[%s4146_s1 + $0x70] sm:$0xff]  ;;  %v55_v5 = vld [vmem:[%s4146_s1 + $0x48] sm:$0xff] }
   0xf   :  { %136 = vmatprep.subr.mxu0 %v59_v1  ;;  %255 = vmatprep.subr.mxu1 %v61_v2  ;;  %v57_v6 = vld [vmem:[%s4146_s1 + $0x58] sm:$0xff]  ;;  %v54_v7 = vld [vmem:[%s4146_s1 + $0x40] sm:$0xff]  ;;  %v56_v8 = vld [vmem:[%s4146_s1 + $0x50] sm:$0xff] }
  0x10   :  { %137 = vmatpush1.msra.mxu0 %v58_v3  ;;  %256 = vmatpush1.msra.mxu1 %v60_v4  ;;  %v51_v9 = vld [vmem:[%s4146_s1 + $0x28] sm:$0xff]  ;;  %v53_v10 = vld [vmem:[%s4146_s1 + $0x38] sm:$0xff]  ;;  %v50_v11 = vld [vmem:[%s4146_s1 + $0x20] sm:$0xff] }
  0x11   :  { %138 = vmatprep.subr.mxu0 %v55_v5  ;;  %257 = vmatprep.subr.mxu1 %v57_v6  ;;  %v52_v12 = vld [vmem:[%s4146_s1 + $0x30] sm:$0xff]  ;;  %v47_v13 = vld [vmem:[%s4146_s1 + $0x8] sm:$0xff]  ;;  %v49_v14 = vld [vmem:[%s4146_s1 + $0x18] sm:$0xff] }
  0x12   :  { %139 = vmatpush1.msra.mxu0 %v54_v7  ;;  %258 = vmatpush1.msra.mxu1 %v56_v8  ;;  %v46_v15 = vld [vmem:[%s4146_s1] sm:$0xff]  ;;  %v48_v16 = vld [vmem:[%s4146_s1 + $0x10] sm:$0xff]  ;;  %v2897_v18 = vld [vmem:[#allocation5 + $0x1e8] sm:$0xff] }
  0x13   :  { %140 = vmatprep.subr.mxu0 %v51_v9  ;;  %259 = vmatprep.subr.mxu1 %v53_v10  ;;  %v37_v17 = vld [vmem:[%s4145_s0] sm:$0xff]  ;;  %v2903_v20 = vld [vmem:[#allocation5 + $0x1c8] sm:$0xff]  ;;  %v2905_v21 = vld [vmem:[#allocation5 + $0x1f8] sm:$0xff] }
  0x14   :  { %141 = vmatpush1.msra.mxu0 %v50_v11  ;;  %260 = vmatpush1.msra.mxu1 %v52_v12  ;;  %v2899_v19 = vld [vmem:[#allocation5 + $0x1e0] sm:$0xff]  ;;  %v38_v22 = vld [vmem:[%s4145_s0 + $0x8] sm:$0xff]  ;;  %v2916_v24 = vld [vmem:[#allocation5 + $0x1f0] sm:$0xff] }
  0x15   :  { %142 = vmatprep.subr.mxu0 %v47_v13  ;;  %261 = vmatprep.subr.mxu1 %v49_v14  ;;  %v2914_v23 = vld [vmem:[#allocation5 + $0x1c0] sm:$0xff]  ;;  %v2920_v25 = vld [vmem:[#allocation5 + $0x1a8] sm:$0xff]  ;;  %v2922_v26 = vld [vmem:[#allocation5 + $0x1d8] sm:$0xff] }
  0x16   :  { %143 = vmatpush1.msra.mxu0 %v46_v15  ;;  %262 = vmatpush1.msra.mxu1 %v48_v16  ;;  %v2926_v27 = vld [vmem:[#allocation5 + $0x1a0] sm:$0xff]  ;;  %v2930_v28 = vld [vmem:[#allocation5 + $0x188] sm:$0xff]  ;;  %v2934_v29 = vld [vmem:[#allocation5 + $0x1d0] sm:$0xff] }
  0x17   :  { %2589 = vmatmul.mubr.msk.f32.vlgmr.msra.gmra.mxu0 %vm84_vm0, %v37_v17  ;;  %2598 = vmatmul.mubr.msk.f32.vlgmr.msra.gmra.mxu1 %vm84_vm0, %v37_v17  ;;  %v39_v30 = vld [vmem:[%s4145_s0 + $0x10] sm:$0xff]  ;;  %v2941_v31 = vld [vmem:[#allocation5 + $0x180] sm:$0xff]  ;;  %v2945_v32 = vld [vmem:[#allocation5 + $0x1b8] sm:$0xff] }
  0x18   :  { %459 = vmatprep.subr.mxu0 %v2897_v18  ;;  %182 = vmatprep.mubr.f32.mxu0 %v4150_v0  ;;  %v2947_v33 = vld [vmem:[#allocation5 + $0x168] sm:$0xff]  ;;  %v2951_v34 = vld [vmem:[#allocation5 + $0x1b0] sm:$0xff]  ;;  %v2953_v35 = vld [vmem:[#allocation5 + $0x160] sm:$0xff] }
  0x19   :  { %460 = vmatpush1.msra.mxu0 %v2899_v19  ;;  %301 = vmatprep.mubr.f32.mxu1 %v4150_v0  ;;  %v2957_v36 = vld [vmem:[#allocation5 + $0x198] sm:$0xff]  ;;  %v2961_v37 = vld [vmem:[#allocation5 + $0x190] sm:$0xff]  ;;  %v2970_v39 = vld [vmem:[#allocation5 + $0x148] sm:$0xff] }
  0x1a   :  { %461 = vmatprep.subr.mxu0 %v2903_v20  ;;  %530 = vmatprep.subr.mxu1 %v2905_v21  ;;  %v40_v38 = vld [vmem:[%s4145_s0 + $0x18] sm:$0xff]  ;;  %v2976_v41 = vld [vmem:[#allocation5 + $0x140] sm:$0xff]  ;;  %v2978_v42 = vld [vmem:[#allocation5 + $0x170] sm:$0xff] }
  0x1b   :  { %2590 = vmatmul.mubr.msk.f32.gmra.mxu0 %vm84_vm0, %v38_v22  ;;  %2599 = vmatmul.mubr.msk.f32.gmra.mxu1 %vm84_vm0, %v38_v22  ;;  %v2972_v40 = vld [vmem:[#allocation5 + $0x178] sm:$0xff]  ;;  %v2982_v43 = vld [vmem:[#allocation5 + $0x128] sm:$0xff]  ;;  %v2990_v45 = vld [vmem:[#allocation5 + $0x120] sm:$0xff] }
  0x1c   :  { %462 = vmatpush1.msra.mxu0 %v2914_v23  ;;  %531 = vmatpush1.msra.mxu1 %v2916_v24  ;;  %v2984_v44 = vld [vmem:[#allocation5 + $0x158] sm:$0xff]  ;;  %v2992_v46 = vld [vmem:[#allocation5 + $0x150] sm:$0xff]  ;;  %v41_v47 = vld [vmem:[%s4145_s0 + $0x20] sm:$0xff] }
  0x1d   :  { %463 = vmatprep.subr.mxu0 %v2920_v25  ;;  %532 = vmatprep.subr.mxu1 %v2922_v26  ;;  %v3001_v48 = vld [vmem:[#allocation5 + $0x108] sm:$0xff]  ;;  %v3003_v49 = vld [vmem:[#allocation5 + $0x138] sm:$0xff]  ;;  %v3007_v50 = vld [vmem:[#allocation5 + $0x100] sm:$0xff] }
  0x1e   :  { %464 = vmatpush1.msra.mxu0 %v2926_v27  ;;  %188 = vmatprep.mubr.f32.mxu0 %v4150_v0  ;;  %v3009_v51 = vld [vmem:[#allocation5 + $0x130] sm:$0xff]  ;;  %v3013_v52 = vld [vmem:[#allocation5 + $0xe8] sm:$0xff]  ;;  %v3015_v53 = vld [vmem:[#allocation5 + $0x118] sm:$0xff] }
  0x1f   :  { %307 = vmatprep.mubr.f32.mxu1 %v4150_v0  ;;  %465 = vmatprep.subr.mxu0 %v2930_v28  ;;  %v3021_v54 = vld [vmem:[#allocation5 + $0xe0] sm:$0xff]  ;;  %v3023_v55 = vld [vmem:[#allocation5 + $0x110] sm:$0xff]  ;;  %v42_v56 = vld [vmem:[%s4145_s0 + $0x28] sm:$0xff] }
  0x20   :  { %533 = vmatpush1.msra.mxu1 %v2934_v29  ;;  %2591 = vmatmul.mubr.msk.f32.gmra.mxu0 %vm84_vm0, %v39_v30  ;;  %v3032_v57 = vld [vmem:[#allocation5 + $0xf8] sm:$0xff]  ;;  %v3034_v58 = vld [vmem:[#allocation5 + $0xc8] sm:$0xff]  ;;  %v3038_v59 = vld [vmem:[#allocation5 + $0xf0] sm:$0xff] }
  0x21   :  { %2600 = vmatmul.mubr.msk.f32.gmra.mxu1 %vm84_vm0, %v39_v30  ;;  %466 = vmatpush1.msra.mxu0 %v2941_v31  ;;  %v3040_v60 = vld [vmem:[#allocation5 + $0xc0] sm:$0xff]  ;;  %v3044_v61 = vld [vmem:[#allocation5 + $0xd8] sm:$0xff]  ;;  %v3048_v62 = vld [vmem:[#allocation5 + $0xa8] sm:$0xff] }
  0x22   :  { %534 = vmatprep.subr.mxu1 %v2945_v32  ;;  %467 = vmatprep.subr.mxu0 %v2947_v33  ;;  %v3052_v63 = vld [vmem:[#allocation5 + $0xd0] sm:$0xff]  ;;  %v3059_v2 = vld [vmem:[#allocation5 + $0xa0] sm:$0xff]  ;;  %v3063_v3 = vld [vmem:[#allocation5 + $0xb8] sm:$0xff] }
  0x23   :  { %535 = vmatpush1.msra.mxu1 %v2951_v34  ;;  %468 = vmatpush1.msra.mxu0 %v2953_v35  ;;  %v43_v1 = vld [vmem:[%s4145_s0 + $0x30] sm:$0xff]  ;;  %v3065_v4 = vld [vmem:[#allocation5 + $0x88] sm:$0xff]  ;;  %v3071_v6 = vld [vmem:[#allocation5 + $0x80] sm:$0xff] }
  0x24   :  { %536 = vmatprep.subr.mxu1 %v2957_v36  ;;  %194 = vmatprep.mubr.f32.mxu0 %v4150_v0  ;;  %4233 = vst [vmem:[#allocation8_spill] sm:$0xff] %v3065_v4  ;;  %v3069_v5 = vld [vmem:[#allocation5 + $0xb0] sm:$0xff]  ;;  %4234 = vst [vmem:[#allocation9_spill] sm:$0xff] %v3071_v6  ;;  %v3075_v7 = vld [vmem:[#allocation5 + $0x98] sm:$0xff] }
  0x25   :  { %313 = vmatprep.mubr.f32.mxu1 %v4150_v0  ;;  %537 = vmatpush1.msra.mxu1 %v2961_v37  ;;  %4235 = vst [vmem:[#allocation10_spill] sm:$0xff] %v3075_v7  ;;  %v3079_v8 = vld [vmem:[#allocation5 + $0x68] sm:$0xff]  ;;  %v3083_v9 = vld [vmem:[#allocation5 + $0x90] sm:$0xff]  ;;  %v44_v10 = vld [vmem:[%s4145_s0 + $0x38] sm:$0xff] }
  0x26   :  { %2592 = vmatmul.mubr.msk.f32.gmra.mxu0 %vm84_vm0, %v40_v38  ;;  %2601 = vmatmul.mubr.msk.f32.gmra.mxu1 %vm84_vm0, %v40_v38  ;;  %4236 = vst [vmem:[#allocation11_spill] sm:$0xff] %v3079_v8  ;;  %4237 = vst [vmem:[#allocation12_spill] sm:$0xff] %v3083_v9  ;;  %v3090_v11 = vld [vmem:[#allocation5 + $0x60] sm:$0xff]  ;;  %v3094_v12 = vld [vmem:[#allocation5 + $0x78] sm:$0xff] }
  0x27   :  { %469 = vmatprep.subr.mxu0 %v2970_v39  ;;  %538 = vmatprep.subr.mxu1 %v2972_v40  ;;  %4238 = vst [vmem:[#allocation13_spill] sm:$0xff] %v3090_v11  ;;  %4239 = vst [vmem:[#allocation14_spill] sm:$0xff] %v3094_v12  ;;  %v3096_v13 = vld [vmem:[#allocation5 + $0x48] sm:$0xff]  ;;  %v3100_v14 = vld [vmem:[#allocation5 + $0x70] sm:$0xff] }
  0x28   :  { %470 = vmatpush1.msra.mxu0 %v2976_v41  ;;  %539 = vmatpush1.msra.mxu1 %v2978_v42  ;;  %4240 = vst [vmem:[#allocation15_spill] sm:$0xff] %v3096_v13  ;;  %4241 = vst [vmem:[#allocation16_spill] sm:$0xff] %v3100_v14  ;;  %v3104_v15 = vld [vmem:[#allocation5 + $0x58] sm:$0xff]  ;;  %v3108_v16 = vld [vmem:[#allocation5 + $0x40] sm:$0xff] }
  0x29   :  { %471 = vmatprep.subr.mxu0 %v2982_v43  ;;  %540 = vmatprep.subr.mxu1 %v2984_v44  ;;  %4242 = vst [vmem:[#allocation17_spill] sm:$0xff] %v3104_v15  ;;  %4243 = vst [vmem:[#allocation18_spill] sm:$0xff] %v3108_v16  ;;  %v3110_v17 = vld [vmem:[#allocation5 + $0x50] sm:$0xff]  ;;  %v45_v22 = vld [vmem:[%s4145_s0 + $0x40] sm:$0xff] }
  0x2a   :  { %200 = vmatprep.mubr.f32.mxu0 %v4150_v0  ;;  %319 = vmatprep.mubr.f32.mxu1 %v4150_v0  ;;  %4244 = vst [vmem:[#allocation19_spill] sm:$0xff] %v3110_v17  ;;  %v3119_v30 = vld [vmem:[#allocation5 + $0x28] sm:$0xff]  ;;  %v3121_v38 = vld [vmem:[#allocation5 + $0x38] sm:$0xff] }
  0x2b   :  { %472 = vmatpush1.msra.mxu0 %v2990_v45  ;;  %541 = vmatpush1.msra.mxu1 %v2992_v46  ;;  %4245 = vst [vmem:[#allocation20_spill] sm:$0xff] %v3119_v30  ;;  %4246 = vst [vmem:[#allocation21_spill] sm:$0xff] %v3121_v38 }
  0x2c   :  { %2593 = vmatmul.mubr.msk.f32.gmra.mxu0 %vm84_vm0, %v41_v47  ;;  %2602 = vmatmul.mubr.msk.f32.gmra.mxu1 %vm84_vm0, %v41_v47  ;;  %v3125_v47 = vld [vmem:[#allocation5 + $0x20] sm:$0xff] }
  0x2d   :  { %473 = vmatprep.subr.mxu0 %v3001_v48  ;;  %542 = vmatprep.subr.mxu1 %v3003_v49  ;;  %4247 = vst [vmem:[#allocation22_spill] sm:$0xff] %v3125_v47 }
  0x2e   :  { %474 = vmatpush1.msra.mxu0 %v3007_v50  ;;  %543 = vmatpush1.msra.mxu1 %v3009_v51 }
  0x2f   :  { %475 = vmatprep.subr.mxu0 %v3013_v52  ;;  %544 = vmatprep.subr.mxu1 %v3015_v53 }
  0x30   :  { %206 = vmatprep.mubr.f32.mxu0 %v4150_v0  ;;  %325 = vmatprep.mubr.f32.mxu1 %v4150_v0 }
  0x31   :  { %476 = vmatpush1.msra.mxu0 %v3021_v54  ;;  %545 = vmatpush1.msra.mxu1 %v3023_v55 }
  0x32   :  { %2594 = vmatmul.mubr.msk.f32.gmra.mxu0 %vm84_vm0, %v42_v56  ;;  %2603 = vmatmul.mubr.msk.f32.gmra.mxu1 %vm84_vm0, %v42_v56  ;;  %v3127_v56 = vld [vmem:[#allocation5 + $0x30] sm:$0xff] }
  0x33   :  { %546 = vmatprep.subr.mxu1 %v3032_v57  ;;  %477 = vmatprep.subr.mxu0 %v3034_v58  ;;  %4248 = vst [vmem:[#allocation23_spill] sm:$0xff] %v3127_v56 }
  0x34   :  { %547 = vmatpush1.msra.mxu1 %v3038_v59  ;;  %478 = vmatpush1.msra.mxu0 %v3040_v60 }
  0x35   :  { %548 = vmatprep.subr.mxu1 %v3044_v61  ;;  %212 = vmatprep.mubr.f32.mxu0 %v4150_v0 }
  0x36   :  { %331 = vmatprep.mubr.f32.mxu1 %v4150_v0  ;;  %479 = vmatprep.subr.mxu0 %v3048_v62 }
  0x37   :  { %549 = vmatpush1.msra.mxu1 %v3052_v63  ;;  %2595 = vmatmul.mubr.msk.f32.gmra.mxu0 %vm84_vm0, %v43_v1 }
  0x38   :  { %2604 = vmatmul.mubr.msk.f32.gmra.mxu1 %vm84_vm0, %v43_v1  ;;  %480 = vmatpush1.msra.mxu0 %v3059_v2  ;;  %v3131_v1 = vld [vmem:[#allocation5 + $0x8] sm:$0xff] }
  0x39   :  { %550 = vmatprep.subr.mxu1 %v3063_v3  ;;  %481 = vmatprep.subr.mxu0 %v3065_v4  ;;  %4249 = vst [vmem:[#allocation24_spill] sm:$0xff] %v3131_v1 }
  0x3a   :  { %551 = vmatpush1.msra.mxu1 %v3069_v5  ;;  %482 = vmatpush1.msra.mxu0 %v3071_v6 }
  0x3b   :  { %552 = vmatprep.subr.mxu1 %v3075_v7  ;;  %218 = vmatprep.mubr.f32.mxu0 %v4150_v0 }
  0x3c   :  { %337 = vmatprep.mubr.f32.mxu1 %v4150_v0  ;;  %483 = vmatprep.subr.mxu0 %v3079_v8 }
  0x3d   :  { %553 = vmatpush1.msra.mxu1 %v3083_v9  ;;  %2596 = vmatmul.mubr.msk.f32.gmra.mxu0 %vm84_vm0, %v44_v10 }
  0x3e   :  { %2605 = vmatmul.mubr.msk.f32.gmra.mxu1 %vm84_vm0, %v44_v10  ;;  %484 = vmatpush1.msra.mxu0 %v3090_v11  ;;  %v3133_v10 = vld [vmem:[#allocation5 + $0x18] sm:$0xff] }
  0x3f   :  { %554 = vmatprep.subr.mxu1 %v3094_v12  ;;  %485 = vmatprep.subr.mxu0 %v3096_v13  ;;  %4250 = vst [vmem:[#allocation25_spill] sm:$0xff] %v3133_v10 }
  0x40   :  { %555 = vmatpush1.msra.mxu1 %v3100_v14  ;;  %224 = vmatprep.mubr.f32.mxu0 %v4150_v0 }
  0x41   :  { %556 = vmatprep.subr.mxu1 %v3104_v15  ;;  %343 = vmatprep.mubr.f32.mxu1 %v4150_v0  ;;  %v3137_v0 = vld [vmem:[#allocation5] sm:$0xff] }
  0x42   :  { %486 = vmatpush1.msra.mxu0 %v3108_v16  ;;  %557 = vmatpush1.msra.mxu1 %v3110_v17  ;;  %4251 = vst [vmem:[#allocation26_spill] sm:$0xff] %v3137_v0  ;;  %v3141_v17 = vld [vmem:[#allocation5 + $0x10] sm:$0xff] }
  0x43   :  { %2597 = vmatmul.mubr.msk.f32.gmra.mxu0 %vm84_vm0, %v45_v22  ;;  %2606 = vmatmul.mubr.msk.f32.gmra.mxu1 %vm84_vm0, %v45_v22  ;;  %4252 = vst [vmem:[#allocation27_spill] sm:$0xff] %v3141_v17  ;;  %v4253_v22 = vmov 0.0  }
  0x44   :  { %487 = vmatprep.subr.mxu0 %v3119_v30  ;;  %558 = vmatprep.subr.mxu1 %v3121_v38 }
  0x45   :  { %488 = vmatpush1.msra.mxu0 %v3125_v47  ;;  %559 = vmatpush1.msra.mxu1 %v3127_v56 }
  0x46   :  { %489 = vmatprep.subr.mxu0 %v3131_v1  ;;  %560 = vmatprep.subr.mxu1 %v3133_v10 }
  0x47   :  { %490 = vmatpush1.msra.mxu0 %v3137_v0  ;;  %523 = vmatprep.mubr.f32.mxu0 %v4253_v22 }
  0x48   :  { %561 = vmatpush1.msra.mxu1 %v3141_v17  ;;  %594 = vmatprep.mubr.f32.mxu1 %v4253_v22 }
  0x49   :  { %524 = vmatmul.mubr.f32.vlgmr.msra.gmra.mxu0 %v4253_v22  ;;  %595 = vmatmul.mubr.f32.vlgmr.msra.gmra.mxu1 %v4253_v22 }
  0x4a   :  { %701 = vmatprep.subr.mxu0 %v2897_v18  ;;  %772 = vmatprep.subr.mxu1 %v2905_v21 }
  0x4b   :  { %702 = vmatpush1.msra.mxu0 %v2899_v19  ;;  %773 = vmatpush1.msra.mxu1 %v2916_v24 }
  0x4c   :  { %703 = vmatprep.subr.mxu0 %v2903_v20  ;;  %774 = vmatprep.subr.mxu1 %v2922_v26 }
  0x4d   :  { %704 = vmatpush1.msra.mxu0 %v2914_v23  ;;  %775 = vmatpush1.msra.mxu1 %v2934_v29 }
  0x4e   :  { %705 = vmatprep.subr.mxu0 %v2920_v25  ;;  %776 = vmatprep.subr.mxu1 %v2945_v32 }
  0x4f   :  { %706 = vmatpush1.msra.mxu0 %v2926_v27  ;;  %777 = vmatpush1.msra.mxu1 %v2951_v34 }
  0x50   :  { %707 = vmatprep.subr.mxu0 %v2930_v28  ;;  %778 = vmatprep.subr.mxu1 %v2957_v36 }
  0x51   :  { %708 = vmatpush1.msra.mxu0 %v2941_v31  ;;  %779 = vmatpush1.msra.mxu1 %v2961_v37 }
  0x52   :  { %709 = vmatprep.subr.mxu0 %v2947_v33  ;;  %780 = vmatprep.subr.mxu1 %v2972_v40 }
  0x53   :  { %710 = vmatpush1.msra.mxu0 %v2953_v35  ;;  %781 = vmatpush1.msra.mxu1 %v2978_v42 }
  0x54   :  { %711 = vmatprep.subr.mxu0 %v2970_v39  ;;  %782 = vmatprep.subr.mxu1 %v2984_v44 }
  0x55   :  { %712 = vmatpush1.msra.mxu0 %v2976_v41  ;;  %783 = vmatpush1.msra.mxu1 %v2992_v46 }
  0x56   :  { %713 = vmatprep.subr.mxu0 %v2982_v43  ;;  %784 = vmatprep.subr.mxu1 %v3003_v49 }
  0x57   :  { %714 = vmatpush1.msra.mxu0 %v2990_v45  ;;  %785 = vmatpush1.msra.mxu1 %v3009_v51 }
  0x58   :  { %715 = vmatprep.subr.mxu0 %v3001_v48  ;;  %786 = vmatprep.subr.mxu1 %v3015_v53 }
  0x59   :  { %716 = vmatpush1.msra.mxu0 %v3007_v50  ;;  %787 = vmatpush1.msra.mxu1 %v3023_v55 }
  0x5a   :  { %717 = vmatprep.subr.mxu0 %v3013_v52  ;;  %788 = vmatprep.subr.mxu1 %v3032_v57 }
  0x5b   :  { %718 = vmatpush1.msra.mxu0 %v3021_v54  ;;  %789 = vmatpush1.msra.mxu1 %v3038_v59 }
  0x5c   :  { %719 = vmatprep.subr.mxu0 %v3034_v58  ;;  %790 = vmatprep.subr.mxu1 %v3044_v61 }
  0x5d   :  { %720 = vmatpush1.msra.mxu0 %v3040_v60  ;;  %791 = vmatpush1.msra.mxu1 %v3052_v63 }
  0x5e   :  { %721 = vmatprep.subr.mxu0 %v3048_v62  ;;  %792 = vmatprep.subr.mxu1 %v3063_v3 }
  0x5f   :  { %722 = vmatpush1.msra.mxu0 %v3059_v2  ;;  %793 = vmatpush1.msra.mxu1 %v3069_v5 }
  0x60   :  { %723 = vmatprep.subr.mxu0 %v3065_v4  ;;  %794 = vmatprep.subr.mxu1 %v3075_v7  ;;  %v4254_v4 = vld [vmem:[#allocation19_spill] sm:$0xff] }
  0x61   :  { %724 = vmatpush1.msra.mxu0 %v3071_v6  ;;  %795 = vmatpush1.msra.mxu1 %v3083_v9 }
  0x62   :  { %725 = vmatprep.subr.mxu0 %v3079_v8  ;;  %796 = vmatprep.subr.mxu1 %v3094_v12 }
  0x63   :  { %726 = vmatpush1.msra.mxu0 %v3090_v11  ;;  %797 = vmatpush1.msra.mxu1 %v3100_v14 }
  0x64   :  { %727 = vmatprep.subr.mxu0 %v3096_v13  ;;  %798 = vmatprep.subr.mxu1 %v3104_v15 }
  0x65   :  { %728 = vmatpush1.msra.mxu0 %v3108_v16  ;;  %799 = vmatpush1.msra.mxu1 %v4254_v4 }
  0x66   :  { %729 = vmatprep.subr.mxu0 %v3119_v30  ;;  %800 = vmatprep.subr.mxu1 %v3121_v38  ;;  %v64_v38 = vlaneseq }
  0x67   :  { %730 = vmatpush1.msra.mxu0 %v3125_v47  ;;  %801 = vmatpush1.msra.mxu1 %v3127_v56 }
  0x68   :  { %731 = vmatprep.subr.mxu0 %v3131_v1  ;;  %802 = vmatprep.subr.mxu1 %v3133_v10  ;;  %v65_v47 = vshrl.u32 %v64_v38, 7  ;;  %v62_v10 = vld [vmem:[%s4147_s2] sm:$0xf] }
  0x69   :  { %732 = vmatpush1.msra.mxu0 %v3137_v0  ;;  %765 = vmatprep.mubr.f32.mxu0 %v4253_v22 }
  0x6a   :  { %803 = vmatpush1.msra.mxu1 %v3141_v17  ;;  %836 = vmatprep.mubr.f32.mxu1 %v4253_v22  ;;  %v66_v30 = vsub.s32 0, %v65_v47  ;;  %v74_v56 = vsub.s32 2, %v65_v47  ;;  %v70_v4 = vsub.s32 1, %v65_v47  ;;  %v78_v17 = vsub.s32 3, %v65_v47 }
  0x6b   :  { %944 = vmatprep.subr.mxu0 %v2897_v18  ;;  %1015 = vmatprep.subr.mxu1 %v2905_v21 }
  0x6c   :  { %v3230_v18 = vrot.slane %v62_v10, %v66_v30  ;;  %v3232_v21 = vrot.slane %v62_v10, %v74_v56  ;;  %v3234_v13 = vrot.slane %v62_v10, %v70_v4  ;;  %v3236_v14 = vrot.slane %v62_v10, %v78_v17 }
  0xd7   :  { %v3222_v1 = vpop.f32.mrf.mxu0  ;;  %v3224_v0 = vpop.f32.mrf.mxu1 }
  0xd9   :  { %v3226_v16 = vpop.f32.mrf.mxu0  ;;  %v3228_v22 = vpop.f32.mrf.mxu1 }
  0xdb   :  { %v184_v38 = vpop.f32.mrf.mxu0  ;;  %v303_v15 = vpop.f32.mrf.mxu1 }
  0xdc   :  { %v3239_v11 = vadd.f32 %v184_v38, %v3230_v18  ;;  %v3242_v12 = vadd.f32 %v303_v15, %v3232_v21 }
  0xdd   :  { %v186_v47 = vpop.f32.mrf.mxu0  ;;  %v305_v8 = vpop.f32.mrf.mxu1 }
  0xde   :  { %4255 = vst [vmem:[#allocation28_spill] sm:$0xff] %v3239_v11  ;;  %4256 = vst [vmem:[#allocation29_spill] sm:$0xff] %v3242_v12  ;;  %v3245_v9 = vadd.f32 %v186_v47, %v3234_v13  ;;  %v3248_v30 = vadd.f32 %v305_v8, %v3236_v14 }
  0xe0   :  { %4257 = vst [vmem:[#allocation30_spill] sm:$0xff] %v3245_v9  ;;  %4258 = vst [vmem:[#allocation31_spill] sm:$0xff] %v3248_v30  ;;  %v190_v56 = vpop.f32.mrf.mxu0 }
  0xe1   :  { %v3251_v4 = vadd.f32 %v190_v56, %v3230_v18  ;;  %v309_v17 = vpop.f32.mrf.mxu1 }
  0xe2   :  { %v3254_v10 = vadd.f32 %v309_v17, %v3232_v21  ;;  %v192_v38 = vpop.f32.mrf.mxu0 }
  0xe3   :  { %4259 = vst [vmem:[#allocation32_spill] sm:$0xff] %v3251_v4  ;;  %v3257_v15 = vadd.f32 %v192_v38, %v3234_v13  ;;  %v311_v12 = vpop.f32.mrf.mxu1 }
  0xe4   :  { %4260 = vst [vmem:[#allocation33_spill] sm:$0xff] %v3254_v10  ;;  %v3260_v11 = vadd.f32 %v311_v12, %v3236_v14 }
  0xe5   :  { %4261 = vst [vmem:[#allocation34_spill] sm:$0xff] %v3257_v15 }
  0xe6   :  { %4262 = vst [vmem:[#allocation35_spill] sm:$0xff] %v3260_v11  ;;  %v196_v47 = vpop.f32.mrf.mxu0  ;;  %v315_v9 = vpop.f32.mrf.mxu1 }
  0xe7   :  { %v3263_v8 = vadd.f32 %v196_v47, %v3230_v18  ;;  %v3266_v56 = vadd.f32 %v315_v9, %v3232_v21 }
  0xe8   :  { %v198_v4 = vpop.f32.mrf.mxu0  ;;  %v317_v30 = vpop.f32.mrf.mxu1 }
  0xe9   :  { %4263 = vst [vmem:[#allocation36_spill] sm:$0xff] %v3263_v8  ;;  %4264 = vst [vmem:[#allocation37_spill] sm:$0xff] %v3266_v56  ;;  %v3269_v17 = vadd.f32 %v198_v4, %v3234_v13  ;;  %v3272_v38 = vadd.f32 %v317_v30, %v3236_v14 }
  0xeb   :  { %4265 = vst [vmem:[#allocation38_spill] sm:$0xff] %v3269_v17  ;;  %4266 = vst [vmem:[#allocation39_spill] sm:$0xff] %v3272_v38 }
  0xec   :  { %v202_v10 = vpop.f32.mrf.mxu0  ;;  %v321_v15 = vpop.f32.mrf.mxu1 }
  0xed   :  { %v3275_v12 = vadd.f32 %v202_v10, %v3230_v18  ;;  %v3278_v11 = vadd.f32 %v321_v15, %v3232_v21 }
  0xee   :  { %v204_v47 = vpop.f32.mrf.mxu0  ;;  %v323_v8 = vpop.f32.mrf.mxu1 }
  0xef   :  { %4267 = vst [vmem:[#allocation40_spill] sm:$0xff] %v3275_v12  ;;  %4268 = vst [vmem:[#allocation41_spill] sm:$0xff] %v3278_v11  ;;  %v3281_v9 = vadd.f32 %v204_v47, %v3234_v13  ;;  %v3284_v56 = vadd.f32 %v323_v8, %v3236_v14 }
  0xf1   :  { %4269 = vst [vmem:[#allocation42_spill] sm:$0xff] %v3281_v9  ;;  %4270 = vst [vmem:[#allocation43_spill] sm:$0xff] %v3284_v56 }
  0xf2   :  { %v208_v4 = vpop.f32.mrf.mxu0  ;;  %v327_v17 = vpop.f32.mrf.mxu1 }
  0xf3   :  { %v3287_v30 = vadd.f32 %v208_v4, %v3230_v18  ;;  %v3290_v38 = vadd.f32 %v327_v17, %v3232_v21 }
  0xf4   :  { %v210_v10 = vpop.f32.mrf.mxu0  ;;  %v329_v12 = vpop.f32.mrf.mxu1 }
  0xf5   :  { %4271 = vst [vmem:[#allocation44_spill] sm:$0xff] %v3287_v30  ;;  %4272 = vst [vmem:[#allocation45_spill] sm:$0xff] %v3290_v38  ;;  %v3293_v15 = vadd.f32 %v210_v10, %v3234_v13  ;;  %v3296_v11 = vadd.f32 %v329_v12, %v3236_v14 }
  0xf7   :  { %4273 = vst [vmem:[#allocation46_spill] sm:$0xff] %v3293_v15  ;;  %4274 = vst [vmem:[#allocation47_spill] sm:$0xff] %v3296_v11  ;;  %v214_v47 = vpop.f32.mrf.mxu0 }
  0xf8   :  { %v3299_v8 = vadd.f32 %v214_v47, %v3230_v18  ;;  %v333_v56 = vpop.f32.mrf.mxu1 }
  0xf9   :  { %v3302_v9 = vadd.f32 %v333_v56, %v3232_v21  ;;  %v216_v4 = vpop.f32.mrf.mxu0 }
  0xfa   :  { %4275 = vst [vmem:[#allocation48_spill] sm:$0xff] %v3299_v8  ;;  %v3305_v17 = vadd.f32 %v216_v4, %v3234_v13  ;;  %v335_v38 = vpop.f32.mrf.mxu1 }
  0xfb   :  { %4276 = vst [vmem:[#allocation49_spill] sm:$0xff] %v3302_v9  ;;  %v3308_v30 = vadd.f32 %v335_v38, %v3236_v14 }
  0xfc   :  { %4277 = vst [vmem:[#allocation50_spill] sm:$0xff] %v3305_v17 }
  0xfd   :  { %4278 = vst [vmem:[#allocation51_spill] sm:$0xff] %v3308_v30  ;;  %v220_v10 = vpop.f32.mrf.mxu0 }
  0xfe   :  { %v3311_v12 = vadd.f32 %v220_v10, %v3230_v18  ;;  %v339_v11 = vpop.f32.mrf.mxu1 }
  0xff   :  { %v3314_v47 = vadd.f32 %v339_v11, %v3232_v21  ;;  %v222_v8 = vpop.f32.mrf.mxu0 }
 0x100   :  { %4279 = vst [vmem:[#allocation52_spill] sm:$0xff] %v3311_v12  ;;  %v3317_v56 = vadd.f32 %v222_v8, %v3234_v13  ;;  %v341_v9 = vpop.f32.mrf.mxu1 }
 0x101   :  { %4280 = vst [vmem:[#allocation53_spill] sm:$0xff] %v3314_v47  ;;  %v3320_v4 = vadd.f32 %v341_v9, %v3236_v14  ;;  %v179_v9 = vadd.f32 %v3222_v1, %v3230_v18  ;;  %v181_v47 = vadd.f32 %v3226_v16, %v3234_v13  ;;  %v300_v1 = vadd.f32 %v3228_v22, %v3236_v14 }
 0x102   :  { %4281 = vst [vmem:[#allocation54_spill] sm:$0xff] %v3317_v56 }
 0x103   :  { %4282 = vst [vmem:[#allocation55_spill] sm:$0xff] %v3320_v4  ;;  %v226_v17 = vpop.f32.mrf.mxu0  ;;  %v345_v15 = vpop.f32.mrf.mxu1 }
 0x104   :  { %v3323_v38 = vadd.f32 %v226_v17, %v3230_v18  ;;  %v3326_v10 = vadd.f32 %v345_v15, %v3232_v21 }
 0x105   :  { %v228_v12 = vpop.f32.mrf.mxu0  ;;  %v347_v30 = vpop.f32.mrf.mxu1 }
 0x106   :  { %4283 = vst [vmem:[#allocation56_spill] sm:$0xff] %v3323_v38  ;;  %4284 = vst [vmem:[#allocation57_spill] sm:$0xff] %v3326_v10  ;;  %v3329_v11 = vadd.f32 %v228_v12, %v3234_v13  ;;  %v3332_v8 = vadd.f32 %v347_v30, %v3236_v14  ;;  %v298_v12 = vadd.f32 %v3224_v0, %v3232_v21 }
 0x108   :  { %4285 = vst [vmem:[#allocation58_spill] sm:$0xff] %v3329_v11  ;;  %4286 = vst [vmem:[#allocation59_spill] sm:$0xff] %v3332_v8 }
 0x109   :  { %v525_v4 = vpop.f32.mrf.mxu0  ;;  %v596_v6 = vpop.f32.mrf.mxu1 }
 0x10a   :  { %v601_v17 = vadd.f32 %v525_v4, %v179_v9  ;;  %v603_v30 = vadd.f32 %v596_v6, %v298_v12 }
 0x10b   :  { %v527_v38 = vpop.f32.mrf.mxu0  ;;  %v598_v8 = vpop.f32.mrf.mxu1 }
 0x10c   :  { %v2607_v56 = vmul.f32 -1.442695, %v601_v17  ;;  %v602_v15 = vadd.f32 %v527_v38, %v181_v47  ;;  %v2609_v18 = vmul.f32 -1.442695, %v603_v30  ;;  %v604_v7 = vadd.f32 %v598_v8, %v300_v1 }
 0x10e   :  { %2646 = vpow2.f32 %v2607_v56  ;;  %v2608_v10 = vmul.f32 -1.442695, %v602_v15 }
 0x110   :  { %2648 = vpow2.f32 %v2608_v10 }
 0x111   :  { %2650 = vpow2.f32 %v2609_v18 }
 0x11b   :  { %v2647_v11 = vpop.eup %2646 }
 0x11c   :  { %v614_v13 = vadd.f32 1.0, %v2647_v11 }
 0x11d   :  { %v2649_v16 = vpop.eup %2648 }
 0x11e   :  { %2652 = vrcp.f32 %v614_v13  ;;  %v615_v47 = vadd.f32 1.0, %v2649_v16  ;;  %v2651_v56 = vpop.eup %2650  ;;  %v3425_v16 = vld [vmem:[#allocation5 + $0x1e8] sm:$0xff] }
 0x11f   :  { %2654 = vtanh.f32 %v604_v7  ;;  %v616_v0 = vadd.f32 1.0, %v2651_v56  ;;  %v3431_v56 = vld [vmem:[#allocation5 + $0x1e0] sm:$0xff] }
 0x120   :  { %2656 = vrcp.f32 %v615_v47  ;;  %v3427_v47 = vld [vmem:[#allocation5 + $0x1f8] sm:$0xff] }
 0x121   :  { %2658 = vrcp.f32 %v616_v0  ;;  %v3443_v0 = vld [vmem:[#allocation5 + $0x1c0] sm:$0xff] }
 0x12b   :  { %v2653_v4 = vpop.eup %2652 }
 0x12c   :  { %v2655_v38 = vpop.eup %2654 }
 0x12d   :  { %v2657_v10 = vpop.eup %2656  ;;  %v625_v21 = vmul.f32 %v2655_v38, %v2653_v4  ;;  %v3433_v4 = vld [vmem:[#allocation5 + $0x1f0] sm:$0xff]  ;;  %v3437_v38 = vld [vmem:[#allocation5 + $0x1c8] sm:$0xff] }
 0x12e   :  { %v624_v6 = vmul.f32 0.0, %v2657_v10  ;;  %v2659_v14 = vpop.eup %2658  ;;  %v3439_v10 = vld [vmem:[#allocation5 + $0x1d8] sm:$0xff] }
 0x130   :  { %v3342_v9 = vadd.f32 %v625_v21, %v624_v6  ;;  %v3445_v6 = vld [vmem:[#allocation5 + $0x1d0] sm:$0xff]  ;;  %v3449_v21 = vld [vmem:[#allocation5 + $0x1a8] sm:$0xff] }
 0x132   :  { %2660 = vtanh.f32 %v3342_v9 }
 0x13f   :  { %v2661_v22 = vpop.eup %2660 }
 0x140   :  { %v628_v11 = vmul.f32 %v2661_v22, %v2659_v14  ;;  %v3455_v14 = vld [vmem:[#allocation5 + $0x1a0] sm:$0xff]  ;;  %v3457_v22 = vld [vmem:[#allocation5 + $0x1b0] sm:$0xff] }
 0x142   :  { %629 = vst [vmem:[%s4149_s4] sm:$0xff] %v628_v11  ;;  %766 = vmatmul.mubr.f32.vlgmr.msra.gmra.mxu0 %v628_v11  ;;  %837 = vmatmul.mubr.f32.vlgmr.msra.gmra.mxu1 %v628_v11  ;;  %v3461_v11 = vld [vmem:[#allocation5 + $0x188] sm:$0xff] }
 0x143   :  { %945 = vmatpush1.msra.mxu0 %v2899_v19  ;;  %1016 = vmatpush1.msra.mxu1 %v2916_v24  ;;  %v4287_v19 = vld [vmem:[#allocation8_spill] sm:$0xff] }
 0x144   :  { %946 = vmatprep.subr.mxu0 %v2903_v20  ;;  %1017 = vmatprep.subr.mxu1 %v2922_v26  ;;  %v4288_v20 = vld [vmem:[#allocation10_spill] sm:$0xff]  ;;  %v4290_v24 = vld [vmem:[#allocation12_spill] sm:$0xff]  ;;  %4312 = vst [vmem:[#allocation8_spill] sm:$0xff] %v3425_v16 }
 0x145   :  { %947 = vmatpush1.msra.mxu0 %v2914_v23  ;;  %1018 = vmatpush1.msra.mxu1 %v2934_v29  ;;  %v4289_v23 = vld [vmem:[#allocation9_spill] sm:$0xff]  ;;  %v4292_v26 = vld [vmem:[#allocation14_spill] sm:$0xff]  ;;  %v4295_v29 = vld [vmem:[#allocation15_spill] sm:$0xff]  ;;  %4313 = vst [vmem:[#allocation10_spill] sm:$0xff] %v3427_v47 }
 0x146   :  { %948 = vmatprep.subr.mxu0 %v2920_v25  ;;  %1019 = vmatprep.subr.mxu1 %v2945_v32  ;;  %v4291_v25 = vld [vmem:[#allocation11_spill] sm:$0xff]  ;;  %v4297_v32 = vld [vmem:[#allocation18_spill] sm:$0xff] }
 0x147   :  { %949 = vmatpush1.msra.mxu0 %v2926_v27  ;;  %1020 = vmatpush1.msra.mxu1 %v2951_v34  ;;  %v4293_v27 = vld [vmem:[#allocation13_spill] sm:$0xff]  ;;  %v4299_v34 = vld [vmem:[#allocation20_spill] sm:$0xff] }
 0x148   :  { %950 = vmatprep.subr.mxu0 %v2930_v28  ;;  %1021 = vmatprep.subr.mxu1 %v2957_v36  ;;  %v4294_v28 = vld [vmem:[#allocation16_spill] sm:$0xff]  ;;  %v4301_v36 = vld [vmem:[#allocation22_spill] sm:$0xff] }
 0x149   :  { %951 = vmatpush1.msra.mxu0 %v2941_v31  ;;  %1022 = vmatpush1.msra.mxu1 %v2961_v37  ;;  %v4296_v31 = vld [vmem:[#allocation17_spill] sm:$0xff]  ;;  %v4302_v37 = vld [vmem:[#allocation23_spill] sm:$0xff] }
 0x14a   :  { %952 = vmatprep.subr.mxu0 %v2947_v33  ;;  %1023 = vmatprep.subr.mxu1 %v2972_v40  ;;  %v4298_v33 = vld [vmem:[#allocation19_spill] sm:$0xff]  ;;  %v4304_v40 = vld [vmem:[#allocation25_spill] sm:$0xff] }
 0x14b   :  { %953 = vmatpush1.msra.mxu0 %v2953_v35  ;;  %1024 = vmatpush1.msra.mxu1 %v2978_v42  ;;  %v4300_v35 = vld [vmem:[#allocation21_spill] sm:$0xff]  ;;  %v4306_v42 = vmov 0.0  }
 0x14c   :  { %954 = vmatprep.subr.mxu0 %v2970_v39  ;;  %1025 = vmatprep.subr.mxu1 %v2984_v44  ;;  %v4303_v39 = vld [vmem:[#allocation24_spill] sm:$0xff] }
 0x14d   :  { %955 = vmatpush1.msra.mxu0 %v2976_v41  ;;  %1026 = vmatpush1.msra.mxu1 %v2992_v46  ;;  %v4305_v41 = vld [vmem:[#allocation26_spill] sm:$0xff] }
 0x14e   :  { %956 = vmatprep.subr.mxu0 %v2982_v43  ;;  %1027 = vmatprep.subr.mxu1 %v3003_v49  ;;  %v4307_v43 = vld [vmem:[#allocation27_spill] sm:$0xff] }
 0x14f   :  { %957 = vmatpush1.msra.mxu0 %v2990_v45  ;;  %1028 = vmatpush1.msra.mxu1 %v3009_v51  ;;  %v4308_v45 = vld [vmem:[#allocation28_spill] sm:$0xff] }
 0x150   :  { %958 = vmatprep.subr.mxu0 %v3001_v48  ;;  %1029 = vmatprep.subr.mxu1 %v3015_v53 }
 0x151   :  { %959 = vmatpush1.msra.mxu0 %v3007_v50  ;;  %1030 = vmatpush1.msra.mxu1 %v3023_v55  ;;  %v4309_v50 = vld [vmem:[#allocation30_spill] sm:$0xff] }
 0x152   :  { %960 = vmatprep.subr.mxu0 %v3013_v52  ;;  %1031 = vmatprep.subr.mxu1 %v3032_v57 }
 0x153   :  { %961 = vmatpush1.msra.mxu0 %v3021_v54  ;;  %1032 = vmatpush1.msra.mxu1 %v3038_v59  ;;  %v4310_v54 = vld [vmem:[#allocation29_spill] sm:$0xff]  ;;  %v4311_v59 = vld [vmem:[#allocation31_spill] sm:$0xff] }
 0x154   :  { %962 = vmatprep.subr.mxu0 %v3034_v58  ;;  %1033 = vmatprep.subr.mxu1 %v3044_v61 }
 0x155   :  { %963 = vmatpush1.msra.mxu0 %v3040_v60  ;;  %1034 = vmatpush1.msra.mxu1 %v3052_v63 }
 0x156   :  { %964 = vmatprep.subr.mxu0 %v3048_v62  ;;  %1035 = vmatprep.subr.mxu1 %v3063_v3 }
 0x157   :  { %965 = vmatpush1.msra.mxu0 %v3059_v2  ;;  %1036 = vmatpush1.msra.mxu1 %v3069_v5 }
 0x158   :  { %966 = vmatprep.subr.mxu0 %v4287_v19  ;;  %1037 = vmatprep.subr.mxu1 %v4288_v20  ;;  %v3463_v19 = vld [vmem:[#allocation5 + $0x198] sm:$0xff]  ;;  %v3467_v20 = vld [vmem:[#allocation5 + $0x180] sm:$0xff] }
 0x159   :  { %967 = vmatpush1.msra.mxu0 %v4289_v23  ;;  %1038 = vmatpush1.msra.mxu1 %v4290_v24  ;;  %v3469_v23 = vld [vmem:[#allocation5 + $0x190] sm:$0xff]  ;;  %v3473_v24 = vld [vmem:[#allocation5 + $0x168] sm:$0xff] }
 0x15a   :  { %968 = vmatprep.subr.mxu0 %v4291_v25  ;;  %1039 = vmatprep.subr.mxu1 %v4292_v26  ;;  %v3475_v25 = vld [vmem:[#allocation5 + $0x178] sm:$0xff]  ;;  %v3479_v26 = vld [vmem:[#allocation5 + $0x160] sm:$0xff] }
 0x15b   :  { %969 = vmatpush1.msra.mxu0 %v4293_v27  ;;  %1040 = vmatpush1.msra.mxu1 %v4294_v28  ;;  %v3481_v27 = vld [vmem:[#allocation5 + $0x170] sm:$0xff]  ;;  %v3485_v28 = vld [vmem:[#allocation5 + $0x148] sm:$0xff] }
 0x15c   :  { %970 = vmatprep.subr.mxu0 %v4295_v29  ;;  %1041 = vmatprep.subr.mxu1 %v4296_v31  ;;  %v3487_v29 = vld [vmem:[#allocation5 + $0x158] sm:$0xff]  ;;  %v3491_v31 = vld [vmem:[#allocation5 + $0x140] sm:$0xff] }
 0x15d   :  { %971 = vmatpush1.msra.mxu0 %v4297_v32  ;;  %1042 = vmatpush1.msra.mxu1 %v4298_v33  ;;  %v3493_v32 = vld [vmem:[#allocation5 + $0x150] sm:$0xff]  ;;  %v3497_v33 = vld [vmem:[#allocation5 + $0x128] sm:$0xff] }
 0x15e   :  { %972 = vmatprep.subr.mxu0 %v4299_v34  ;;  %1043 = vmatprep.subr.mxu1 %v4300_v35  ;;  %v3499_v34 = vld [vmem:[#allocation5 + $0x138] sm:$0xff]  ;;  %v3503_v35 = vld [vmem:[#allocation5 + $0x120] sm:$0xff] }
 0x15f   :  { %973 = vmatpush1.msra.mxu0 %v4301_v36  ;;  %1044 = vmatpush1.msra.mxu1 %v4302_v37  ;;  %v3505_v36 = vld [vmem:[#allocation5 + $0x130] sm:$0xff]  ;;  %v3509_v37 = vld [vmem:[#allocation5 + $0x108] sm:$0xff] }
 0x160   :  { %974 = vmatprep.subr.mxu0 %v4303_v39  ;;  %1045 = vmatprep.subr.mxu1 %v4304_v40  ;;  %v3511_v39 = vld [vmem:[#allocation5 + $0x118] sm:$0xff]  ;;  %v3513_v40 = vld [vmem:[#allocation5 + $0x100] sm:$0xff] }
 0x161   :  { %975 = vmatpush1.msra.mxu0 %v4305_v41  ;;  %1008 = vmatprep.mubr.f32.mxu0 %v4306_v42  ;;  %v3517_v41 = vld [vmem:[#allocation5 + $0x110] sm:$0xff] }
 0x162   :  { %1046 = vmatpush1.msra.mxu1 %v4307_v43  ;;  %1079 = vmatprep.mubr.f32.mxu1 %v4306_v42  ;;  %v3519_v43 = vld [vmem:[#allocation5 + $0xe8] sm:$0xff] }
 0x163   :  { %1187 = vmatprep.subr.mxu0 %v3425_v16  ;;  %1258 = vmatprep.subr.mxu1 %v3427_v47 }
 0x202   :  { %v767_v44 = vpop.f32.mrf.mxu0  ;;  %v838_v53 = vpop.f32.mrf.mxu1 }
 0x203   :  { %v843_v46 = vadd.f32 %v767_v44, %v4308_v45  ;;  %v845_v55 = vadd.f32 %v838_v53, %v4310_v54  ;;  %v3521_v44 = vld [vmem:[#allocation5 + $0xf8] sm:$0xff]  ;;  %v3525_v45 = vld [vmem:[#allocation5 + $0xe0] sm:$0xff] }
 0x204   :  { %v769_v48 = vpop.f32.mrf.mxu0  ;;  %v840_v57 = vpop.f32.mrf.mxu1  ;;  %v3543_v53 = vld [vmem:[#allocation5 + $0xb8] sm:$0xff]  ;;  %v3547_v54 = vld [vmem:[#allocation5 + $0xa0] sm:$0xff] }
 0x205   :  { %v2610_v49 = vmul.f32 -1.442695, %v843_v46  ;;  %v844_v51 = vadd.f32 %v769_v48, %v4309_v50  ;;  %v2612_v58 = vmul.f32 -1.442695, %v845_v55  ;;  %v846_v60 = vadd.f32 %v840_v57, %v4311_v59  ;;  %v3527_v46 = vld [vmem:[#allocation5 + $0xf0] sm:$0xff]  ;;  %v3529_v48 = vld [vmem:[#allocation5 + $0xc8] sm:$0xff] }
 0x206   :  { %v3535_v50 = vld [vmem:[#allocation5 + $0xc0] sm:$0xff]  ;;  %v3549_v55 = vld [vmem:[#allocation5 + $0xb0] sm:$0xff]  ;;  %v3553_v57 = vld [vmem:[#allocation5 + $0x88] sm:$0xff] }
 0x207   :  { %2662 = vpow2.f32 %v2610_v49  ;;  %v2611_v52 = vmul.f32 -1.442695, %v844_v51  ;;  %v3533_v49 = vld [vmem:[#allocation5 + $0xd8] sm:$0xff]  ;;  %v3537_v51 = vld [vmem:[#allocation5 + $0xd0] sm:$0xff]  ;;  %v3559_v59 = vld [vmem:[#allocation5 + $0x80] sm:$0xff] }
 0x209   :  { %2664 = vpow2.f32 %v2611_v52  ;;  %v3541_v52 = vld [vmem:[#allocation5 + $0xa8] sm:$0xff] }
 0x20a   :  { %2666 = vpow2.f32 %v2612_v58  ;;  %v3555_v58 = vld [vmem:[#allocation5 + $0x98] sm:$0xff] }
 0x20b   :  { %2668 = vtanh.f32 %v846_v60  ;;  %v3561_v60 = vld [vmem:[#allocation5 + $0x90] sm:$0xff] }
 0x20c   :  { %4314 = vst [vmem:[#allocation9_spill] sm:$0xff] %v3561_v60 }
 0x214   :  { %v2663_v61 = vpop.eup %2662 }
 0x215   :  { %v856_v62 = vadd.f32 1.0, %v2663_v61  ;;  %v3565_v61 = vld [vmem:[#allocation5 + $0x68] sm:$0xff] }
 0x216   :  { %v2665_v63 = vpop.eup %2664  ;;  %4315 = vst [vmem:[#allocation12_spill] sm:$0xff] %v3565_v61 }
 0x217   :  { %2670 = vrcp.f32 %v856_v62  ;;  %v857_v2 = vadd.f32 1.0, %v2665_v63  ;;  %v2667_v3 = vpop.eup %2666  ;;  %v3567_v62 = vld [vmem:[#allocation5 + $0x78] sm:$0xff]  ;;  %v3571_v63 = vld [vmem:[#allocation5 + $0x60] sm:$0xff] }
 0x218   :  { %v2669_v5 = vpop.eup %2668  ;;  %v858_v15 = vadd.f32 1.0, %v2667_v3  ;;  %4316 = vst [vmem:[#allocation11_spill] sm:$0xff] %v3567_v62  ;;  %4317 = vst [vmem:[#allocation14_spill] sm:$0xff] %v3571_v63  ;;  %v3577_v3 = vld [vmem:[#allocation5 + $0x48] sm:$0xff] }
 0x219   :  { %2672 = vrcp.f32 %v857_v2  ;;  %v3573_v2 = vld [vmem:[#allocation5 + $0x70] sm:$0xff]  ;;  %4319 = vst [vmem:[#allocation16_spill] sm:$0xff] %v3577_v3 }
 0x21a   :  { %2674 = vrcp.f32 %v858_v15  ;;  %4318 = vst [vmem:[#allocation13_spill] sm:$0xff] %v3573_v2  ;;  %v3591_v15 = vld [vmem:[#allocation5 + $0x38] sm:$0xff] }
 0x21b   :  { %4324 = vst [vmem:[#allocation20_spill] sm:$0xff] %v3591_v15 }
 0x224   :  { %v2671_v7 = vpop.eup %2670 }
 0x225   :  { %v867_v8 = vmul.f32 %v2671_v7, %v2669_v5  ;;  %v3579_v5 = vld [vmem:[#allocation5 + $0x58] sm:$0xff]  ;;  %v3583_v7 = vld [vmem:[#allocation5 + $0x40] sm:$0xff] }
 0x226   :  { %v2673_v17 = vpop.eup %2672  ;;  %4320 = vst [vmem:[#allocation15_spill] sm:$0xff] %v3579_v5  ;;  %4321 = vst [vmem:[#allocation17_spill] sm:$0xff] %v3583_v7 }
 0x227   :  { %v866_v12 = vmul.f32 %v2673_v17, %v3342_v9  ;;  %v2675_v1 = vpop.eup %2674  ;;  %v3451_v9 = vld [vmem:[#allocation5 + $0x1b8] sm:$0xff]  ;;  %v3589_v17 = vld [vmem:[#allocation5 + $0x28] sm:$0xff] }
 0x228   :  { %4323 = vst [vmem:[#allocation19_spill] sm:$0xff] %v3589_v17 }
 0x229   :  { %v3417_v30 = vadd.f32 %v867_v8, %v866_v12  ;;  %v3585_v8 = vld [vmem:[#allocation5 + $0x50] sm:$0xff]  ;;  %v3595_v12 = vld [vmem:[#allocation5 + $0x20] sm:$0xff] }
 0x22a   :  { %4322 = vst [vmem:[#allocation18_spill] sm:$0xff] %v3585_v8  ;;  %4325 = vst [vmem:[#allocation21_spill] sm:$0xff] %v3595_v12 }
 0x22b   :  { %2676 = vtanh.f32 %v3417_v30 }
 0x238   :  { %v2677_v18 = vpop.eup %2676 }
 0x239   :  { %v870_v13 = vmul.f32 %v2677_v18, %v2675_v1  ;;  %v3597_v1 = vld [vmem:[#allocation5 + $0x30] sm:$0xff]  ;;  %v3601_v18 = vld [vmem:[#allocation5 + $0x8] sm:$0xff] }
 0x23a   :  { %4326 = vst [vmem:[#allocation22_spill] sm:$0xff] %v3597_v1  ;;  %4327 = vst [vmem:[#allocation23_spill] sm:$0xff] %v3601_v18 }
 0x23b   :  { %2613 = vst [vmem:[%s4149_s4 + $0x8] sm:$0xff] %v870_v13  ;;  %1009 = vmatmul.mubr.f32.vlgmr.msra.gmra.mxu0 %v870_v13  ;;  %1080 = vmatmul.mubr.f32.vlgmr.msra.gmra.mxu1 %v870_v13  ;;  %v3603_v13 = vld [vmem:[#allocation5 + $0x18] sm:$0xff] }
 0x23c   :  { %1251 = vmatprep.mubr.f32.mxu0 %v4306_v42  ;;  %1322 = vmatprep.mubr.f32.mxu1 %v4306_v42  ;;  %4328 = vst [vmem:[#allocation24_spill] sm:$0xff] %v3603_v13  ;;  %v3607_v42 = vld [vmem:[#allocation5] sm:$0xff] }
 0x23d   :  { %1188 = vmatpush1.msra.mxu0 %v3431_v56  ;;  %1259 = vmatpush1.msra.mxu1 %v3433_v4  ;;  %4329 = vst [vmem:[#allocation25_spill] sm:$0xff] %v3607_v42 }
 0x23e   :  { %1189 = vmatprep.subr.mxu0 %v3437_v38  ;;  %1260 = vmatprep.subr.mxu1 %v3439_v10 }
 0x23f   :  { %1190 = vmatpush1.msra.mxu0 %v3443_v0  ;;  %1261 = vmatpush1.msra.mxu1 %v3445_v6 }
 0x240   :  { %1191 = vmatprep.subr.mxu0 %v3449_v21  ;;  %1262 = vmatprep.subr.mxu1 %v3451_v9 }
 0x241   :  { %1192 = vmatpush1.msra.mxu0 %v3455_v14  ;;  %1263 = vmatpush1.msra.mxu1 %v3457_v22 }
 0x242   :  { %1193 = vmatprep.subr.mxu0 %v3461_v11  ;;  %1264 = vmatprep.subr.mxu1 %v3463_v19 }
 0x243   :  { %1194 = vmatpush1.msra.mxu0 %v3467_v20  ;;  %1265 = vmatpush1.msra.mxu1 %v3469_v23 }
 0x244   :  { %1195 = vmatprep.subr.mxu0 %v3473_v24  ;;  %1266 = vmatprep.subr.mxu1 %v3475_v25 }
 0x245   :  { %1196 = vmatpush1.msra.mxu0 %v3479_v26  ;;  %1267 = vmatpush1.msra.mxu1 %v3481_v27 }
 0x246   :  { %1197 = vmatprep.subr.mxu0 %v3485_v28  ;;  %1268 = vmatprep.subr.mxu1 %v3487_v29 }
 0x247   :  { %1198 = vmatpush1.msra.mxu0 %v3491_v31  ;;  %1269 = vmatpush1.msra.mxu1 %v3493_v32 }
 0x248   :  { %1199 = vmatprep.subr.mxu0 %v3497_v33  ;;  %1270 = vmatprep.subr.mxu1 %v3499_v34 }
 0x249   :  { %1200 = vmatpush1.msra.mxu0 %v3503_v35  ;;  %1271 = vmatpush1.msra.mxu1 %v3505_v36 }
 0x24a   :  { %1201 = vmatprep.subr.mxu0 %v3509_v37  ;;  %1272 = vmatprep.subr.mxu1 %v3511_v39 }
 0x24b   :  { %1202 = vmatpush1.msra.mxu0 %v3513_v40  ;;  %1273 = vmatpush1.msra.mxu1 %v3517_v41 }
 0x24c   :  { %1203 = vmatprep.subr.mxu0 %v3519_v43  ;;  %1274 = vmatprep.subr.mxu1 %v3521_v44 }
 0x24d   :  { %1204 = vmatpush1.msra.mxu0 %v3525_v45  ;;  %1275 = vmatpush1.msra.mxu1 %v3527_v46 }
 0x24e   :  { %1205 = vmatprep.subr.mxu0 %v3529_v48  ;;  %1276 = vmatprep.subr.mxu1 %v3533_v49 }
 0x24f   :  { %1206 = vmatpush1.msra.mxu0 %v3535_v50  ;;  %1277 = vmatpush1.msra.mxu1 %v3537_v51 }
 0x250   :  { %1207 = vmatprep.subr.mxu0 %v3541_v52  ;;  %1278 = vmatprep.subr.mxu1 %v3543_v53 }
 0x251   :  { %1208 = vmatpush1.msra.mxu0 %v3547_v54  ;;  %1279 = vmatpush1.msra.mxu1 %v3549_v55 }
 0x252   :  { %1209 = vmatprep.subr.mxu0 %v3553_v57  ;;  %1280 = vmatprep.subr.mxu1 %v3555_v58 }
 0x253   :  { %1210 = vmatpush1.msra.mxu0 %v3559_v59  ;;  %1281 = vmatpush1.msra.mxu1 %v3561_v60 }
 0x254   :  { %1211 = vmatprep.subr.mxu0 %v3565_v61  ;;  %1282 = vmatprep.subr.mxu1 %v3567_v62 }
 0x255   :  { %1212 = vmatpush1.msra.mxu0 %v3571_v63  ;;  %1283 = vmatpush1.msra.mxu1 %v3573_v2 }
 0x256   :  { %1213 = vmatprep.subr.mxu0 %v3577_v3  ;;  %1284 = vmatprep.subr.mxu1 %v3579_v5  ;;  %v3609_v3 = vld [vmem:[#allocation5 + $0x10] sm:$0xff] }
 0x257   :  { %1214 = vmatpush1.msra.mxu0 %v3583_v7  ;;  %1285 = vmatpush1.msra.mxu1 %v3585_v8  ;;  %4330 = vst [vmem:[#allocation26_spill] sm:$0xff] %v3609_v3 }
 0x258   :  { %1215 = vmatprep.subr.mxu0 %v3589_v17  ;;  %1286 = vmatprep.subr.mxu1 %v3591_v15  ;;  %v4331_v17 = vld [vmem:[#allocation32_spill] sm:$0xff] }
 0x259   :  { %1216 = vmatpush1.msra.mxu0 %v3595_v12  ;;  %1287 = vmatpush1.msra.mxu1 %v3597_v1  ;;  %v4332_v12 = vld [vmem:[#allocation34_spill] sm:$0xff] }
 0x25a   :  { %1217 = vmatprep.subr.mxu0 %v3601_v18  ;;  %1288 = vmatprep.subr.mxu1 %v3603_v13  ;;  %v4333_v13 = vld [vmem:[#allocation33_spill] sm:$0xff] }
 0x25b   :  { %1218 = vmatpush1.msra.mxu0 %v3607_v42  ;;  %1289 = vmatpush1.msra.mxu1 %v3609_v3  ;;  %v4334_v3 = vld [vmem:[#allocation35_spill] sm:$0xff] }
 0x25c   :  { %1430 = vmatprep.subr.mxu0 %v3425_v16  ;;  %1501 = vmatprep.subr.mxu1 %v3427_v47 }
 0x2fb   :  { %v1010_v15 = vpop.f32.mrf.mxu0  ;;  %v1081_v18 = vpop.f32.mrf.mxu1 }
 0x2fc   :  { %v1086_v8 = vadd.f32 %v1010_v15, %v4331_v17  ;;  %v1088_v63 = vadd.f32 %v1081_v18, %v4333_v13  ;;  %v4341_v13 = vld [vmem:[#allocation15_spill] sm:$0xff] }
 0x2fd   :  { %v1012_v7 = vpop.f32.mrf.mxu0  ;;  %v1083_v42 = vpop.f32.mrf.mxu1 }
 0x2fe   :  { %v2614_v5 = vmul.f32 -1.442695, %v1086_v8  ;;  %v1087_v2 = vadd.f32 %v1012_v7, %v4332_v12  ;;  %v2616_v62 = vmul.f32 -1.442695, %v1088_v63  ;;  %v1089_v61 = vadd.f32 %v1083_v42, %v4334_v3  ;;  %v4339_v63 = vld [vmem:[#allocation13_spill] sm:$0xff]  ;;  %v4340_v3 = vld [vmem:[#allocation16_spill] sm:$0xff] }
 0x300   :  { %2678 = vpow2.f32 %v2614_v5  ;;  %v2615_v1 = vmul.f32 -1.442695, %v1087_v2 }
 0x302   :  { %2680 = vpow2.f32 %v2615_v1 }
 0x303   :  { %2682 = vpow2.f32 %v2616_v62 }
 0x304   :  { %2684 = vtanh.f32 %v1089_v61  ;;  %v4338_v61 = vld [vmem:[#allocation14_spill] sm:$0xff] }
 0x30d   :  { %v2679_v16 = vpop.eup %2678 }
 0x30e   :  { %v1099_v60 = vadd.f32 1.0, %v2679_v16 }
 0x30f   :  { %v2681_v47 = vpop.eup %2680 }
 0x310   :  { %2686 = vrcp.f32 %v1099_v60  ;;  %v1100_v17 = vadd.f32 1.0, %v2681_v47  ;;  %v2683_v8 = vpop.eup %2682  ;;  %v4336_v47 = vld [vmem:[#allocation12_spill] sm:$0xff]  ;;  %v4337_v60 = vld [vmem:[#allocation11_spill] sm:$0xff] }
 0x311   :  { %v2685_v7 = vpop.eup %2684  ;;  %v1101_v12 = vadd.f32 1.0, %v2683_v8  ;;  %v4343_v8 = vld [vmem:[#allocation18_spill] sm:$0xff] }
 0x312   :  { %2688 = vrcp.f32 %v1100_v17  ;;  %v4342_v17 = vld [vmem:[#allocation17_spill] sm:$0xff] }
 0x313   :  { %2690 = vrcp.f32 %v1101_v12  ;;  %v4348_v12 = vld [vmem:[#allocation23_spill] sm:$0xff] }
 0x31d   :  { %v2687_v5 = vpop.eup %2686 }
 0x31e   :  { %v1110_v2 = vmul.f32 %v2687_v5, %v2685_v7  ;;  %v4344_v7 = vld [vmem:[#allocation19_spill] sm:$0xff]  ;;  %v4345_v5 = vld [vmem:[#allocation20_spill] sm:$0xff] }
 0x31f   :  { %v2689_v15 = vpop.eup %2688 }
 0x320   :  { %v1109_v1 = vmul.f32 %v2689_v15, %v3417_v30  ;;  %v2691_v42 = vpop.eup %2690  ;;  %v4335_v30 = vld [vmem:[#allocation9_spill] sm:$0xff]  ;;  %v4347_v15 = vld [vmem:[#allocation22_spill] sm:$0xff] }
 0x322   :  { %v3624_v18 = vadd.f32 %v1110_v2, %v1109_v1  ;;  %v4346_v2 = vld [vmem:[#allocation21_spill] sm:$0xff]  ;;  %v4349_v1 = vld [vmem:[#allocation24_spill] sm:$0xff] }
 0x324   :  { %2692 = vtanh.f32 %v3624_v18 }
 0x331   :  { %v2693_v16 = vpop.eup %2692 }
 0x332   :  { %v1113_v62 = vmul.f32 %v2693_v16, %v2691_v42  ;;  %v4350_v42 = vld [vmem:[#allocation25_spill] sm:$0xff]  ;;  %v4351_v16 = vmov 0.0  }
 0x334   :  { %2617 = vst [vmem:[%s4149_s4 + $0x10] sm:$0xff] %v1113_v62  ;;  %1252 = vmatmul.mubr.f32.vlgmr.msra.gmra.mxu0 %v1113_v62  ;;  %1323 = vmatmul.mubr.f32.vlgmr.msra.gmra.mxu1 %v1113_v62  ;;  %v4352_v62 = vld [vmem:[#allocation26_spill] sm:$0xff] }
 0x335   :  { %1431 = vmatpush1.msra.mxu0 %v3431_v56  ;;  %1502 = vmatpush1.msra.mxu1 %v3433_v4 }
 0x336   :  { %1432 = vmatprep.subr.mxu0 %v3437_v38  ;;  %1503 = vmatprep.subr.mxu1 %v3439_v10 }
 0x337   :  { %1433 = vmatpush1.msra.mxu0 %v3443_v0  ;;  %1504 = vmatpush1.msra.mxu1 %v3445_v6 }
 0x338   :  { %1434 = vmatprep.subr.mxu0 %v3449_v21  ;;  %1505 = vmatprep.subr.mxu1 %v3451_v9 }
 0x339   :  { %1435 = vmatpush1.msra.mxu0 %v3455_v14  ;;  %1506 = vmatpush1.msra.mxu1 %v3457_v22 }
 0x33a   :  { %1436 = vmatprep.subr.mxu0 %v3461_v11  ;;  %1507 = vmatprep.subr.mxu1 %v3463_v19 }
 0x33b   :  { %1437 = vmatpush1.msra.mxu0 %v3467_v20  ;;  %1508 = vmatpush1.msra.mxu1 %v3469_v23 }
 0x33c   :  { %1438 = vmatprep.subr.mxu0 %v3473_v24  ;;  %1509 = vmatprep.subr.mxu1 %v3475_v25 }
 0x33d   :  { %1439 = vmatpush1.msra.mxu0 %v3479_v26  ;;  %1510 = vmatpush1.msra.mxu1 %v3481_v27 }
 0x33e   :  { %1440 = vmatprep.subr.mxu0 %v3485_v28  ;;  %1511 = vmatprep.subr.mxu1 %v3487_v29 }
 0x33f   :  { %1441 = vmatpush1.msra.mxu0 %v3491_v31  ;;  %1512 = vmatpush1.msra.mxu1 %v3493_v32 }
 0x340   :  { %1442 = vmatprep.subr.mxu0 %v3497_v33  ;;  %1513 = vmatprep.subr.mxu1 %v3499_v34 }
 0x341   :  { %1443 = vmatpush1.msra.mxu0 %v3503_v35  ;;  %1514 = vmatpush1.msra.mxu1 %v3505_v36 }
 0x342   :  { %1444 = vmatprep.subr.mxu0 %v3509_v37  ;;  %1515 = vmatprep.subr.mxu1 %v3511_v39 }
 0x343   :  { %1445 = vmatpush1.msra.mxu0 %v3513_v40  ;;  %1516 = vmatpush1.msra.mxu1 %v3517_v41 }
 0x344   :  { %1446 = vmatprep.subr.mxu0 %v3519_v43  ;;  %1517 = vmatprep.subr.mxu1 %v3521_v44 }
 0x345   :  { %1447 = vmatpush1.msra.mxu0 %v3525_v45  ;;  %1518 = vmatpush1.msra.mxu1 %v3527_v46 }
 0x346   :  { %1448 = vmatprep.subr.mxu0 %v3529_v48  ;;  %1519 = vmatprep.subr.mxu1 %v3533_v49 }
 0x347   :  { %1449 = vmatpush1.msra.mxu0 %v3535_v50  ;;  %1520 = vmatpush1.msra.mxu1 %v3537_v51 }
 0x348   :  { %1450 = vmatprep.subr.mxu0 %v3541_v52  ;;  %1521 = vmatprep.subr.mxu1 %v3543_v53 }
 0x349   :  { %1451 = vmatpush1.msra.mxu0 %v3547_v54  ;;  %1522 = vmatpush1.msra.mxu1 %v3549_v55 }
 0x34a   :  { %1452 = vmatprep.subr.mxu0 %v3553_v57  ;;  %1523 = vmatprep.subr.mxu1 %v3555_v58 }
 0x34b   :  { %1453 = vmatpush1.msra.mxu0 %v3559_v59  ;;  %1524 = vmatpush1.msra.mxu1 %v4335_v30 }
 0x34c   :  { %1454 = vmatprep.subr.mxu0 %v4336_v47  ;;  %1525 = vmatprep.subr.mxu1 %v4337_v60 }
 0x34d   :  { %1455 = vmatpush1.msra.mxu0 %v4338_v61  ;;  %1526 = vmatpush1.msra.mxu1 %v4339_v63  ;;  %v4357_v63 = vld [vmem:[#allocation37_spill] sm:$0xff] }
 0x34e   :  { %1456 = vmatprep.subr.mxu0 %v4340_v3  ;;  %1527 = vmatprep.subr.mxu1 %v4341_v13 }
 0x34f   :  { %1457 = vmatpush1.msra.mxu0 %v4342_v17  ;;  %1528 = vmatpush1.msra.mxu1 %v4343_v8  ;;  %v4353_v8 = vld [vmem:[#allocation8_spill] sm:$0xff] }
 0x350   :  { %1458 = vmatprep.subr.mxu0 %v4344_v7  ;;  %1529 = vmatprep.subr.mxu1 %v4345_v5  ;;  %v4354_v7 = vld [vmem:[#allocation10_spill] sm:$0xff] }
 0x351   :  { %1459 = vmatpush1.msra.mxu0 %v4346_v2  ;;  %1530 = vmatpush1.msra.mxu1 %v4347_v15  ;;  %v4355_v2 = vld [vmem:[#allocation36_spill] sm:$0xff] }
 0x352   :  { %1460 = vmatprep.subr.mxu0 %v4348_v12  ;;  %1531 = vmatprep.subr.mxu1 %v4349_v1  ;;  %v4356_v12 = vld [vmem:[#allocation38_spill] sm:$0xff] }
 0x353   :  { %1461 = vmatpush1.msra.mxu0 %v4350_v42  ;;  %1494 = vmatprep.mubr.f32.mxu0 %v4351_v16 }
 0x354   :  { %1532 = vmatpush1.msra.mxu1 %v4352_v62  ;;  %1565 = vmatprep.mubr.f32.mxu1 %v4351_v16  ;;  %v4358_v16 = vld [vmem:[#allocation39_spill] sm:$0xff] }
 0x355   :  { %1673 = vmatprep.subr.mxu0 %v4353_v8  ;;  %1744 = vmatprep.subr.mxu1 %v4354_v7 }
 0x3f4   :  { %v1253_v5 = vpop.f32.mrf.mxu0  ;;  %v1324_v42 = vpop.f32.mrf.mxu1 }
 0x3f5   :  { %v1329_v17 = vadd.f32 %v1253_v5, %v4355_v2  ;;  %v1331_v61 = vadd.f32 %v1324_v42, %v4357_v63  ;;  %v4363_v42 = vld [vmem:[#allocation13_spill] sm:$0xff] }
 0x3f6   :  { %v1255_v15 = vpop.f32.mrf.mxu0  ;;  %v1326_v62 = vpop.f32.mrf.mxu1 }
 0x3f7   :  { %v2618_v13 = vmul.f32 -1.442695, %v1329_v17  ;;  %v1330_v3 = vadd.f32 %v1255_v15, %v4356_v12  ;;  %v2620_v60 = vmul.f32 -1.442695, %v1331_v61  ;;  %v1332_v47 = vadd.f32 %v1326_v62, %v4358_v16  ;;  %v4364_v16 = vld [vmem:[#allocation16_spill] sm:$0xff]  ;;  %v4365_v62 = vld [vmem:[#allocation15_spill] sm:$0xff] }
 0x3f9   :  { %2694 = vpow2.f32 %v2618_v13  ;;  %v2619_v1 = vmul.f32 -1.442695, %v1330_v3 }
 0x3fb   :  { %2696 = vpow2.f32 %v2619_v1 }
 0x3fc   :  { %2698 = vpow2.f32 %v2620_v60 }
 0x3fd   :  { %2700 = vtanh.f32 %v1332_v47  ;;  %v4361_v47 = vld [vmem:[#allocation11_spill] sm:$0xff] }
 0x406   :  { %v2695_v8 = vpop.eup %2694 }
 0x407   :  { %v1342_v30 = vadd.f32 1.0, %v2695_v8 }
 0x408   :  { %v2697_v7 = vpop.eup %2696 }
 0x409   :  { %2702 = vrcp.f32 %v1342_v30  ;;  %v1343_v5 = vadd.f32 1.0, %v2697_v7  ;;  %v2699_v17 = vpop.eup %2698  ;;  %v4360_v30 = vld [vmem:[#allocation12_spill] sm:$0xff]  ;;  %v4362_v7 = vld [vmem:[#allocation14_spill] sm:$0xff] }
 0x40a   :  { %v2701_v2 = vpop.eup %2700  ;;  %v1344_v12 = vadd.f32 1.0, %v2699_v17  ;;  %v4367_v17 = vld [vmem:[#allocation18_spill] sm:$0xff] }
 0x40b   :  { %2704 = vrcp.f32 %v1343_v5  ;;  %v4366_v5 = vld [vmem:[#allocation17_spill] sm:$0xff] }
 0x40c   :  { %2706 = vrcp.f32 %v1344_v12  ;;  %v4372_v12 = vld [vmem:[#allocation23_spill] sm:$0xff] }
 0x416   :  { %v2703_v13 = vpop.eup %2702 }
 0x417   :  { %v1353_v3 = vmul.f32 %v2703_v13, %v2701_v2  ;;  %v4368_v2 = vld [vmem:[#allocation19_spill] sm:$0xff]  ;;  %v4369_v13 = vld [vmem:[#allocation20_spill] sm:$0xff] }
 0x418   :  { %v2705_v15 = vpop.eup %2704 }
 0x419   :  { %v1352_v63 = vmul.f32 %v2705_v15, %v3624_v18  ;;  %v2707_v61 = vpop.eup %2706  ;;  %v4359_v18 = vld [vmem:[#allocation9_spill] sm:$0xff]  ;;  %v4371_v15 = vld [vmem:[#allocation22_spill] sm:$0xff] }
 0x41b   :  { %v3701_v1 = vadd.f32 %v1353_v3, %v1352_v63  ;;  %v4370_v3 = vld [vmem:[#allocation21_spill] sm:$0xff]  ;;  %v4373_v63 = vld [vmem:[#allocation24_spill] sm:$0xff] }
 0x41d   :  { %2708 = vtanh.f32 %v3701_v1 }
 0x42a   :  { %v2709_v60 = vpop.eup %2708 }
 0x42b   :  { %v1356_v8 = vmul.f32 %v2709_v60, %v2707_v61  ;;  %v4374_v61 = vld [vmem:[#allocation25_spill] sm:$0xff]  ;;  %v4375_v60 = vmov 0.0  }
 0x42d   :  { %2621 = vst [vmem:[%s4149_s4 + $0x18] sm:$0xff] %v1356_v8  ;;  %1495 = vmatmul.mubr.f32.vlgmr.msra.gmra.mxu0 %v1356_v8  ;;  %1566 = vmatmul.mubr.f32.vlgmr.msra.gmra.mxu1 %v1356_v8  ;;  %v4376_v8 = vld [vmem:[#allocation26_spill] sm:$0xff] }
 0x42e   :  { %1674 = vmatpush1.msra.mxu0 %v3431_v56  ;;  %1745 = vmatpush1.msra.mxu1 %v3433_v4 }
 0x42f   :  { %1675 = vmatprep.subr.mxu0 %v3437_v38  ;;  %1746 = vmatprep.subr.mxu1 %v3439_v10 }
 0x430   :  { %1676 = vmatpush1.msra.mxu0 %v3443_v0  ;;  %1747 = vmatpush1.msra.mxu1 %v3445_v6 }
 0x431   :  { %1677 = vmatprep.subr.mxu0 %v3449_v21  ;;  %1748 = vmatprep.subr.mxu1 %v3451_v9 }
 0x432   :  { %1678 = vmatpush1.msra.mxu0 %v3455_v14  ;;  %1749 = vmatpush1.msra.mxu1 %v3457_v22 }
 0x433   :  { %1679 = vmatprep.subr.mxu0 %v3461_v11  ;;  %1750 = vmatprep.subr.mxu1 %v3463_v19 }
 0x434   :  { %1680 = vmatpush1.msra.mxu0 %v3467_v20  ;;  %1751 = vmatpush1.msra.mxu1 %v3469_v23 }
 0x435   :  { %1681 = vmatprep.subr.mxu0 %v3473_v24  ;;  %1752 = vmatprep.subr.mxu1 %v3475_v25 }
 0x436   :  { %1682 = vmatpush1.msra.mxu0 %v3479_v26  ;;  %1753 = vmatpush1.msra.mxu1 %v3481_v27 }
 0x437   :  { %1683 = vmatprep.subr.mxu0 %v3485_v28  ;;  %1754 = vmatprep.subr.mxu1 %v3487_v29 }
 0x438   :  { %1684 = vmatpush1.msra.mxu0 %v3491_v31  ;;  %1755 = vmatpush1.msra.mxu1 %v3493_v32 }
 0x439   :  { %1685 = vmatprep.subr.mxu0 %v3497_v33  ;;  %1756 = vmatprep.subr.mxu1 %v3499_v34 }
 0x43a   :  { %1686 = vmatpush1.msra.mxu0 %v3503_v35  ;;  %1757 = vmatpush1.msra.mxu1 %v3505_v36 }
 0x43b   :  { %1687 = vmatprep.subr.mxu0 %v3509_v37  ;;  %1758 = vmatprep.subr.mxu1 %v3511_v39 }
 0x43c   :  { %1688 = vmatpush1.msra.mxu0 %v3513_v40  ;;  %1759 = vmatpush1.msra.mxu1 %v3517_v41 }
 0x43d   :  { %1689 = vmatprep.subr.mxu0 %v3519_v43  ;;  %1760 = vmatprep.subr.mxu1 %v3521_v44 }
 0x43e   :  { %1690 = vmatpush1.msra.mxu0 %v3525_v45  ;;  %1761 = vmatpush1.msra.mxu1 %v3527_v46 }
 0x43f   :  { %1691 = vmatprep.subr.mxu0 %v3529_v48  ;;  %1762 = vmatprep.subr.mxu1 %v3533_v49 }
 0x440   :  { %1692 = vmatpush1.msra.mxu0 %v3535_v50  ;;  %1763 = vmatpush1.msra.mxu1 %v3537_v51 }
 0x441   :  { %1693 = vmatprep.subr.mxu0 %v3541_v52  ;;  %1764 = vmatprep.subr.mxu1 %v3543_v53 }
 0x442   :  { %1694 = vmatpush1.msra.mxu0 %v3547_v54  ;;  %1765 = vmatpush1.msra.mxu1 %v3549_v55 }
 0x443   :  { %1695 = vmatprep.subr.mxu0 %v3553_v57  ;;  %1766 = vmatprep.subr.mxu1 %v3555_v58 }
 0x444   :  { %1696 = vmatpush1.msra.mxu0 %v3559_v59  ;;  %1767 = vmatpush1.msra.mxu1 %v4359_v18 }
 0x445   :  { %1697 = vmatprep.subr.mxu0 %v4360_v30  ;;  %1768 = vmatprep.subr.mxu1 %v4361_v47 }
 0x446   :  { %1698 = vmatpush1.msra.mxu0 %v4362_v7  ;;  %1769 = vmatpush1.msra.mxu1 %v4363_v42  ;;  %v4381_v42 = vld [vmem:[#allocation41_spill] sm:$0xff] }
 0x447   :  { %1699 = vmatprep.subr.mxu0 %v4364_v16  ;;  %1770 = vmatprep.subr.mxu1 %v4365_v62 }
 0x448   :  { %1700 = vmatpush1.msra.mxu0 %v4366_v5  ;;  %1771 = vmatpush1.msra.mxu1 %v4367_v17  ;;  %v4377_v17 = vld [vmem:[#allocation8_spill] sm:$0xff] }
 0x449   :  { %1701 = vmatprep.subr.mxu0 %v4368_v2  ;;  %1772 = vmatprep.subr.mxu1 %v4369_v13  ;;  %v4378_v2 = vld [vmem:[#allocation10_spill] sm:$0xff] }
 0x44a   :  { %1702 = vmatpush1.msra.mxu0 %v4370_v3  ;;  %1773 = vmatpush1.msra.mxu1 %v4371_v15  ;;  %v4379_v3 = vld [vmem:[#allocation40_spill] sm:$0xff] }
 0x44b   :  { %1703 = vmatprep.subr.mxu0 %v4372_v12  ;;  %1774 = vmatprep.subr.mxu1 %v4373_v63  ;;  %v4380_v12 = vld [vmem:[#allocation42_spill] sm:$0xff] }
 0x44c   :  { %1704 = vmatpush1.msra.mxu0 %v4374_v61  ;;  %1737 = vmatprep.mubr.f32.mxu0 %v4375_v60 }
 0x44d   :  { %1775 = vmatpush1.msra.mxu1 %v4376_v8  ;;  %1808 = vmatprep.mubr.f32.mxu1 %v4375_v60  ;;  %v4382_v60 = vld [vmem:[#allocation43_spill] sm:$0xff] }
 0x44e   :  { %1916 = vmatprep.subr.mxu0 %v4377_v17  ;;  %1987 = vmatprep.subr.mxu1 %v4378_v2 }
 0x4ed   :  { %v1496_v13 = vpop.f32.mrf.mxu0  ;;  %v1567_v61 = vpop.f32.mrf.mxu1 }
 0x4ee   :  { %v1572_v5 = vadd.f32 %v1496_v13, %v4379_v3  ;;  %v1574_v7 = vadd.f32 %v1567_v61, %v4381_v42 }
 0x4ef   :  { %v1498_v15 = vpop.f32.mrf.mxu0  ;;  %v1569_v8 = vpop.f32.mrf.mxu1 }
 0x4f0   :  { %v2622_v62 = vmul.f32 -1.442695, %v1572_v5  ;;  %v1573_v16 = vadd.f32 %v1498_v15, %v4380_v12  ;;  %v2624_v47 = vmul.f32 -1.442695, %v1574_v7  ;;  %v1575_v30 = vadd.f32 %v1569_v8, %v4382_v60  ;;  %v3861_v60 = vld [vmem:[#allocation5 + $0x1e8] sm:$0xff]  ;;  %v3863_v8 = vld [vmem:[#allocation5 + $0x1f8] sm:$0xff] }
 0x4f2   :  { %2710 = vpow2.f32 %v2622_v62  ;;  %v2623_v63 = vmul.f32 -1.442695, %v1573_v16 }
 0x4f4   :  { %2712 = vpow2.f32 %v2623_v63 }
 0x4f5   :  { %2714 = vpow2.f32 %v2624_v47 }
 0x4f6   :  { %2716 = vtanh.f32 %v1575_v30 }
 0x4ff   :  { %v2711_v17 = vpop.eup %2710 }
 0x500   :  { %v1585_v18 = vadd.f32 1.0, %v2711_v17  ;;  %v3867_v17 = vld [vmem:[#allocation5 + $0x1e0] sm:$0xff] }
 0x501   :  { %v2713_v2 = vpop.eup %2712 }
 0x502   :  { %2718 = vrcp.f32 %v1585_v18  ;;  %v1586_v13 = vadd.f32 1.0, %v2713_v2  ;;  %v2715_v5 = vpop.eup %2714  ;;  %v3869_v2 = vld [vmem:[#allocation5 + $0x1f0] sm:$0xff] }
 0x503   :  { %v2717_v3 = vpop.eup %2716  ;;  %v1587_v12 = vadd.f32 1.0, %v2715_v5  ;;  %v3875_v5 = vld [vmem:[#allocation5 + $0x1d8] sm:$0xff] }
 0x504   :  { %2720 = vrcp.f32 %v1586_v13  ;;  %v3873_v13 = vld [vmem:[#allocation5 + $0x1c8] sm:$0xff] }
 0x505   :  { %2722 = vrcp.f32 %v1587_v12  ;;  %v3891_v12 = vld [vmem:[#allocation5 + $0x1a0] sm:$0xff] }
 0x50f   :  { %v2719_v62 = vpop.eup %2718 }
 0x510   :  { %v1596_v16 = vmul.f32 %v2719_v62, %v2717_v3  ;;  %v3879_v3 = vld [vmem:[#allocation5 + $0x1c0] sm:$0xff]  ;;  %v3881_v62 = vld [vmem:[#allocation5 + $0x1d0] sm:$0xff] }
 0x511   :  { %v2721_v15 = vpop.eup %2720 }
 0x512   :  { %v1595_v42 = vmul.f32 %v2721_v15, %v3701_v1  ;;  %v2723_v7 = vpop.eup %2722  ;;  %v3887_v15 = vld [vmem:[#allocation5 + $0x1b8] sm:$0xff] }
 0x514   :  { %v3778_v63 = vadd.f32 %v1596_v16, %v1595_v42  ;;  %v3885_v16 = vld [vmem:[#allocation5 + $0x1a8] sm:$0xff]  ;;  %v3893_v42 = vld [vmem:[#allocation5 + $0x1b0] sm:$0xff] }
 0x516   :  { %2724 = vtanh.f32 %v3778_v63 }
 0x523   :  { %v2725_v47 = vpop.eup %2724 }
 0x524   :  { %v1599_v61 = vmul.f32 %v2725_v47, %v2723_v7  ;;  %v3899_v7 = vld [vmem:[#allocation5 + $0x198] sm:$0xff]  ;;  %v3903_v47 = vld [vmem:[#allocation5 + $0x180] sm:$0xff] }
 0x526   :  { %2625 = vst [vmem:[%s4149_s4 + $0x20] sm:$0xff] %v1599_v61  ;;  %1738 = vmatmul.mubr.f32.vlgmr.msra.gmra.mxu0 %v1599_v61  ;;  %1809 = vmatmul.mubr.f32.vlgmr.msra.gmra.mxu1 %v1599_v61  ;;  %v3905_v61 = vld [vmem:[#allocation5 + $0x190] sm:$0xff] }
 0x527   :  { %1917 = vmatpush1.msra.mxu0 %v3431_v56  ;;  %1988 = vmatpush1.msra.mxu1 %v3433_v4  ;;  %v4383_v56 = vld [vmem:[#allocation9_spill] sm:$0xff]  ;;  %v4384_v4 = vld [vmem:[#allocation12_spill] sm:$0xff] }
 0x528   :  { %1918 = vmatprep.subr.mxu0 %v3437_v38  ;;  %1989 = vmatprep.subr.mxu1 %v3439_v10  ;;  %v4385_v38 = vld [vmem:[#allocation11_spill] sm:$0xff]  ;;  %v4386_v10 = vld [vmem:[#allocation14_spill] sm:$0xff] }
 0x529   :  { %1919 = vmatpush1.msra.mxu0 %v3443_v0  ;;  %1990 = vmatpush1.msra.mxu1 %v3445_v6  ;;  %v4387_v0 = vld [vmem:[#allocation13_spill] sm:$0xff]  ;;  %v4388_v6 = vld [vmem:[#allocation16_spill] sm:$0xff] }
 0x52a   :  { %1920 = vmatprep.subr.mxu0 %v3449_v21  ;;  %1991 = vmatprep.subr.mxu1 %v3451_v9  ;;  %v4389_v21 = vld [vmem:[#allocation15_spill] sm:$0xff]  ;;  %v4390_v9 = vld [vmem:[#allocation17_spill] sm:$0xff] }
 0x52b   :  { %1921 = vmatpush1.msra.mxu0 %v3455_v14  ;;  %1992 = vmatpush1.msra.mxu1 %v3457_v22  ;;  %v4391_v14 = vld [vmem:[#allocation18_spill] sm:$0xff]  ;;  %v4392_v22 = vld [vmem:[#allocation19_spill] sm:$0xff] }
 0x52c   :  { %1922 = vmatprep.subr.mxu0 %v3461_v11  ;;  %1993 = vmatprep.subr.mxu1 %v3463_v19  ;;  %v4393_v11 = vld [vmem:[#allocation20_spill] sm:$0xff]  ;;  %v4394_v19 = vld [vmem:[#allocation21_spill] sm:$0xff] }
 0x52d   :  { %1923 = vmatpush1.msra.mxu0 %v3467_v20  ;;  %1994 = vmatpush1.msra.mxu1 %v3469_v23  ;;  %v4395_v20 = vld [vmem:[#allocation22_spill] sm:$0xff]  ;;  %v4396_v23 = vld [vmem:[#allocation23_spill] sm:$0xff] }
 0x52e   :  { %1924 = vmatprep.subr.mxu0 %v3473_v24  ;;  %1995 = vmatprep.subr.mxu1 %v3475_v25  ;;  %v4397_v24 = vld [vmem:[#allocation24_spill] sm:$0xff]  ;;  %v4398_v25 = vld [vmem:[#allocation25_spill] sm:$0xff] }
 0x52f   :  { %1925 = vmatpush1.msra.mxu0 %v3479_v26  ;;  %1996 = vmatpush1.msra.mxu1 %v3481_v27  ;;  %v4399_v26 = vmov 0.0   ;;  %v4400_v27 = vld [vmem:[#allocation26_spill] sm:$0xff] }
 0x530   :  { %1926 = vmatprep.subr.mxu0 %v3485_v28  ;;  %1997 = vmatprep.subr.mxu1 %v3487_v29  ;;  %v4401_v29 = vld [vmem:[#allocation44_spill] sm:$0xff] }
 0x531   :  { %1927 = vmatpush1.msra.mxu0 %v3491_v31  ;;  %1998 = vmatpush1.msra.mxu1 %v3493_v32 }
 0x532   :  { %1928 = vmatprep.subr.mxu0 %v3497_v33  ;;  %1999 = vmatprep.subr.mxu1 %v3499_v34  ;;  %v4402_v34 = vld [vmem:[#allocation46_spill] sm:$0xff] }
 0x533   :  { %1929 = vmatpush1.msra.mxu0 %v3503_v35  ;;  %2000 = vmatpush1.msra.mxu1 %v3505_v36 }
 0x534   :  { %1930 = vmatprep.subr.mxu0 %v3509_v37  ;;  %2001 = vmatprep.subr.mxu1 %v3511_v39  ;;  %v4403_v39 = vld [vmem:[#allocation45_spill] sm:$0xff] }
 0x535   :  { %1931 = vmatpush1.msra.mxu0 %v3513_v40  ;;  %2002 = vmatpush1.msra.mxu1 %v3517_v41 }
 0x536   :  { %1932 = vmatprep.subr.mxu0 %v3519_v43  ;;  %2003 = vmatprep.subr.mxu1 %v3521_v44  ;;  %v4404_v44 = vld [vmem:[#allocation47_spill] sm:$0xff] }
 0x537   :  { %1933 = vmatpush1.msra.mxu0 %v3525_v45  ;;  %2004 = vmatpush1.msra.mxu1 %v3527_v46 }
 0x538   :  { %1934 = vmatprep.subr.mxu0 %v3529_v48  ;;  %2005 = vmatprep.subr.mxu1 %v3533_v49 }
 0x539   :  { %1935 = vmatpush1.msra.mxu0 %v3535_v50  ;;  %2006 = vmatpush1.msra.mxu1 %v3537_v51 }
 0x53a   :  { %1936 = vmatprep.subr.mxu0 %v3541_v52  ;;  %2007 = vmatprep.subr.mxu1 %v3543_v53 }
 0x53b   :  { %1937 = vmatpush1.msra.mxu0 %v3547_v54  ;;  %2008 = vmatpush1.msra.mxu1 %v3549_v55 }
 0x53c   :  { %1938 = vmatprep.subr.mxu0 %v3553_v57  ;;  %2009 = vmatprep.subr.mxu1 %v3555_v58 }
 0x53d   :  { %1939 = vmatpush1.msra.mxu0 %v3559_v59  ;;  %2010 = vmatpush1.msra.mxu1 %v4383_v56  ;;  %v3909_v56 = vld [vmem:[#allocation5 + $0x168] sm:$0xff] }
 0x53e   :  { %1940 = vmatprep.subr.mxu0 %v4384_v4  ;;  %2011 = vmatprep.subr.mxu1 %v4385_v38  ;;  %v3911_v4 = vld [vmem:[#allocation5 + $0x178] sm:$0xff]  ;;  %v3915_v38 = vld [vmem:[#allocation5 + $0x160] sm:$0xff] }
 0x53f   :  { %1941 = vmatpush1.msra.mxu0 %v4386_v10  ;;  %2012 = vmatpush1.msra.mxu1 %v4387_v0  ;;  %v3917_v10 = vld [vmem:[#allocation5 + $0x170] sm:$0xff]  ;;  %v3921_v0 = vld [vmem:[#allocation5 + $0x148] sm:$0xff] }
 0x540   :  { %1942 = vmatprep.subr.mxu0 %v4388_v6  ;;  %2013 = vmatprep.subr.mxu1 %v4389_v21  ;;  %v3923_v6 = vld [vmem:[#allocation5 + $0x158] sm:$0xff]  ;;  %v3927_v21 = vld [vmem:[#allocation5 + $0x140] sm:$0xff] }
 0x541   :  { %1943 = vmatpush1.msra.mxu0 %v4390_v9  ;;  %2014 = vmatpush1.msra.mxu1 %v4391_v14  ;;  %v3929_v9 = vld [vmem:[#allocation5 + $0x150] sm:$0xff]  ;;  %v3933_v14 = vld [vmem:[#allocation5 + $0x128] sm:$0xff] }
 0x542   :  { %1944 = vmatprep.subr.mxu0 %v4392_v22  ;;  %2015 = vmatprep.subr.mxu1 %v4393_v11  ;;  %v3935_v22 = vld [vmem:[#allocation5 + $0x138] sm:$0xff]  ;;  %v3939_v11 = vld [vmem:[#allocation5 + $0x120] sm:$0xff] }
 0x543   :  { %1945 = vmatpush1.msra.mxu0 %v4394_v19  ;;  %2016 = vmatpush1.msra.mxu1 %v4395_v20  ;;  %v3941_v19 = vld [vmem:[#allocation5 + $0x130] sm:$0xff]  ;;  %v3945_v20 = vld [vmem:[#allocation5 + $0x108] sm:$0xff] }
 0x544   :  { %1946 = vmatprep.subr.mxu0 %v4396_v23  ;;  %2017 = vmatprep.subr.mxu1 %v4397_v24  ;;  %v3947_v23 = vld [vmem:[#allocation5 + $0x118] sm:$0xff]  ;;  %v3949_v24 = vld [vmem:[#allocation5 + $0x100] sm:$0xff] }
 0x545   :  { %1947 = vmatpush1.msra.mxu0 %v4398_v25  ;;  %1980 = vmatprep.mubr.f32.mxu0 %v4399_v26  ;;  %v3953_v25 = vld [vmem:[#allocation5 + $0x110] sm:$0xff] }
 0x546   :  { %2018 = vmatpush1.msra.mxu1 %v4400_v27  ;;  %2051 = vmatprep.mubr.f32.mxu1 %v4399_v26  ;;  %v3955_v27 = vld [vmem:[#allocation5 + $0xe8] sm:$0xff] }
 0x547   :  { %2159 = vmatprep.subr.mxu0 %v3861_v60  ;;  %2230 = vmatprep.subr.mxu1 %v3863_v8 }
 0x5e6   :  { %v1739_v28 = vpop.f32.mrf.mxu0  ;;  %v1810_v37 = vpop.f32.mrf.mxu1 }
 0x5e7   :  { %v1815_v31 = vadd.f32 %v1739_v28, %v4401_v29  ;;  %v1817_v40 = vadd.f32 %v1810_v37, %v4403_v39  ;;  %v3957_v28 = vld [vmem:[#allocation5 + $0xf8] sm:$0xff]  ;;  %v3961_v29 = vld [vmem:[#allocation5 + $0xe0] sm:$0xff] }
 0x5e8   :  { %v1741_v32 = vpop.f32.mrf.mxu0  ;;  %v1812_v41 = vpop.f32.mrf.mxu1  ;;  %v3979_v37 = vld [vmem:[#allocation5 + $0xb8] sm:$0xff]  ;;  %v3983_v39 = vld [vmem:[#allocation5 + $0xa0] sm:$0xff] }
 0x5e9   :  { %v2626_v33 = vmul.f32 -1.442695, %v1815_v31  ;;  %v1816_v35 = vadd.f32 %v1741_v32, %v4402_v34  ;;  %v2628_v43 = vmul.f32 -1.442695, %v1817_v40  ;;  %v1818_v45 = vadd.f32 %v1812_v41, %v4404_v44  ;;  %v3963_v31 = vld [vmem:[#allocation5 + $0xf0] sm:$0xff]  ;;  %v3965_v32 = vld [vmem:[#allocation5 + $0xc8] sm:$0xff] }
 0x5ea   :  { %v3971_v34 = vld [vmem:[#allocation5 + $0xc0] sm:$0xff]  ;;  %v3985_v40 = vld [vmem:[#allocation5 + $0xb0] sm:$0xff]  ;;  %v3989_v41 = vld [vmem:[#allocation5 + $0x88] sm:$0xff] }
 0x5eb   :  { %2726 = vpow2.f32 %v2626_v33  ;;  %v2627_v36 = vmul.f32 -1.442695, %v1816_v35  ;;  %v3969_v33 = vld [vmem:[#allocation5 + $0xd8] sm:$0xff]  ;;  %v3973_v35 = vld [vmem:[#allocation5 + $0xd0] sm:$0xff]  ;;  %v3995_v44 = vld [vmem:[#allocation5 + $0x80] sm:$0xff] }
 0x5ed   :  { %2728 = vpow2.f32 %v2627_v36  ;;  %v3977_v36 = vld [vmem:[#allocation5 + $0xa8] sm:$0xff] }
 0x5ee   :  { %2730 = vpow2.f32 %v2628_v43  ;;  %v3991_v43 = vld [vmem:[#allocation5 + $0x98] sm:$0xff] }
 0x5ef   :  { %2732 = vtanh.f32 %v1818_v45  ;;  %v3997_v45 = vld [vmem:[#allocation5 + $0x90] sm:$0xff] }
 0x5f0   :  { %4405 = vst [vmem:[#allocation27_spill] sm:$0xff] %v3997_v45 }
 0x5f8   :  { %v2727_v46 = vpop.eup %2726 }
 0x5f9   :  { %v1828_v48 = vadd.f32 1.0, %v2727_v46  ;;  %v4001_v46 = vld [vmem:[#allocation5 + $0x68] sm:$0xff] }
 0x5fa   :  { %v2729_v49 = vpop.eup %2728  ;;  %4406 = vst [vmem:[#allocation28_spill] sm:$0xff] %v4001_v46 }
 0x5fb   :  { %2734 = vrcp.f32 %v1828_v48  ;;  %v1829_v50 = vadd.f32 1.0, %v2729_v49  ;;  %v2731_v51 = vpop.eup %2730  ;;  %v4003_v48 = vld [vmem:[#allocation5 + $0x78] sm:$0xff]  ;;  %v4007_v49 = vld [vmem:[#allocation5 + $0x60] sm:$0xff] }
 0x5fc   :  { %v2733_v52 = vpop.eup %2732  ;;  %v1830_v57 = vadd.f32 1.0, %v2731_v51  ;;  %4407 = vst [vmem:[#allocation30_spill] sm:$0xff] %v4003_v48  ;;  %4408 = vst [vmem:[#allocation29_spill] sm:$0xff] %v4007_v49  ;;  %v4013_v51 = vld [vmem:[#allocation5 + $0x48] sm:$0xff] }
 0x5fd   :  { %2736 = vrcp.f32 %v1829_v50  ;;  %v4009_v50 = vld [vmem:[#allocation5 + $0x70] sm:$0xff]  ;;  %4410 = vst [vmem:[#allocation32_spill] sm:$0xff] %v4013_v51 }
 0x5fe   :  { %2738 = vrcp.f32 %v1830_v57  ;;  %4409 = vst [vmem:[#allocation31_spill] sm:$0xff] %v4009_v50  ;;  %v4027_v57 = vld [vmem:[#allocation5 + $0x38] sm:$0xff] }
 0x5ff   :  { %4415 = vst [vmem:[#allocation38_spill] sm:$0xff] %v4027_v57 }
 0x608   :  { %v2735_v53 = vpop.eup %2734 }
 0x609   :  { %v1839_v54 = vmul.f32 %v2735_v53, %v2733_v52  ;;  %v4015_v52 = vld [vmem:[#allocation5 + $0x58] sm:$0xff]  ;;  %v4019_v53 = vld [vmem:[#allocation5 + $0x40] sm:$0xff] }
 0x60a   :  { %v2737_v55 = vpop.eup %2736  ;;  %4411 = vst [vmem:[#allocation34_spill] sm:$0xff] %v4015_v52  ;;  %4412 = vst [vmem:[#allocation33_spill] sm:$0xff] %v4019_v53 }
 0x60b   :  { %v1838_v58 = vmul.f32 %v2737_v55, %v3778_v63  ;;  %v2739_v1 = vpop.eup %2738  ;;  %v3897_v63 = vld [vmem:[#allocation5 + $0x188] sm:$0xff] }
 0x60c   :  { %v4025_v55 = vld [vmem:[#allocation5 + $0x28] sm:$0xff] }
 0x60d   :  { %v3853_v59 = vadd.f32 %v1839_v54, %v1838_v58  ;;  %v4021_v54 = vld [vmem:[#allocation5 + $0x50] sm:$0xff]  ;;  %4414 = vst [vmem:[#allocation36_spill] sm:$0xff] %v4025_v55  ;;  %v4031_v58 = vld [vmem:[#allocation5 + $0x20] sm:$0xff] }
 0x60e   :  { %4413 = vst [vmem:[#allocation35_spill] sm:$0xff] %v4021_v54  ;;  %4416 = vst [vmem:[#allocation37_spill] sm:$0xff] %v4031_v58 }
 0x60f   :  { %2740 = vtanh.f32 %v3853_v59 }
 0x61c   :  { %v2741_v18 = vpop.eup %2740 }
 0x61d   :  { %v1842_v30 = vmul.f32 %v2741_v18, %v2739_v1  ;;  %v4033_v1 = vld [vmem:[#allocation5 + $0x30] sm:$0xff]  ;;  %v4037_v18 = vld [vmem:[#allocation5 + $0x8] sm:$0xff] }
 0x61e   :  { %4417 = vst [vmem:[#allocation39_spill] sm:$0xff] %v4033_v1  ;;  %4418 = vst [vmem:[#allocation8_spill] sm:$0xff] %v4037_v18 }
 0x61f   :  { %2629 = vst [vmem:[%s4149_s4 + $0x28] sm:$0xff] %v1842_v30  ;;  %1981 = vmatmul.mubr.f32.vlgmr.msra.gmra.mxu0 %v1842_v30  ;;  %2052 = vmatmul.mubr.f32.vlgmr.msra.gmra.mxu1 %v1842_v30  ;;  %v4039_v30 = vld [vmem:[#allocation5 + $0x18] sm:$0xff] }
 0x620   :  { %2223 = vmatprep.mubr.f32.mxu0 %v4399_v26  ;;  %2294 = vmatprep.mubr.f32.mxu1 %v4399_v26  ;;  %4419 = vst [vmem:[#allocation10_spill] sm:$0xff] %v4039_v30  ;;  %v4043_v26 = vld [vmem:[#allocation5] sm:$0xff] }
 0x621   :  { %2160 = vmatpush1.msra.mxu0 %v3867_v17  ;;  %2231 = vmatpush1.msra.mxu1 %v3869_v2  ;;  %4420 = vst [vmem:[#allocation40_spill] sm:$0xff] %v4043_v26 }
 0x622   :  { %2161 = vmatprep.subr.mxu0 %v3873_v13  ;;  %2232 = vmatprep.subr.mxu1 %v3875_v5 }
 0x623   :  { %2162 = vmatpush1.msra.mxu0 %v3879_v3  ;;  %2233 = vmatpush1.msra.mxu1 %v3881_v62 }
 0x624   :  { %2163 = vmatprep.subr.mxu0 %v3885_v16  ;;  %2234 = vmatprep.subr.mxu1 %v3887_v15 }
 0x625   :  { %2164 = vmatpush1.msra.mxu0 %v3891_v12  ;;  %2235 = vmatpush1.msra.mxu1 %v3893_v42 }
 0x626   :  { %2165 = vmatprep.subr.mxu0 %v3897_v63  ;;  %2236 = vmatprep.subr.mxu1 %v3899_v7 }
 0x627   :  { %2166 = vmatpush1.msra.mxu0 %v3903_v47  ;;  %2237 = vmatpush1.msra.mxu1 %v3905_v61 }
 0x628   :  { %2167 = vmatprep.subr.mxu0 %v3909_v56  ;;  %2238 = vmatprep.subr.mxu1 %v3911_v4 }
 0x629   :  { %2168 = vmatpush1.msra.mxu0 %v3915_v38  ;;  %2239 = vmatpush1.msra.mxu1 %v3917_v10 }
 0x62a   :  { %2169 = vmatprep.subr.mxu0 %v3921_v0  ;;  %2240 = vmatprep.subr.mxu1 %v3923_v6 }
 0x62b   :  { %2170 = vmatpush1.msra.mxu0 %v3927_v21  ;;  %2241 = vmatpush1.msra.mxu1 %v3929_v9 }
 0x62c   :  { %2171 = vmatprep.subr.mxu0 %v3933_v14  ;;  %2242 = vmatprep.subr.mxu1 %v3935_v22 }
 0x62d   :  { %2172 = vmatpush1.msra.mxu0 %v3939_v11  ;;  %2243 = vmatpush1.msra.mxu1 %v3941_v19 }
 0x62e   :  { %2173 = vmatprep.subr.mxu0 %v3945_v20  ;;  %2244 = vmatprep.subr.mxu1 %v3947_v23 }
 0x62f   :  { %2174 = vmatpush1.msra.mxu0 %v3949_v24  ;;  %2245 = vmatpush1.msra.mxu1 %v3953_v25 }
 0x630   :  { %2175 = vmatprep.subr.mxu0 %v3955_v27  ;;  %2246 = vmatprep.subr.mxu1 %v3957_v28 }
 0x631   :  { %2176 = vmatpush1.msra.mxu0 %v3961_v29  ;;  %2247 = vmatpush1.msra.mxu1 %v3963_v31 }
 0x632   :  { %2177 = vmatprep.subr.mxu0 %v3965_v32  ;;  %2248 = vmatprep.subr.mxu1 %v3969_v33 }
 0x633   :  { %2178 = vmatpush1.msra.mxu0 %v3971_v34  ;;  %2249 = vmatpush1.msra.mxu1 %v3973_v35 }
 0x634   :  { %2179 = vmatprep.subr.mxu0 %v3977_v36  ;;  %2250 = vmatprep.subr.mxu1 %v3979_v37 }
 0x635   :  { %2180 = vmatpush1.msra.mxu0 %v3983_v39  ;;  %2251 = vmatpush1.msra.mxu1 %v3985_v40 }
 0x636   :  { %2181 = vmatprep.subr.mxu0 %v3989_v41  ;;  %2252 = vmatprep.subr.mxu1 %v3991_v43 }
 0x637   :  { %2182 = vmatpush1.msra.mxu0 %v3995_v44  ;;  %2253 = vmatpush1.msra.mxu1 %v3997_v45 }
 0x638   :  { %2183 = vmatprep.subr.mxu0 %v4001_v46  ;;  %2254 = vmatprep.subr.mxu1 %v4003_v48 }
 0x639   :  { %2184 = vmatpush1.msra.mxu0 %v4007_v49  ;;  %2255 = vmatpush1.msra.mxu1 %v4009_v50 }
 0x63a   :  { %2185 = vmatprep.subr.mxu0 %v4013_v51  ;;  %2256 = vmatprep.subr.mxu1 %v4015_v52  ;;  %v4045_v51 = vld [vmem:[#allocation5 + $0x10] sm:$0xff] }
 0x63b   :  { %2186 = vmatpush1.msra.mxu0 %v4019_v53  ;;  %2257 = vmatpush1.msra.mxu1 %v4021_v54  ;;  %4421 = vst [vmem:[#allocation42_spill] sm:$0xff] %v4045_v51 }
 0x63c   :  { %2187 = vmatprep.subr.mxu0 %v4025_v55  ;;  %2258 = vmatprep.subr.mxu1 %v4027_v57  ;;  %v4422_v55 = vld [vmem:[#allocation48_spill] sm:$0xff] }
 0x63d   :  { %2188 = vmatpush1.msra.mxu0 %v4031_v58  ;;  %2259 = vmatpush1.msra.mxu1 %v4033_v1  ;;  %v4423_v58 = vld [vmem:[#allocation50_spill] sm:$0xff] }
 0x63e   :  { %2189 = vmatprep.subr.mxu0 %v4037_v18  ;;  %2260 = vmatprep.subr.mxu1 %v4039_v30  ;;  %v4424_v30 = vld [vmem:[#allocation49_spill] sm:$0xff] }
 0x63f   :  { %2190 = vmatpush1.msra.mxu0 %v4043_v26  ;;  %2261 = vmatpush1.msra.mxu1 %v4045_v51  ;;  %v4425_v51 = vld [vmem:[#allocation51_spill] sm:$0xff] }
 0x640   :  { %2402 = vmatprep.subr.mxu0 %v3861_v60  ;;  %2473 = vmatprep.subr.mxu1 %v3863_v8 }
 0x6df   :  { %v1982_v57 = vpop.f32.mrf.mxu0  ;;  %v2053_v18 = vpop.f32.mrf.mxu1 }
 0x6e0   :  { %v2058_v54 = vadd.f32 %v1982_v57, %v4422_v55  ;;  %v2060_v49 = vadd.f32 %v2053_v18, %v4424_v30  ;;  %v4448_v30 = vld [vmem:[#allocation56_spill] sm:$0xff] }
 0x6e1   :  { %v1984_v53 = vpop.f32.mrf.mxu0  ;;  %v2055_v26 = vpop.f32.mrf.mxu1 }
 0x6e2   :  { %v2630_v52 = vmul.f32 -1.442695, %v2058_v54  ;;  %v2059_v50 = vadd.f32 %v1984_v53, %v4423_v58  ;;  %v2632_v48 = vmul.f32 -1.442695, %v2060_v49  ;;  %v2061_v46 = vadd.f32 %v2055_v26, %v4425_v51 }
 0x6e4   :  { %2742 = vpow2.f32 %v2630_v52  ;;  %v2631_v1 = vmul.f32 -1.442695, %v2059_v50 }
 0x6e6   :  { %2744 = vpow2.f32 %v2631_v1 }
 0x6e7   :  { %2746 = vpow2.f32 %v2632_v48 }
 0x6e8   :  { %2748 = vtanh.f32 %v2061_v46 }
 0x6f1   :  { %v2743_v60 = vpop.eup %2742 }
 0x6f2   :  { %v2071_v45 = vadd.f32 1.0, %v2743_v60 }
 0x6f3   :  { %v2745_v8 = vpop.eup %2744 }
 0x6f4   :  { %2750 = vrcp.f32 %v2071_v45  ;;  %v2072_v55 = vadd.f32 1.0, %v2745_v8  ;;  %v2747_v54 = vpop.eup %2746 }
 0x6f5   :  { %v2749_v53 = vpop.eup %2748  ;;  %v2073_v58 = vadd.f32 1.0, %v2747_v54  ;;  %v4449_v54 = vld [vmem:[#allocation58_spill] sm:$0xff] }
 0x6f6   :  { %2752 = vrcp.f32 %v2072_v55 }
 0x6f7   :  { %2754 = vrcp.f32 %v2073_v58 }
 0x701   :  { %v2751_v52 = vpop.eup %2750 }
 0x702   :  { %v2082_v50 = vmul.f32 %v2751_v52, %v2749_v53 }
 0x703   :  { %v2753_v57 = vpop.eup %2752 }
 0x704   :  { %v2081_v1 = vmul.f32 %v2753_v57, %v3853_v59  ;;  %v2755_v26 = vpop.eup %2754  ;;  %v4426_v59 = vld [vmem:[#allocation27_spill] sm:$0xff]  ;;  %v4450_v57 = vld [vmem:[#allocation57_spill] sm:$0xff] }
 0x706   :  { %v4060_v18 = vadd.f32 %v2082_v50, %v2081_v1 }
 0x708   :  { %2756 = vtanh.f32 %v4060_v18 }
 0x715   :  { %v2757_v48 = vpop.eup %2756 }
 0x716   :  { %v2085_v49 = vmul.f32 %v2757_v48, %v2755_v26  ;;  %v4451_v26 = vld [vmem:[#allocation59_spill] sm:$0xff] }
 0x718   :  { %2633 = vst [vmem:[%s4149_s4 + $0x30] sm:$0xff] %v2085_v49  ;;  %2224 = vmatmul.mubr.f32.vlgmr.msra.gmra.mxu0 %v2085_v49  ;;  %2295 = vmatmul.mubr.f32.vlgmr.msra.gmra.mxu1 %v2085_v49 }
 0x719   :  { %2403 = vmatpush1.msra.mxu0 %v3867_v17  ;;  %2474 = vmatpush1.msra.mxu1 %v3869_v2  ;;  %v4427_v17 = vld [vmem:[#allocation28_spill] sm:$0xff]  ;;  %v4428_v2 = vld [vmem:[#allocation30_spill] sm:$0xff] }
 0x71a   :  { %2404 = vmatprep.subr.mxu0 %v3873_v13  ;;  %2475 = vmatprep.subr.mxu1 %v3875_v5  ;;  %v4429_v13 = vld [vmem:[#allocation29_spill] sm:$0xff]  ;;  %v4430_v5 = vld [vmem:[#allocation31_spill] sm:$0xff] }
 0x71b   :  { %2405 = vmatpush1.msra.mxu0 %v3879_v3  ;;  %2476 = vmatpush1.msra.mxu1 %v3881_v62  ;;  %v4431_v3 = vld [vmem:[#allocation32_spill] sm:$0xff]  ;;  %v4432_v62 = vld [vmem:[#allocation34_spill] sm:$0xff] }
 0x71c   :  { %2406 = vmatprep.subr.mxu0 %v3885_v16  ;;  %2477 = vmatprep.subr.mxu1 %v3887_v15  ;;  %v4433_v16 = vld [vmem:[#allocation33_spill] sm:$0xff]  ;;  %v4434_v15 = vld [vmem:[#allocation35_spill] sm:$0xff] }
 0x71d   :  { %2407 = vmatpush1.msra.mxu0 %v3891_v12  ;;  %2478 = vmatpush1.msra.mxu1 %v3893_v42  ;;  %v4435_v12 = vld [vmem:[#allocation36_spill] sm:$0xff]  ;;  %v4436_v42 = vld [vmem:[#allocation38_spill] sm:$0xff] }
 0x71e   :  { %2408 = vmatprep.subr.mxu0 %v3897_v63  ;;  %2479 = vmatprep.subr.mxu1 %v3899_v7  ;;  %v4437_v63 = vld [vmem:[#allocation37_spill] sm:$0xff]  ;;  %v4438_v7 = vld [vmem:[#allocation39_spill] sm:$0xff] }
 0x71f   :  { %2409 = vmatpush1.msra.mxu0 %v3903_v47  ;;  %2480 = vmatpush1.msra.mxu1 %v3905_v61  ;;  %v4439_v47 = vld [vmem:[#allocation8_spill] sm:$0xff]  ;;  %v4440_v61 = vld [vmem:[#allocation10_spill] sm:$0xff] }
 0x720   :  { %2410 = vmatprep.subr.mxu0 %v3909_v56  ;;  %2481 = vmatprep.subr.mxu1 %v3911_v4  ;;  %v4441_v56 = vld [vmem:[#allocation40_spill] sm:$0xff]  ;;  %v4442_v4 = vmov 0.0  }
 0x721   :  { %2411 = vmatpush1.msra.mxu0 %v3915_v38  ;;  %2482 = vmatpush1.msra.mxu1 %v3917_v10  ;;  %v4443_v38 = vld [vmem:[#allocation42_spill] sm:$0xff] }
 0x722   :  { %2412 = vmatprep.subr.mxu0 %v3921_v0  ;;  %2483 = vmatprep.subr.mxu1 %v3923_v6  ;;  %v4444_v0 = vld [vmem:[#allocation52_spill] sm:$0xff] }
 0x723   :  { %2413 = vmatpush1.msra.mxu0 %v3927_v21  ;;  %2484 = vmatpush1.msra.mxu1 %v3929_v9 }
 0x724   :  { %2414 = vmatprep.subr.mxu0 %v3933_v14  ;;  %2485 = vmatprep.subr.mxu1 %v3935_v22  ;;  %v4445_v14 = vld [vmem:[#allocation54_spill] sm:$0xff] }
 0x725   :  { %2415 = vmatpush1.msra.mxu0 %v3939_v11  ;;  %2486 = vmatpush1.msra.mxu1 %v3941_v19 }
 0x726   :  { %2416 = vmatprep.subr.mxu0 %v3945_v20  ;;  %2487 = vmatprep.subr.mxu1 %v3947_v23  ;;  %v4446_v20 = vld [vmem:[#allocation53_spill] sm:$0xff] }
 0x727   :  { %2417 = vmatpush1.msra.mxu0 %v3949_v24  ;;  %2488 = vmatpush1.msra.mxu1 %v3953_v25 }
 0x728   :  { %2418 = vmatprep.subr.mxu0 %v3955_v27  ;;  %2489 = vmatprep.subr.mxu1 %v3957_v28  ;;  %v4447_v27 = vld [vmem:[#allocation55_spill] sm:$0xff] }
 0x729   :  { %2419 = vmatpush1.msra.mxu0 %v3961_v29  ;;  %2490 = vmatpush1.msra.mxu1 %v3963_v31 }
 0x72a   :  { %2420 = vmatprep.subr.mxu0 %v3965_v32  ;;  %2491 = vmatprep.subr.mxu1 %v3969_v33 }
 0x72b   :  { %2421 = vmatpush1.msra.mxu0 %v3971_v34  ;;  %2492 = vmatpush1.msra.mxu1 %v3973_v35 }
 0x72c   :  { %2422 = vmatprep.subr.mxu0 %v3977_v36  ;;  %2493 = vmatprep.subr.mxu1 %v3979_v37 }
 0x72d   :  { %2423 = vmatpush1.msra.mxu0 %v3983_v39  ;;  %2494 = vmatpush1.msra.mxu1 %v3985_v40 }
 0x72e   :  { %2424 = vmatprep.subr.mxu0 %v3989_v41  ;;  %2495 = vmatprep.subr.mxu1 %v3991_v43 }
 0x72f   :  { %2425 = vmatpush1.msra.mxu0 %v3995_v44  ;;  %2496 = vmatpush1.msra.mxu1 %v4426_v59 }
 0x730   :  { %2426 = vmatprep.subr.mxu0 %v4427_v17  ;;  %2497 = vmatprep.subr.mxu1 %v4428_v2 }
 0x731   :  { %2427 = vmatpush1.msra.mxu0 %v4429_v13  ;;  %2498 = vmatpush1.msra.mxu1 %v4430_v5 }
 0x732   :  { %2428 = vmatprep.subr.mxu0 %v4431_v3  ;;  %2499 = vmatprep.subr.mxu1 %v4432_v62 }
 0x733   :  { %2429 = vmatpush1.msra.mxu0 %v4433_v16  ;;  %2500 = vmatpush1.msra.mxu1 %v4434_v15 }
 0x734   :  { %2430 = vmatprep.subr.mxu0 %v4435_v12  ;;  %2501 = vmatprep.subr.mxu1 %v4436_v42 }
 0x735   :  { %2431 = vmatpush1.msra.mxu0 %v4437_v63  ;;  %2502 = vmatpush1.msra.mxu1 %v4438_v7 }
 0x736   :  { %2432 = vmatprep.subr.mxu0 %v4439_v47  ;;  %2503 = vmatprep.subr.mxu1 %v4440_v61 }
 0x737   :  { %2433 = vmatpush1.msra.mxu0 %v4441_v56  ;;  %2466 = vmatprep.mubr.f32.mxu0 %v4442_v4 }
 0x738   :  { %2504 = vmatpush1.msra.mxu1 %v4443_v38  ;;  %2537 = vmatprep.mubr.f32.mxu1 %v4442_v4 }
 0x7d8   :  { %v2225_v10 = vpop.f32.mrf.mxu0  ;;  %v2296_v19 = vpop.f32.mrf.mxu1 }
 0x7d9   :  { %v2301_v6 = vadd.f32 %v2225_v10, %v4444_v0  ;;  %v2303_v23 = vadd.f32 %v2296_v19, %v4446_v20 }
 0x7da   :  { %v2227_v21 = vpop.f32.mrf.mxu0  ;;  %v2298_v24 = vpop.f32.mrf.mxu1 }
 0x7db   :  { %v2634_v9 = vmul.f32 -1.442695, %v2301_v6  ;;  %v2302_v22 = vadd.f32 %v2227_v21, %v4445_v14  ;;  %v2636_v25 = vmul.f32 -1.442695, %v2303_v23  ;;  %v2304_v28 = vadd.f32 %v2298_v24, %v4447_v27 }
 0x7dd   :  { %2758 = vpow2.f32 %v2634_v9  ;;  %v2635_v11 = vmul.f32 -1.442695, %v2302_v22 }
 0x7df   :  { %2760 = vpow2.f32 %v2635_v11 }
 0x7e0   :  { %2762 = vpow2.f32 %v2636_v25 }
 0x7e1   :  { %2764 = vtanh.f32 %v2304_v28 }
 0x7ea   :  { %v2759_v29 = vpop.eup %2758 }
 0x7eb   :  { %v2314_v31 = vadd.f32 1.0, %v2759_v29 }
 0x7ec   :  { %v2761_v32 = vpop.eup %2760 }
 0x7ed   :  { %2766 = vrcp.f32 %v2314_v31  ;;  %v2315_v33 = vadd.f32 1.0, %v2761_v32  ;;  %v2763_v34 = vpop.eup %2762 }
 0x7ee   :  { %v2765_v35 = vpop.eup %2764  ;;  %v2316_v40 = vadd.f32 1.0, %v2763_v34 }
 0x7ef   :  { %2768 = vrcp.f32 %v2315_v33 }
 0x7f0   :  { %2770 = vrcp.f32 %v2316_v40 }
 0x7fa   :  { %v2767_v36 = vpop.eup %2766 }
 0x7fb   :  { %v2325_v37 = vmul.f32 %v2767_v36, %v2765_v35 }
 0x7fc   :  { %v2769_v39 = vpop.eup %2768 }
 0x7fd   :  { %v2324_v41 = vmul.f32 %v2769_v39, %v4060_v18  ;;  %v2771_v44 = vpop.eup %2770 }
 0x7ff   :  { %v2326_v43 = vadd.f32 %v2325_v37, %v2324_v41 }
 0x801   :  { %2772 = vtanh.f32 %v2326_v43 }
 0x80e   :  { %v2773_v45 = vpop.eup %2772 }
 0x80f   :  { %v2328_v46 = vmul.f32 %v2773_v45, %v2771_v44 }
 0x811   :  { %2637 = vst [vmem:[%s4149_s4 + $0x38] sm:$0xff] %v2328_v46  ;;  %2467 = vmatmul.mubr.f32.vlgmr.msra.gmra.mxu0 %v2328_v46  ;;  %2538 = vmatmul.mubr.f32.vlgmr.msra.gmra.mxu1 %v2328_v46 }
 0x8d1   :  { %v2468_v51 = vpop.f32.mrf.mxu0  ;;  %v2539_v50 = vpop.f32.mrf.mxu1 }
 0x8d2   :  { %v2544_v60 = vadd.f32 %v2468_v51, %v4448_v30  ;;  %v2546_v58 = vadd.f32 %v2539_v50, %v4450_v57 }
 0x8d3   :  { %v2470_v8 = vpop.f32.mrf.mxu0  ;;  %v2541_v1 = vpop.f32.mrf.mxu1 }
 0x8d4   :  { %v2638_v55 = vmul.f32 -1.442695, %v2544_v60  ;;  %v2545_v53 = vadd.f32 %v2470_v8, %v4449_v54  ;;  %v2640_v18 = vmul.f32 -1.442695, %v2546_v58  ;;  %v2547_v48 = vadd.f32 %v2541_v1, %v4451_v26 }
 0x8d6   :  { %2774 = vpow2.f32 %v2638_v55  ;;  %v2639_v52 = vmul.f32 -1.442695, %v2545_v53 }
 0x8d8   :  { %2776 = vpow2.f32 %v2639_v52 }
 0x8d9   :  { %2778 = vpow2.f32 %v2640_v18 }
 0x8da   :  { %2780 = vtanh.f32 %v2547_v48 }
 0x8e3   :  { %v2775_v49 = vpop.eup %2774 }
 0x8e4   :  { %v2557_v59 = vadd.f32 1.0, %v2775_v49 }
 0x8e5   :  { %v2777_v17 = vpop.eup %2776 }
 0x8e6   :  { %2782 = vrcp.f32 %v2557_v59  ;;  %v2558_v2 = vadd.f32 1.0, %v2777_v17  ;;  %v2779_v13 = vpop.eup %2778 }
 0x8e7   :  { %v2781_v5 = vpop.eup %2780  ;;  %v2559_v15 = vadd.f32 1.0, %v2779_v13 }
 0x8e8   :  { %2784 = vrcp.f32 %v2558_v2 }
 0x8e9   :  { %2786 = vrcp.f32 %v2559_v15 }
 0x8f3   :  { %v2783_v3 = vpop.eup %2782 }
 0x8f4   :  { %v2568_v62 = vmul.f32 %v2783_v3, %v2781_v5 }
 0x8f5   :  { %v2785_v16 = vpop.eup %2784 }
 0x8f6   :  { %v2567_v12 = vmul.f32 %v2785_v16, %v2326_v43  ;;  %v2787_v63 = vpop.eup %2786 }
 0x8f8   :  { %v2569_v42 = vadd.f32 %v2568_v62, %v2567_v12 }
 0x8fa   :  { %2788 = vtanh.f32 %v2569_v42 }
 0x907   :  { %v2789_v7 = vpop.eup %2788 }
 0x908   :  { %v2571_v47 = vmul.f32 %v2789_v7, %v2787_v63 }
 0x90a   :  { %2641 = vst [vmem:[%s4149_s4 + $0x40] sm:$0xff] %v2571_v47 }
 0x90b   :  { %2580 = vsyncpa [#allocation6], 1 }

</bundles_post_ra>
